<compile_context>
chip_gen: v7x
topology: tpu7x:2x2x1
jax: 0.10.0
libtpu: 0.0.40
codegen_flags: <defaults>
</compile_context>

<pallas_src>
import functools

import jax
import jax.numpy as jnp
from jax.experimental import pallas as pl
from jax.experimental.pallas import tpu as pltpu


H_TILE = 128        # halo tile width; must cover the largest receptive-field halo
T_TILE_MAX = 2048   # upper bound on the output time tile


def _device_vmem_limit_bytes():
    # v5e / v6e have 128 MiB physical VMEM -> allow a 64 MiB scoped limit there.
    # v7x (64 MiB per TensorCore) and unknown backends stay at a safe 32 MiB.
    try:
        kind = jax.devices()[0].device_kind.lower()
    except Exception:
        kind = ""
    if "v5" in kind or "v6" in kind:
        return 64 * 1024 * 1024
    return 32 * 1024 * 1024


_VMEM_LIMIT = _device_vmem_limit_bytes()
_TILE_BUDGET = _VMEM_LIMIT // 2     # rough per-grid-step working-set budget


# ----------------------------------------------------------------------------
# Padding helpers (match the PyTorch reference's get_padding / get_transposed_*)
# ----------------------------------------------------------------------------
def get_padding(kernel_size, dilation=1):
    return (kernel_size * dilation - dilation) // 2


def get_transposed_padding(kernel_size, stride):
    return (kernel_size - stride) // 2


def get_transposed_output_padding(kernel_size, stride):
    return (kernel_size - stride) % 2


def _round_up(v, m):
    return -(-v // m) * m


def _pick_t_tile(t_out, per_col_bytes, fixed_bytes):
    """Largest multiple of H_TILE whose estimated per-grid-step VMEM fits the budget."""
    avail = max(_TILE_BUDGET - fixed_bytes, H_TILE * per_col_bytes)
    t = (avail // per_col_bytes // H_TILE) * H_TILE
    t = max(H_TILE, min(T_TILE_MAX, int(t)))
    return min(t, _round_up(max(t_out, 1), H_TILE))


# ----------------------------------------------------------------------------
# Shared conv compute: one MXU matmul via im2col (small Cin) or K accumulating
# matmuls on shifted views with lane-aligned weight tap slices (large Cin).
# ----------------------------------------------------------------------------
def _conv_matmul(w_ref, x, K, dilation, width, cin, use_im2col):
    """w_ref: (Cout, K*Cin) bf16 (k-major).  x: (Cin, >= width+(K-1)*dilation) bf16.
    Returns (Cout, width) f32."""
    if K == 1:
        return jax.lax.dot_general(
            w_ref[...], x[:, :width], (((1,), (0,)), ((), ())),
            preferred_element_type=jnp.float32)
    if use_im2col:
        cols = jnp.concatenate(
            [x[:, k * dilation:k * dilation + width] for k in range(K)], axis=0)
        return jax.lax.dot_general(
            w_ref[...], cols, (((1,), (0,)), ((), ())),
            preferred_element_type=jnp.float32)
    acc = None
    for k in range(K):
        yk = jax.lax.dot_general(
            w_ref[:, k * cin:(k + 1) * cin],
            x[:, k * dilation:k * dilation + width],
            (((1,), (0,)), ((), ())),
            preferred_element_type=jnp.float32)
        acc = yk if acc is None else acc + yk
    return acc


# ----------------------------------------------------------------------------
# Plain Conv1d kernel (input conv, output conv, polyphase ConvTranspose body)
# ----------------------------------------------------------------------------
def _conv1d_kernel(x_ref, xh_ref, w_ref, b_ref, o_ref, *, K, dilation, t_tile,
                   use_im2col):
    cin = x_ref.shape[1]
    # Current tile + right halo tile -> (Cin, t_tile + H_TILE), time on lanes.
    x = jnp.concatenate([x_ref[0], xh_ref[0]], axis=-1)
    y = _conv_matmul(w_ref, x, K, dilation, t_tile, cin, use_im2col)
    o_ref[0] = (y + b_ref[...]).astype(o_ref.dtype)


def conv1d(x, w, b, *, K, dilation, pad_left, pad_right, out_dtype):
    """x: (B, Cin, T) bf16.  w: (Cout, K*Cin) bf16, contraction index k*Cin + ci.
    b: (Cout, 1) f32."""
    B, Cin, T = x.shape
    Cout = w.shape[0]
    halo = dilation * (K - 1)
    assert halo <= H_TILE, "conv halo exceeds halo tile size"
    Tout = T + pad_left + pad_right - halo

    use_im2col = Cin < 128
    out_bytes = jnp.dtype(out_dtype).itemsize
    per_col = (6 * Cin + 2 * (K * Cin if use_im2col else Cin)
               + 6 * Cout + 2 * out_bytes * Cout)
    t_tile = _pick_t_tile(Tout, per_col, 4 * Cout * K * Cin)
    n_tiles = pl.cdiv(Tout, t_tile)
    tpb = t_tile // H_TILE
    Tout_p = n_tiles * t_tile
    Tp = Tout_p + H_TILE

    # Single boundary/tiling pad; everything past Tout is garbage sliced off below.
    xp = jnp.pad(x, ((0, 0), (0, 0), (pad_left, Tp - pad_left - T)))

    kernel = functools.partial(_conv1d_kernel, K=K, dilation=dilation,
                               t_tile=t_tile, use_im2col=use_im2col)
    y = pl.pallas_call(
        kernel,
        grid=(n_tiles, B),
        in_specs=[
            pl.BlockSpec((1, Cin, t_tile), lambda i, b: (b, 0, i)),               # tile
            pl.BlockSpec((1, Cin, H_TILE), lambda i, b: (b, 0, (i + 1) * tpb)),   # halo
            pl.BlockSpec((Cout, K * Cin), lambda i, b: (0, 0)),                   # weight
            pl.BlockSpec((Cout, 1), lambda i, b: (0, 0)),                         # bias
        ],
        out_specs=pl.BlockSpec((1, Cout, t_tile), lambda i, b: (b, 0, i)),
        out_shape=jax.ShapeDtypeStruct((B, Cout, Tout_p), out_dtype),
        compiler_params=pltpu.CompilerParams(
            dimension_semantics=("parallel", "parallel"),
            vmem_limit_bytes=_VMEM_LIMIT),
        cost_estimate=pl.CostEstimate(
            flops=2 * B * Tout_p * K * Cin * Cout, transcendentals=0,
            bytes_accessed=(2 * B * Cin * Tp + out_bytes * B * Cout * Tout_p
                            + 2 * Cout * K * Cin)),
    )(xp, xp, w, b)

    return y if Tout == Tout_p else y[:, :, :Tout]


# ----------------------------------------------------------------------------
# Fused MRF layer kernel:
#   out = x + Conv1d_K1(LeakyReLU(Conv1d_Kd(LeakyReLU(x))))
# The intermediate stays in VMEM; it is evaluated on an extended window and masked
# to zero outside [0, T) to reproduce the second conv's zero-padding exactly.
# ----------------------------------------------------------------------------
def _mrf_layer_kernel(x_ref, xh_ref, w1_ref, b1_ref, w2_ref, b2_ref, o_ref,
                      *, K, dilation, t_tile, t_valid, use_im2col):
    C = x_ref.shape[1]
    p1 = (K - 1) * dilation // 2
    p2 = (K - 1) // 2
    mid_w = t_tile + 2 * p2

    x = jnp.concatenate([x_ref[0], xh_ref[0]], axis=-1)            # (C, t_tile+H_TILE) bf16
    xf = x.astype(jnp.float32)
    xl = jnp.where(xf >= 0.0, xf, 0.1 * xf).astype(jnp.bfloat16)   # LeakyReLU before conv1

    # Dilated conv1 over the extended window conv2 needs.
    mid = _conv_matmul(w1_ref, xl, K, dilation, mid_w, C, use_im2col) + b1_ref[...]
    # conv2 zero-pads ITS OWN input: zero mid columns that fall outside [0, T).
    pos = (pl.program_id(0) * t_tile - p2
           + jax.lax.broadcasted_iota(jnp.int32, (1, mid_w), 1))
    mid = jnp.where((pos >= 0) & (pos < t_valid), mid, 0.0)
    midl = jnp.where(mid >= 0.0, mid, 0.1 * mid).astype(jnp.bfloat16)   # LeakyReLU before conv2

    y = _conv_matmul(w2_ref, midl, K, 1, t_tile, C, use_im2col) + b2_ref[...]
    # Fused residual add: the layer input (pre-LeakyReLU) at this output tile.
    res = xf[:, p1 + p2:p1 + p2 + t_tile]
    o_ref[0] = (y + res).astype(o_ref.dtype)


def mrf_layer(x, w1, b1, w2, b2, *, K, dilation):
    """One MRFResidualBlock layer, fully fused in a single pallas_call."""
    B, C, T = x.shape
    p1 = (K - 1) * dilation // 2
    p2 = (K - 1) // 2
    halo = (K - 1) * dilation + (K - 1)
    assert halo <= H_TILE, "MRF halo exceeds halo tile size"

    use_im2col = C < 128
    per_col = 34 * C + 4 * (K * C if use_im2col else C)
    t_tile = _pick_t_tile(T, per_col, 8 * K * C * C)
    n_tiles = pl.cdiv(T, t_tile)
    tpb = t_tile // H_TILE
    T_p = n_tiles * t_tile
    Tp_in = T_p + H_TILE

    xp = jnp.pad(x, ((0, 0), (0, 0), (p1 + p2, Tp_in - (p1 + p2) - T)))

    kernel = functools.partial(_mrf_layer_kernel, K=K, dilation=dilation,
                               t_tile=t_tile, t_valid=T, use_im2col=use_im2col)
    y = pl.pallas_call(
        kernel,
        grid=(n_tiles, B),
        in_specs=[
            pl.BlockSpec((1, C, t_tile), lambda i, b: (b, 0, i)),                 # tile
            pl.BlockSpec((1, C, H_TILE), lambda i, b: (b, 0, (i + 1) * tpb)),     # halo
            pl.BlockSpec((C, K * C), lambda i, b: (0, 0)),                        # w1
            pl.BlockSpec((C, 1), lambda i, b: (0, 0)),                            # b1
            pl.BlockSpec((C, K * C), lambda i, b: (0, 0)),                        # w2
            pl.BlockSpec((C, 1), lambda i, b: (0, 0)),                            # b2
        ],
        out_specs=pl.BlockSpec((1, C, t_tile), lambda i, b: (b, 0, i)),
        out_shape=jax.ShapeDtypeStruct((B, C, T_p), jnp.bfloat16),
        compiler_params=pltpu.CompilerParams(
            dimension_semantics=("parallel", "parallel"),
            vmem_limit_bytes=_VMEM_LIMIT),
        cost_estimate=pl.CostEstimate(
            flops=4 * B * T_p * K * C * C, transcendentals=0,
            bytes_accessed=2 * B * C * Tp_in + 2 * B * C * T_p + 4 * K * C * C),
    )(xp, xp, w1, b1, w2, b2)

    return y if T == T_p else y[:, :, :T]


# ----------------------------------------------------------------------------
# ConvTranspose1d as a polyphase Pallas conv + XLA phase interleave
# ----------------------------------------------------------------------------
def conv_transpose1d(x, w_poly, b_poly, stride):
    """ConvTranspose1d with kernel=2*stride, padding=stride//2 and
    output_padding=(kernel-stride)%2, matching the reference module.
    w_poly: (stride*Cout, 2*Cin) bf16, row co*stride + r = [w[:,co,stride+r] | w[:,co,r]]."""
    B, Cin, T = x.shape
    K = 2 * stride
    p = get_transposed_padding(K, stride)
    op = get_transposed_output_padding(K, stride)
    # TODO(synk): odd upsample strides (output_padding=1 path) are not supported here.
    assert stride % 2 == 0, "odd upsample strides not supported"
    Cout = w_poly.shape[0] // stride               # static: derived from weight shape
    L_out = (T - 1) * stride - 2 * p + K + op      # == T * stride for even stride

    # z[:, co*stride + r, q] = sum_ci x[ci,q-1]*w[ci,co,stride+r] + x[ci,q]*w[ci,co,r]
    z = conv1d(x, w_poly, b_poly, K=2, dilation=1, pad_left=1, pad_right=1,
               out_dtype=jnp.bfloat16)             # (B, stride*Cout, T+1)
    # Interleave phases: y[co, q*stride + r] = z[co*stride + r, q]; trim left by p.
    # TODO(synk): this interleave could be fused into the kernel epilogue (XLU) to
    # save one XLA pass over the upsampled activation.
    z = z.reshape(B, Cout, stride, T + 1)
    z = jnp.transpose(z, (0, 1, 3, 2)).reshape(B, Cout, (T + 1) * stride)
    return z[:, :, p:p + L_out]


# ----------------------------------------------------------------------------
# Parameter construction (normal(0, 0.01) like reset_parameters). All weight
# repacking (flatten / polyphase split / bias repeat / bf16 cast) is hoisted to
# init time.  A raw f32 copy is kept for the XLA reference check.
# ----------------------------------------------------------------------------
def _next_key(state):
    state["key"], sub = jax.random.split(state["key"])
    return sub


def _conv_params(state, K, cin, cout):
    w = 0.01 * jax.random.normal(_next_key(state), (cout, cin, K), jnp.float32)
    w = w.astype(jnp.bfloat16).astype(jnp.float32)   # shared bf16 rounding with the kernel path
    b = 0.01 * jax.random.normal(_next_key(state), (cout,), jnp.float32)
    w_flat = jnp.transpose(w, (0, 2, 1)).reshape(cout, K * cin).astype(jnp.bfloat16)
    return {"w": w_flat, "b": b.reshape(cout, 1)}, {"w": w, "b": b}


def _convT_params(state, stride, cin, cout):
    K = 2 * stride
    w = 0.01 * jax.random.normal(_next_key(state), (cin, cout, K), jnp.float32)
    w = w.astype(jnp.bfloat16).astype(jnp.float32)
    b = 0.01 * jax.random.normal(_next_key(state), (cout,), jnp.float32)
    wt = jnp.transpose(w, (1, 2, 0))                                   # (cout, K, cin)
    w_poly = jnp.concatenate([wt[:, stride:, :], wt[:, :stride, :]], axis=-1)
    w_poly = w_poly.reshape(cout * stride, 2 * cin).astype(jnp.bfloat16)
    b_rep = jnp.repeat(b, stride).reshape(cout * stride, 1)
    return {"w": w_poly, "b": b_rep}, {"w": w, "b": b}


def init_generator_params(key, cfg):
    """Returns (params, ref_params): Pallas-packed bf16 weights and raw f32 weights."""
    state = {"key": key}
    g = cfg["generator"]
    in_ch, hid, out_ch = g["in_channels"], g["hidden_channels"], g["out_channels"]
    bk = g["binding_conv_kernel_size"]
    strides = g["upsample_strides"]
    mrf_kernels, mrf_dilations = g["MRF"]["kernels"], g["MRF"]["dilations"]
    # TODO(synk): weight_norm reparam (g*v/||v||) is an init-time detail; fold it into
    # the packed weights at checkpoint-load time — the forward math is identical.

    pc, rc = _conv_params(state, bk, in_ch, hid)
    params, ref = {"input_conv": pc, "blocks": []}, {"input_conv": rc, "blocks": []}
    ch = hid
    for stride in strides:
        cout = ch // 2
        pu, ru = _convT_params(state, stride, ch, cout)
        pb, rb = {"up": pu, "mrf": []}, {"up": ru, "mrf": []}
        for ks, ds in zip(mrf_kernels, mrf_dilations):
            players, rlayers = [], []
            for _ in ds:
                p1, r1 = _conv_params(state, ks, cout, cout)   # dilated conv
                p2, r2 = _conv_params(state, ks, cout, cout)   # dilation-1 conv
                players.append({"c1": p1, "c2": p2})
                rlayers.append({"c1": r1, "c2": r2})
            pb["mrf"].append(players)
            rb["mrf"].append(rlayers)
        params["blocks"].append(pb)
        ref["blocks"].append(rb)
        ch = cout
    pc, rc = _conv_params(state, bk, ch, out_ch)
    params["output_conv"], ref["output_conv"] = pc, rc
    return params, ref


# ----------------------------------------------------------------------------
# Forward pass (mirrors Generator.forward exactly: no pre-upsample LeakyReLU,
# no final tanh, MRF block outputs summed without averaging)
# ----------------------------------------------------------------------------
def mrf(pm, h, kernels, dilations):
    out = None
    for ks, ds, pb in zip(kernels, dilations, pm):
        r = h
        for d, lp in zip(ds, pb):
            r = mrf_layer(r, lp["c1"]["w"], lp["c1"]["b"], lp["c2"]["w"], lp["c2"]["b"],
                          K=ks, dilation=d)
        out = r if out is None else out + r
    return out


def generator_forward(params, x_ncl, cfg):
    """x_ncl: (B, in_channels, T) f32 — PyTorch NCL layout."""
    g = cfg["generator"]
    bk = g["binding_conv_kernel_size"]
    strides = g["upsample_strides"]
    kernels, dilations = g["MRF"]["kernels"], g["MRF"]["dilations"]
    pad = get_padding(bk, 1)

    h = x_ncl.astype(jnp.bfloat16)
    p = params["input_conv"]
    h = conv1d(h, p["w"], p["b"], K=bk, dilation=1, pad_left=pad, pad_right=pad,
               out_dtype=jnp.bfloat16)

    for stride, bp in zip(strides, params["blocks"]):
        h = conv_transpose1d(h, bp["up"]["w"], bp["up"]["b"], stride)
        h = mrf(bp["mrf"], h, kernels, dilations)

    p = params["output_conv"]
    return conv1d(h, p["w"], p["b"], K=bk, dilation=1, pad_left=pad, pad_right=pad,
                  out_dtype=jnp.float32)


# ----------------------------------------------------------------------------
# Pure-XLA f32 reference of the PyTorch module (for runtime validation only)
# ----------------------------------------------------------------------------
def _ref_conv1d(x, w, b, dilation, padding):
    y = jax.lax.conv_general_dilated(
        x, w, window_strides=(1,), padding=[(padding, padding)],
        rhs_dilation=(dilation,), dimension_numbers=("NCH", "OIH", "NCH"))
    return y + b[None, :, None]


def _ref_conv_transpose1d(x, w_iok, b, stride):
    K = 2 * stride
    p = get_transposed_padding(K, stride)
    op = get_transposed_output_padding(K, stride)
    w_oik = jnp.transpose(w_iok, (1, 0, 2))[:, :, ::-1]
    y = jax.lax.conv_general_dilated(
        x, w_oik, window_strides=(1,), padding=[(K - 1 - p, K - 1 - p + op)],
        lhs_dilation=(stride,), dimension_numbers=("NCH", "OIH", "NCH"))
    return y + b[None, :, None]


def _ref_generator_forward(rp, x, cfg):
    g = cfg["generator"]
    bk = g["binding_conv_kernel_size"]
    strides = g["upsample_strides"]
    kernels, dilations = g["MRF"]["kernels"], g["MRF"]["dilations"]
    lrelu = lambda v: jnp.where(v >= 0, v, 0.1 * v)

    h = _ref_conv1d(x, rp["input_conv"]["w"], rp["input_conv"]["b"], 1, get_padding(bk, 1))
    for stride, bp in zip(strides, rp["blocks"]):
        h = _ref_conv_transpose1d(h, bp["up"]["w"], bp["up"]["b"], stride)
        out = None
        for ks, ds, pb in zip(kernels, dilations, bp["mrf"]):
            r = h
            for d, lp in zip(ds, pb):
                t = _ref_conv1d(lrelu(r), lp["c1"]["w"], lp["c1"]["b"], d, get_padding(ks, d))
                t = _ref_conv1d(lrelu(t), lp["c2"]["w"], lp["c2"]["b"], 1, get_padding(ks, 1))
                r = t + r
            out = r if out is None else out + r
        h = out
    return _ref_conv1d(h, rp["output_conv"]["w"], rp["output_conv"]["b"], 1, get_padding(bk, 1))


# ----------------------------------------------------------------------------
if __name__ == "__main__":
    model_config = {
        "generator": {
            "in_channels": 8,
            "hidden_channels": 16,
            "out_channels": 1,
            "binding_conv_kernel_size": 7,
            "upsample_strides": [2, 2],
            "MRF": {
                "kernels": [3, 5],
                "dilations": [[1, 3], [1, 3]],
            },
            "apply_weight_norm": False,
        }
    }

    key = jax.random.PRNGKey(0)
    pkey, xkey = jax.random.split(key)
    params, ref_params = init_generator_params(pkey, model_config)

    B, C_in, T = 2, 8, 8
    x = jax.random.normal(xkey, (B, C_in, T), jnp.float32)

    fwd = jax.jit(functools.partial(generator_forward, cfg=model_config))
    y = jax.block_until_ready(fwd(params, x))

    expected_T = T
    for s in model_config["generator"]["upsample_strides"]:
        expected_T *= s
    assert y.shape == (B, model_config["generator"]["out_channels"], expected_T), y.shape
    assert y.dtype == jnp.float32
    assert bool(jnp.all(jnp.isfinite(y)))

    # Numerical cross-check against a pure-XLA f32 reference of the PyTorch module
    # (same bf16-rounded weights; remaining error is bf16 activation/matmul rounding).
    y_ref = jax.block_until_ready(
        jax.jit(functools.partial(_ref_generator_forward, cfg=model_config))(ref_params, x))
    rel_err = float(jnp.max(jnp.abs(y - y_ref)) / (jnp.max(jnp.abs(y_ref)) + 1e-12))
    assert rel_err < 0.15, f"mismatch vs XLA reference: rel_err={rel_err}"

    print("KERNEL_OK")
</pallas_src>

<mosaic_0001>
module attributes {stable_mosaic.version = 11 : i64} {
  func.func @_conv1d_kernel(%arg0: i32, %arg1: i32, %arg2: memref<1x8x128xbf16, #tpu.memory_space<vmem>>, %arg3: memref<1x8x128xbf16, #tpu.memory_space<vmem>>, %arg4: memref<16x56xbf16, #tpu.memory_space<vmem>>, %arg5: memref<16x1xf32, #tpu.memory_space<vmem>>, %arg6: memref<1x16x128xbf16, #tpu.memory_space<vmem>>) attributes {dimension_semantics = [#tpu.dimension_semantics<parallel>, #tpu.dimension_semantics<parallel>], iteration_bounds = array<i64: 1, 2>, scalar_prefetch = 0 : i64, scratch_operands = 0 : i64, tpu.core_type = #tpu.core_type<tc>, window_params = [{transform_indices = @transform_0, window_bounds = array<i64: 1, 8, 128>}, {transform_indices = @transform_1, window_bounds = array<i64: 1, 8, 128>}, {pipeline_mode = #tpu.pipeline_mode<synchronous>, transform_indices = @transform_2, window_bounds = array<i64: 16, 56>}, {pipeline_mode = #tpu.pipeline_mode<synchronous>, transform_indices = @transform_3, window_bounds = array<i64: 16, 1>}, {transform_indices = @transform_4, window_bounds = array<i64: 1, 16, 128>}]} {
    %c0 = arith.constant 0 : index
    %c0_0 = arith.constant 0 : index
    %c0_1 = arith.constant 0 : index
    %0 = vector.load %arg2[%c0, %c0_0, %c0_1] : memref<1x8x128xbf16, #tpu.memory_space<vmem>>, vector<1x8x128xbf16>
    %1 = vector.shape_cast %0 : vector<1x8x128xbf16> to vector<8x128xbf16>
    %c0_2 = arith.constant 0 : index
    %c0_3 = arith.constant 0 : index
    %c0_4 = arith.constant 0 : index
    %2 = vector.load %arg3[%c0_2, %c0_3, %c0_4] : memref<1x8x128xbf16, #tpu.memory_space<vmem>>, vector<1x8x128xbf16>
    %3 = vector.shape_cast %2 : vector<1x8x128xbf16> to vector<8x128xbf16>
    %4 = tpu.concatenate %1, %3 in 1 : vector<8x128xbf16>, vector<8x128xbf16> -> vector<8x256xbf16>
    %5 = vector.extract_strided_slice %4 {offsets = [0, 0], sizes = [8, 128], strides = [1, 1]} : vector<8x256xbf16> to vector<8x128xbf16>
    %6 = vector.extract_strided_slice %4 {offsets = [0, 1], sizes = [8, 128], strides = [1, 1]} : vector<8x256xbf16> to vector<8x128xbf16>
    %7 = vector.extract_strided_slice %4 {offsets = [0, 2], sizes = [8, 128], strides = [1, 1]} : vector<8x256xbf16> to vector<8x128xbf16>
    %8 = vector.extract_strided_slice %4 {offsets = [0, 3], sizes = [8, 128], strides = [1, 1]} : vector<8x256xbf16> to vector<8x128xbf16>
    %9 = vector.extract_strided_slice %4 {offsets = [0, 4], sizes = [8, 128], strides = [1, 1]} : vector<8x256xbf16> to vector<8x128xbf16>
    %10 = vector.extract_strided_slice %4 {offsets = [0, 5], sizes = [8, 128], strides = [1, 1]} : vector<8x256xbf16> to vector<8x128xbf16>
    %11 = vector.extract_strided_slice %4 {offsets = [0, 6], sizes = [8, 128], strides = [1, 1]} : vector<8x256xbf16> to vector<8x128xbf16>
    %12 = tpu.concatenate %5, %6, %7, %8, %9, %10, %11 in 0 : vector<8x128xbf16>, vector<8x128xbf16>, vector<8x128xbf16>, vector<8x128xbf16>, vector<8x128xbf16>, vector<8x128xbf16>, vector<8x128xbf16> -> vector<56x128xbf16>
    %c0_5 = arith.constant 0 : index
    %c0_6 = arith.constant 0 : index
    %13 = vector.load %arg4[%c0_5, %c0_6] : memref<16x56xbf16, #tpu.memory_space<vmem>>, vector<16x56xbf16>
    %cst = arith.constant dense<0.000000e+00> : vector<16x128xf32>
    %14 = tpu.matmul %13, %12, %cst {dimension_numbers = #tpu.dot_dimension_numbers<[1], [0], [0], [1], [0, 0, 1, 1], [], []>} : vector<16x56xbf16>, vector<56x128xbf16>, vector<16x128xf32> -> vector<16x128xf32>
    %c0_7 = arith.constant 0 : index
    %c0_8 = arith.constant 0 : index
    %15 = vector.load %arg5[%c0_7, %c0_8] : memref<16x1xf32, #tpu.memory_space<vmem>>, vector<16x1xf32>
    %16 = vector.broadcast %15 : vector<16x1xf32> to vector<16x128xf32>
    %17 = arith.addf %14, %16 : vector<16x128xf32>
    %18 = arith.truncf %17 : vector<16x128xf32> to vector<16x128xbf16>
    %c0_9 = arith.constant 0 : index
    %c0_10 = arith.constant 0 : index
    %c0_11 = arith.constant 0 : index
    %19 = vector.load %arg6[%c0_9, %c0_10, %c0_11] : memref<1x16x128xbf16, #tpu.memory_space<vmem>>, vector<1x16x128xbf16>
    %20 = vector.shape_cast %19 : vector<1x16x128xbf16> to vector<16x128xbf16>
    %21 = vector.shape_cast %18 : vector<16x128xbf16> to vector<1x16x128xbf16>
    tpu.vector_store %arg6[%c0_9, %c0_10, %c0_11], %21 {strides = array<i32>} : memref<1x16x128xbf16, #tpu.memory_space<vmem>>, vector<1x16x128xbf16>,
    return
  }
  func.func @transform_0(%arg0: i32, %arg1: i32) -> (i32, i32, i32) {
    %c0_i32 = arith.constant 0 : i32
    %c0_i32_0 = arith.constant 0 : i32
    return %arg1, %c0_i32, %arg0 : i32, i32, i32
  }
  func.func @transform_1(%arg0: i32, %arg1: i32) -> (i32, i32, i32) {
    %c1_i32 = arith.constant 1 : i32
    %0 = arith.addi %arg0, %c1_i32 : i32
    %c1_i32_0 = arith.constant 1 : i32
    %1 = arith.muli %0, %c1_i32_0 : i32
    %c0_i32 = arith.constant 0 : i32
    %c0_i32_1 = arith.constant 0 : i32
    return %arg1, %c0_i32, %1 : i32, i32, i32
  }
  func.func @transform_2(%arg0: i32, %arg1: i32) -> (i32, i32) {
    %c0_i32 = arith.constant 0 : i32
    %c0_i32_0 = arith.constant 0 : i32
    %c0_i32_1 = arith.constant 0 : i32
    return %c0_i32, %c0_i32_0 : i32, i32
  }
  func.func @transform_3(%arg0: i32, %arg1: i32) -> (i32, i32) {
    %c0_i32 = arith.constant 0 : i32
    %c0_i32_0 = arith.constant 0 : i32
    %c0_i32_1 = arith.constant 0 : i32
    return %c0_i32, %c0_i32_0 : i32, i32
  }
  func.func @transform_4(%arg0: i32, %arg1: i32) -> (i32, i32, i32) {
    %c0_i32 = arith.constant 0 : i32
    %c0_i32_0 = arith.constant 0 : i32
    return %arg1, %c0_i32, %arg0 : i32, i32, i32
  }
}

module attributes {stable_mosaic.version = 11 : i64} {
  func.func @_conv1d_kernel(%arg0: i32, %arg1: i32, %arg2: memref<1x16x128xbf16, #tpu.memory_space<vmem>>, %arg3: memref<1x16x128xbf16, #tpu.memory_space<vmem>>, %arg4: memref<16x32xbf16, #tpu.memory_space<vmem>>, %arg5: memref<16x1xf32, #tpu.memory_space<vmem>>, %arg6: memref<1x16x128xbf16, #tpu.memory_space<vmem>>) attributes {dimension_semantics = [#tpu.dimension_semantics<parallel>, #tpu.dimension_semantics<parallel>], iteration_bounds = array<i64: 1, 2>, scalar_prefetch = 0 : i64, scratch_operands = 0 : i64, tpu.core_type = #tpu.core_type<tc>, window_params = [{transform_indices = @transform_0, window_bounds = array<i64: 1, 16, 128>}, {transform_indices = @transform_1, window_bounds = array<i64: 1, 16, 128>}, {pipeline_mode = #tpu.pipeline_mode<synchronous>, transform_indices = @transform_2, window_bounds = array<i64: 16, 32>}, {pipeline_mode = #tpu.pipeline_mode<synchronous>, transform_indices = @transform_3, window_bounds = array<i64: 16, 1>}, {transform_indices = @transform_4, window_bounds = array<i64: 1, 16, 128>}]} {
    %c0 = arith.constant 0 : index
    %c0_0 = arith.constant 0 : index
    %c0_1 = arith.constant 0 : index
    %0 = vector.load %arg2[%c0, %c0_0, %c0_1] : memref<1x16x128xbf16, #tpu.memory_space<vmem>>, vector<1x16x128xbf16>
    %1 = vector.shape_cast %0 : vector<1x16x128xbf16> to vector<16x128xbf16>
    %c0_2 = arith.constant 0 : index
    %c0_3 = arith.constant 0 : index
    %c0_4 = arith.constant 0 : index
    %2 = vector.load %arg3[%c0_2, %c0_3, %c0_4] : memref<1x16x128xbf16, #tpu.memory_space<vmem>>, vector<1x16x128xbf16>
    %3 = vector.shape_cast %2 : vector<1x16x128xbf16> to vector<16x128xbf16>
    %4 = tpu.concatenate %1, %3 in 1 : vector<16x128xbf16>, vector<16x128xbf16> -> vector<16x256xbf16>
    %5 = vector.extract_strided_slice %4 {offsets = [0, 0], sizes = [16, 128], strides = [1, 1]} : vector<16x256xbf16> to vector<16x128xbf16>
    %6 = vector.extract_strided_slice %4 {offsets = [0, 1], sizes = [16, 128], strides = [1, 1]} : vector<16x256xbf16> to vector<16x128xbf16>
    %7 = tpu.concatenate %5, %6 in 0 : vector<16x128xbf16>, vector<16x128xbf16> -> vector<32x128xbf16>
    %c0_5 = arith.constant 0 : index
    %c0_6 = arith.constant 0 : index
    %8 = vector.load %arg4[%c0_5, %c0_6] : memref<16x32xbf16, #tpu.memory_space<vmem>>, vector<16x32xbf16>
    %cst = arith.constant dense<0.000000e+00> : vector<16x128xf32>
    %9 = tpu.matmul %8, %7, %cst {dimension_numbers = #tpu.dot_dimension_numbers<[1], [0], [0], [1], [0, 0, 1, 1], [], []>} : vector<16x32xbf16>, vector<32x128xbf16>, vector<16x128xf32> -> vector<16x128xf32>
    %c0_7 = arith.constant 0 : index
    %c0_8 = arith.constant 0 : index
    %10 = vector.load %arg5[%c0_7, %c0_8] : memref<16x1xf32, #tpu.memory_space<vmem>>, vector<16x1xf32>
    %11 = vector.broadcast %10 : vector<16x1xf32> to vector<16x128xf32>
    %12 = arith.addf %9, %11 : vector<16x128xf32>
    %13 = arith.truncf %12 : vector<16x128xf32> to vector<16x128xbf16>
    %c0_9 = arith.constant 0 : index
    %c0_10 = arith.constant 0 : index
    %c0_11 = arith.constant 0 : index
    %14 = vector.load %arg6[%c0_9, %c0_10, %c0_11] : memref<1x16x128xbf16, #tpu.memory_space<vmem>>, vector<1x16x128xbf16>
    %15 = vector.shape_cast %14 : vector<1x16x128xbf16> to vector<16x128xbf16>
    %16 = vector.shape_cast %13 : vector<16x128xbf16> to vector<1x16x128xbf16>
    tpu.vector_store %arg6[%c0_9, %c0_10, %c0_11], %16 {strides = array<i32>} : memref<1x16x128xbf16, #tpu.memory_space<vmem>>, vector<1x16x128xbf16>,
    return
  }
  func.func @transform_0(%arg0: i32, %arg1: i32) -> (i32, i32, i32) {
    %c0_i32 = arith.constant 0 : i32
    %c0_i32_0 = arith.constant 0 : i32
    return %arg1, %c0_i32, %arg0 : i32, i32, i32
  }
  func.func @transform_1(%arg0: i32, %arg1: i32) -> (i32, i32, i32) {
    %c1_i32 = arith.constant 1 : i32
    %0 = arith.addi %arg0, %c1_i32 : i32
    %c1_i32_0 = arith.constant 1 : i32
    %1 = arith.muli %0, %c1_i32_0 : i32
    %c0_i32 = arith.constant 0 : i32
    %c0_i32_1 = arith.constant 0 : i32
    return %arg1, %c0_i32, %1 : i32, i32, i32
  }
  func.func @transform_2(%arg0: i32, %arg1: i32) -> (i32, i32) {
    %c0_i32 = arith.constant 0 : i32
    %c0_i32_0 = arith.constant 0 : i32
    %c0_i32_1 = arith.constant 0 : i32
    return %c0_i32, %c0_i32_0 : i32, i32
  }
  func.func @transform_3(%arg0: i32, %arg1: i32) -> (i32, i32) {
    %c0_i32 = arith.constant 0 : i32
    %c0_i32_0 = arith.constant 0 : i32
    %c0_i32_1 = arith.constant 0 : i32
    return %c0_i32, %c0_i32_0 : i32, i32
  }
  func.func @transform_4(%arg0: i32, %arg1: i32) -> (i32, i32, i32) {
    %c0_i32 = arith.constant 0 : i32
    %c0_i32_0 = arith.constant 0 : i32
    return %arg1, %c0_i32, %arg0 : i32, i32, i32
  }
}

module attributes {stable_mosaic.version = 11 : i64} {
  func.func @_mrf_layer_kernel(%arg0: i32, %arg1: i32, %arg2: memref<1x8x128xbf16, #tpu.memory_space<vmem>>, %arg3: memref<1x8x128xbf16, #tpu.memory_space<vmem>>, %arg4: memref<8x24xbf16, #tpu.memory_space<vmem>>, %arg5: memref<8x1xf32, #tpu.memory_space<vmem>>, %arg6: memref<8x24xbf16, #tpu.memory_space<vmem>>, %arg7: memref<8x1xf32, #tpu.memory_space<vmem>>, %arg8: memref<1x8x128xbf16, #tpu.memory_space<vmem>>) attributes {dimension_semantics = [#tpu.dimension_semantics<parallel>, #tpu.dimension_semantics<parallel>], iteration_bounds = array<i64: 1, 2>, scalar_prefetch = 0 : i64, scratch_operands = 0 : i64, tpu.core_type = #tpu.core_type<tc>, window_params = [{transform_indices = @transform_0, window_bounds = array<i64: 1, 8, 128>}, {transform_indices = @transform_1, window_bounds = array<i64: 1, 8, 128>}, {pipeline_mode = #tpu.pipeline_mode<synchronous>, transform_indices = @transform_2, window_bounds = array<i64: 8, 24>}, {pipeline_mode = #tpu.pipeline_mode<synchronous>, transform_indices = @transform_3, window_bounds = array<i64: 8, 1>}, {pipeline_mode = #tpu.pipeline_mode<synchronous>, transform_indices = @transform_4, window_bounds = array<i64: 8, 24>}, {pipeline_mode = #tpu.pipeline_mode<synchronous>, transform_indices = @transform_5, window_bounds = array<i64: 8, 1>}, {transform_indices = @transform_6, window_bounds = array<i64: 1, 8, 128>}]} {
    %c0 = arith.constant 0 : index
    %c0_0 = arith.constant 0 : index
    %c0_1 = arith.constant 0 : index
    %0 = vector.load %arg2[%c0, %c0_0, %c0_1] : memref<1x8x128xbf16, #tpu.memory_space<vmem>>, vector<1x8x128xbf16>
    %1 = vector.shape_cast %0 : vector<1x8x128xbf16> to vector<8x128xbf16>
    %c0_2 = arith.constant 0 : index
    %c0_3 = arith.constant 0 : index
    %c0_4 = arith.constant 0 : index
    %2 = vector.load %arg3[%c0_2, %c0_3, %c0_4] : memref<1x8x128xbf16, #tpu.memory_space<vmem>>, vector<1x8x128xbf16>
    %3 = vector.shape_cast %2 : vector<1x8x128xbf16> to vector<8x128xbf16>
    %4 = tpu.concatenate %1, %3 in 1 : vector<8x128xbf16>, vector<8x128xbf16> -> vector<8x256xbf16>
    %5 = arith.extf %4 : vector<8x256xbf16> to vector<8x256xf32>
    %cst = arith.constant 0.000000e+00 : f32
    %6 = vector.broadcast %cst : f32 to vector<8x256xf32>
    %7 = arith.cmpf oge, %5, %6 : vector<8x256xf32>
    %cst_5 = arith.constant 1.000000e-01 : f32
    %8 = vector.broadcast %cst_5 : f32 to vector<8x256xf32>
    %9 = arith.mulf %8, %5 : vector<8x256xf32>
    %10 = arith.select %7, %5, %9 : vector<8x256xi1>, vector<8x256xf32>
    %11 = arith.truncf %10 : vector<8x256xf32> to vector<8x256xbf16>
    %12 = vector.extract_strided_slice %11 {offsets = [0, 0], sizes = [8, 130], strides = [1, 1]} : vector<8x256xbf16> to vector<8x130xbf16>
    %13 = vector.extract_strided_slice %11 {offsets = [0, 1], sizes = [8, 130], strides = [1, 1]} : vector<8x256xbf16> to vector<8x130xbf16>
    %14 = vector.extract_strided_slice %11 {offsets = [0, 2], sizes = [8, 130], strides = [1, 1]} : vector<8x256xbf16> to vector<8x130xbf16>
    %15 = tpu.concatenate %12, %13, %14 in 0 : vector<8x130xbf16>, vector<8x130xbf16>, vector<8x130xbf16> -> vector<24x130xbf16>
    %c0_6 = arith.constant 0 : index
    %c0_7 = arith.constant 0 : index
    %16 = vector.load %arg4[%c0_6, %c0_7] : memref<8x24xbf16, #tpu.memory_space<vmem>>, vector<8x24xbf16>
    %cst_8 = arith.constant dense<0.000000e+00> : vector<8x130xf32>
    %17 = tpu.matmul %16, %15, %cst_8 {dimension_numbers = #tpu.dot_dimension_numbers<[1], [0], [0], [1], [0, 0, 1, 1], [], []>} : vector<8x24xbf16>, vector<24x130xbf16>, vector<8x130xf32> -> vector<8x130xf32>
    %c0_9 = arith.constant 0 : index
    %c0_10 = arith.constant 0 : index
    %18 = vector.load %arg5[%c0_9, %c0_10] : memref<8x1xf32, #tpu.memory_space<vmem>>, vector<8x1xf32>
    %19 = vector.broadcast %18 : vector<8x1xf32> to vector<8x130xf32>
    %20 = arith.addf %17, %19 : vector<8x130xf32>
    %c128_i32 = arith.constant 128 : i32
    %21 = arith.muli %arg0, %c128_i32 : i32
    %c1_i32 = arith.constant 1 : i32
    %22 = arith.subi %21, %c1_i32 : i32
    %23 = tpu.iota {dimensions = array<i32: 1>} : vector<1x130xi32>
    %24 = vector.broadcast %22 : i32 to vector<1x130xi32>
    %25 = arith.addi %24, %23 : vector<1x130xi32>
    %c0_i32 = arith.constant 0 : i32
    %26 = vector.broadcast %c0_i32 : i32 to vector<1x130xi32>
    %27 = arith.cmpi sge, %25, %26 : vector<1x130xi32>
    %c16_i32 = arith.constant 16 : i32
    %28 = vector.broadcast %c16_i32 : i32 to vector<1x130xi32>
    %29 = arith.cmpi slt, %25, %28 : vector<1x130xi32>
    %30 = arith.andi %27, %29 : vector<1x130xi1>
    %cst_11 = arith.constant 0.000000e+00 : f32
    %31 = vector.shape_cast %30 : vector<1x130xi1> to vector<1x130xi1>
    %32 = vector.broadcast %31 : vector<1x130xi1> to vector<8x130xi1>
    %33 = vector.broadcast %cst_11 : f32 to vector<8x130xf32>
    %34 = arith.select %32, %20, %33 : vector<8x130xi1>, vector<8x130xf32>
    %cst_12 = arith.constant 0.000000e+00 : f32
    %35 = vector.broadcast %cst_12 : f32 to vector<8x130xf32>
    %36 = arith.cmpf oge, %34, %35 : vector<8x130xf32>
    %cst_13 = arith.constant 1.000000e-01 : f32
    %37 = vector.broadcast %cst_13 : f32 to vector<8x130xf32>
    %38 = arith.mulf %37, %34 : vector<8x130xf32>
    %39 = arith.select %36, %34, %38 : vector<8x130xi1>, vector<8x130xf32>
    %40 = arith.truncf %39 : vector<8x130xf32> to vector<8x130xbf16>
    %41 = vector.extract_strided_slice %40 {offsets = [0, 0], sizes = [8, 128], strides = [1, 1]} : vector<8x130xbf16> to vector<8x128xbf16>
    %42 = vector.extract_strided_slice %40 {offsets = [0, 1], sizes = [8, 128], strides = [1, 1]} : vector<8x130xbf16> to vector<8x128xbf16>
    %43 = vector.extract_strided_slice %40 {offsets = [0, 2], sizes = [8, 128], strides = [1, 1]} : vector<8x130xbf16> to vector<8x128xbf16>
    %44 = tpu.concatenate %41, %42, %43 in 0 : vector<8x128xbf16>, vector<8x128xbf16>, vector<8x128xbf16> -> vector<24x128xbf16>
    %c0_14 = arith.constant 0 : index
    %c0_15 = arith.constant 0 : index
    %45 = vector.load %arg6[%c0_14, %c0_15] : memref<8x24xbf16, #tpu.memory_space<vmem>>, vector<8x24xbf16>
    %cst_16 = arith.constant dense<0.000000e+00> : vector<8x128xf32>
    %46 = tpu.matmul %45, %44, %cst_16 {dimension_numbers = #tpu.dot_dimension_numbers<[1], [0], [0], [1], [0, 0, 1, 1], [], []>} : vector<8x24xbf16>, vector<24x128xbf16>, vector<8x128xf32> -> vector<8x128xf32>
    %c0_17 = arith.constant 0 : index
    %c0_18 = arith.constant 0 : index
    %47 = vector.load %arg7[%c0_17, %c0_18] : memref<8x1xf32, #tpu.memory_space<vmem>>, vector<8x1xf32>
    %48 = vector.broadcast %47 : vector<8x1xf32> to vector<8x128xf32>
    %49 = arith.addf %46, %48 : vector<8x128xf32>
    %50 = vector.extract_strided_slice %5 {offsets = [0, 2], sizes = [8, 128], strides = [1, 1]} : vector<8x256xf32> to vector<8x128xf32>
    %51 = arith.addf %49, %50 : vector<8x128xf32>
    %52 = arith.truncf %51 : vector<8x128xf32> to vector<8x128xbf16>
    %c0_19 = arith.constant 0 : index
    %c0_20 = arith.constant 0 : index
    %c0_21 = arith.constant 0 : index
    %53 = vector.load %arg8[%c0_19, %c0_20, %c0_21] : memref<1x8x128xbf16, #tpu.memory_space<vmem>>, vector<1x8x128xbf16>
    %54 = vector.shape_cast %53 : vector<1x8x128xbf16> to vector<8x128xbf16>
    %55 = vector.shape_cast %52 : vector<8x128xbf16> to vector<1x8x128xbf16>
    tpu.vector_store %arg8[%c0_19, %c0_20, %c0_21], %55 {strides = array<i32>} : memref<1x8x128xbf16, #tpu.memory_space<vmem>>, vector<1x8x128xbf16>,
    return
  }
  func.func @transform_0(%arg0: i32, %arg1: i32) -> (i32, i32, i32) {
    %c0_i32 = arith.constant 0 : i32
    %c0_i32_0 = arith.constant 0 : i32
    return %arg1, %c0_i32, %arg0 : i32, i32, i32
  }
  func.func @transform_1(%arg0: i32, %arg1: i32) -> (i32, i32, i32) {
    %c1_i32 = arith.constant 1 : i32
    %0 = arith.addi %arg0, %c1_i32 : i32
    %c1_i32_0 = arith.constant 1 : i32
    %1 = arith.muli %0, %c1_i32_0 : i32
    %c0_i32 = arith.constant 0 : i32
    %c0_i32_1 = arith.constant 0 : i32
    return %arg1, %c0_i32, %1 : i32, i32, i32
  }
  func.func @transform_2(%arg0: i32, %arg1: i32) -> (i32, i32) {
    %c0_i32 = arith.constant 0 : i32
    %c0_i32_0 = arith.constant 0 : i32
    %c0_i32_1 = arith.constant 0 : i32
    return %c0_i32, %c0_i32_0 : i32, i32
  }
  func.func @transform_3(%arg0: i32, %arg1: i32) -> (i32, i32) {
    %c0_i32 = arith.constant 0 : i32
    %c0_i32_0 = arith.constant 0 : i32
    %c0_i32_1 = arith.constant 0 : i32
    return %c0_i32, %c0_i32_0 : i32, i32
  }
  func.func @transform_4(%arg0: i32, %arg1: i32) -> (i32, i32) {
    %c0_i32 = arith.constant 0 : i32
    %c0_i32_0 = arith.constant 0 : i32
    %c0_i32_1 = arith.constant 0 : i32
    return %c0_i32, %c0_i32_0 : i32, i32
  }
  func.func @transform_5(%arg0: i32, %arg1: i32) -> (i32, i32) {
    %c0_i32 = arith.constant 0 : i32
    %c0_i32_0 = arith.constant 0 : i32
    %c0_i32_1 = arith.constant 0 : i32
    return %c0_i32, %c0_i32_0 : i32, i32
  }
  func.func @transform_6(%arg0: i32, %arg1: i32) -> (i32, i32, i32) {
    %c0_i32 = arith.constant 0 : i32
    %c0_i32_0 = arith.constant 0 : i32
    return %arg1, %c0_i32, %arg0 : i32, i32, i32
  }
}

module attributes {stable_mosaic.version = 11 : i64} {
  func.func @_mrf_layer_kernel(%arg0: i32, %arg1: i32, %arg2: memref<1x8x128xbf16, #tpu.memory_space<vmem>>, %arg3: memref<1x8x128xbf16, #tpu.memory_space<vmem>>, %arg4: memref<8x24xbf16, #tpu.memory_space<vmem>>, %arg5: memref<8x1xf32, #tpu.memory_space<vmem>>, %arg6: memref<8x24xbf16, #tpu.memory_space<vmem>>, %arg7: memref<8x1xf32, #tpu.memory_space<vmem>>, %arg8: memref<1x8x128xbf16, #tpu.memory_space<vmem>>) attributes {dimension_semantics = [#tpu.dimension_semantics<parallel>, #tpu.dimension_semantics<parallel>], iteration_bounds = array<i64: 1, 2>, scalar_prefetch = 0 : i64, scratch_operands = 0 : i64, tpu.core_type = #tpu.core_type<tc>, window_params = [{transform_indices = @transform_0, window_bounds = array<i64: 1, 8, 128>}, {transform_indices = @transform_1, window_bounds = array<i64: 1, 8, 128>}, {pipeline_mode = #tpu.pipeline_mode<synchronous>, transform_indices = @transform_2, window_bounds = array<i64: 8, 24>}, {pipeline_mode = #tpu.pipeline_mode<synchronous>, transform_indices = @transform_3, window_bounds = array<i64: 8, 1>}, {pipeline_mode = #tpu.pipeline_mode<synchronous>, transform_indices = @transform_4, window_bounds = array<i64: 8, 24>}, {pipeline_mode = #tpu.pipeline_mode<synchronous>, transform_indices = @transform_5, window_bounds = array<i64: 8, 1>}, {transform_indices = @transform_6, window_bounds = array<i64: 1, 8, 128>}]} {
    %c0 = arith.constant 0 : index
    %c0_0 = arith.constant 0 : index
    %c0_1 = arith.constant 0 : index
    %0 = vector.load %arg2[%c0, %c0_0, %c0_1] : memref<1x8x128xbf16, #tpu.memory_space<vmem>>, vector<1x8x128xbf16>
    %1 = vector.shape_cast %0 : vector<1x8x128xbf16> to vector<8x128xbf16>
    %c0_2 = arith.constant 0 : index
    %c0_3 = arith.constant 0 : index
    %c0_4 = arith.constant 0 : index
    %2 = vector.load %arg3[%c0_2, %c0_3, %c0_4] : memref<1x8x128xbf16, #tpu.memory_space<vmem>>, vector<1x8x128xbf16>
    %3 = vector.shape_cast %2 : vector<1x8x128xbf16> to vector<8x128xbf16>
    %4 = tpu.concatenate %1, %3 in 1 : vector<8x128xbf16>, vector<8x128xbf16> -> vector<8x256xbf16>
    %5 = arith.extf %4 : vector<8x256xbf16> to vector<8x256xf32>
    %cst = arith.constant 0.000000e+00 : f32
    %6 = vector.broadcast %cst : f32 to vector<8x256xf32>
    %7 = arith.cmpf oge, %5, %6 : vector<8x256xf32>
    %cst_5 = arith.constant 1.000000e-01 : f32
    %8 = vector.broadcast %cst_5 : f32 to vector<8x256xf32>
    %9 = arith.mulf %8, %5 : vector<8x256xf32>
    %10 = arith.select %7, %5, %9 : vector<8x256xi1>, vector<8x256xf32>
    %11 = arith.truncf %10 : vector<8x256xf32> to vector<8x256xbf16>
    %12 = vector.extract_strided_slice %11 {offsets = [0, 0], sizes = [8, 130], strides = [1, 1]} : vector<8x256xbf16> to vector<8x130xbf16>
    %13 = vector.extract_strided_slice %11 {offsets = [0, 3], sizes = [8, 130], strides = [1, 1]} : vector<8x256xbf16> to vector<8x130xbf16>
    %14 = vector.extract_strided_slice %11 {offsets = [0, 6], sizes = [8, 130], strides = [1, 1]} : vector<8x256xbf16> to vector<8x130xbf16>
    %15 = tpu.concatenate %12, %13, %14 in 0 : vector<8x130xbf16>, vector<8x130xbf16>, vector<8x130xbf16> -> vector<24x130xbf16>
    %c0_6 = arith.constant 0 : index
    %c0_7 = arith.constant 0 : index
    %16 = vector.load %arg4[%c0_6, %c0_7] : memref<8x24xbf16, #tpu.memory_space<vmem>>, vector<8x24xbf16>
    %cst_8 = arith.constant dense<0.000000e+00> : vector<8x130xf32>
    %17 = tpu.matmul %16, %15, %cst_8 {dimension_numbers = #tpu.dot_dimension_numbers<[1], [0], [0], [1], [0, 0, 1, 1], [], []>} : vector<8x24xbf16>, vector<24x130xbf16>, vector<8x130xf32> -> vector<8x130xf32>
    %c0_9 = arith.constant 0 : index
    %c0_10 = arith.constant 0 : index
    %18 = vector.load %arg5[%c0_9, %c0_10] : memref<8x1xf32, #tpu.memory_space<vmem>>, vector<8x1xf32>
    %19 = vector.broadcast %18 : vector<8x1xf32> to vector<8x130xf32>
    %20 = arith.addf %17, %19 : vector<8x130xf32>
    %c128_i32 = arith.constant 128 : i32
    %21 = arith.muli %arg0, %c128_i32 : i32
    %c1_i32 = arith.constant 1 : i32
    %22 = arith.subi %21, %c1_i32 : i32
    %23 = tpu.iota {dimensions = array<i32: 1>} : vector<1x130xi32>
    %24 = vector.broadcast %22 : i32 to vector<1x130xi32>
    %25 = arith.addi %24, %23 : vector<1x130xi32>
    %c0_i32 = arith.constant 0 : i32
    %26 = vector.broadcast %c0_i32 : i32 to vector<1x130xi32>
    %27 = arith.cmpi sge, %25, %26 : vector<1x130xi32>
    %c16_i32 = arith.constant 16 : i32
    %28 = vector.broadcast %c16_i32 : i32 to vector<1x130xi32>
    %29 = arith.cmpi slt, %25, %28 : vector<1x130xi32>
    %30 = arith.andi %27, %29 : vector<1x130xi1>
    %cst_11 = arith.constant 0.000000e+00 : f32
    %31 = vector.shape_cast %30 : vector<1x130xi1> to vector<1x130xi1>
    %32 = vector.broadcast %31 : vector<1x130xi1> to vector<8x130xi1>
    %33 = vector.broadcast %cst_11 : f32 to vector<8x130xf32>
    %34 = arith.select %32, %20, %33 : vector<8x130xi1>, vector<8x130xf32>
    %cst_12 = arith.constant 0.000000e+00 : f32
    %35 = vector.broadcast %cst_12 : f32 to vector<8x130xf32>
    %36 = arith.cmpf oge, %34, %35 : vector<8x130xf32>
    %cst_13 = arith.constant 1.000000e-01 : f32
    %37 = vector.broadcast %cst_13 : f32 to vector<8x130xf32>
    %38 = arith.mulf %37, %34 : vector<8x130xf32>
    %39 = arith.select %36, %34, %38 : vector<8x130xi1>, vector<8x130xf32>
    %40 = arith.truncf %39 : vector<8x130xf32> to vector<8x130xbf16>
    %41 = vector.extract_strided_slice %40 {offsets = [0, 0], sizes = [8, 128], strides = [1, 1]} : vector<8x130xbf16> to vector<8x128xbf16>
    %42 = vector.extract_strided_slice %40 {offsets = [0, 1], sizes = [8, 128], strides = [1, 1]} : vector<8x130xbf16> to vector<8x128xbf16>
    %43 = vector.extract_strided_slice %40 {offsets = [0, 2], sizes = [8, 128], strides = [1, 1]} : vector<8x130xbf16> to vector<8x128xbf16>
    %44 = tpu.concatenate %41, %42, %43 in 0 : vector<8x128xbf16>, vector<8x128xbf16>, vector<8x128xbf16> -> vector<24x128xbf16>
    %c0_14 = arith.constant 0 : index
    %c0_15 = arith.constant 0 : index
    %45 = vector.load %arg6[%c0_14, %c0_15] : memref<8x24xbf16, #tpu.memory_space<vmem>>, vector<8x24xbf16>
    %cst_16 = arith.constant dense<0.000000e+00> : vector<8x128xf32>
    %46 = tpu.matmul %45, %44, %cst_16 {dimension_numbers = #tpu.dot_dimension_numbers<[1], [0], [0], [1], [0, 0, 1, 1], [], []>} : vector<8x24xbf16>, vector<24x128xbf16>, vector<8x128xf32> -> vector<8x128xf32>
    %c0_17 = arith.constant 0 : index
    %c0_18 = arith.constant 0 : index
    %47 = vector.load %arg7[%c0_17, %c0_18] : memref<8x1xf32, #tpu.memory_space<vmem>>, vector<8x1xf32>
    %48 = vector.broadcast %47 : vector<8x1xf32> to vector<8x128xf32>
    %49 = arith.addf %46, %48 : vector<8x128xf32>
    %50 = vector.extract_strided_slice %5 {offsets = [0, 4], sizes = [8, 128], strides = [1, 1]} : vector<8x256xf32> to vector<8x128xf32>
    %51 = arith.addf %49, %50 : vector<8x128xf32>
    %52 = arith.truncf %51 : vector<8x128xf32> to vector<8x128xbf16>
    %c0_19 = arith.constant 0 : index
    %c0_20 = arith.constant 0 : index
    %c0_21 = arith.constant 0 : index
    %53 = vector.load %arg8[%c0_19, %c0_20, %c0_21] : memref<1x8x128xbf16, #tpu.memory_space<vmem>>, vector<1x8x128xbf16>
    %54 = vector.shape_cast %53 : vector<1x8x128xbf16> to vector<8x128xbf16>
    %55 = vector.shape_cast %52 : vector<8x128xbf16> to vector<1x8x128xbf16>
    tpu.vector_store %arg8[%c0_19, %c0_20, %c0_21], %55 {strides = array<i32>} : memref<1x8x128xbf16, #tpu.memory_space<vmem>>, vector<1x8x128xbf16>,
    return
  }
  func.func @transform_0(%arg0: i32, %arg1: i32) -> (i32, i32, i32) {
    %c0_i32 = arith.constant 0 : i32
    %c0_i32_0 = arith.constant 0 : i32
    return %arg1, %c0_i32, %arg0 : i32, i32, i32
  }
  func.func @transform_1(%arg0: i32, %arg1: i32) -> (i32, i32, i32) {
    %c1_i32 = arith.constant 1 : i32
    %0 = arith.addi %arg0, %c1_i32 : i32
    %c1_i32_0 = arith.constant 1 : i32
    %1 = arith.muli %0, %c1_i32_0 : i32
    %c0_i32 = arith.constant 0 : i32
    %c0_i32_1 = arith.constant 0 : i32
    return %arg1, %c0_i32, %1 : i32, i32, i32
  }
  func.func @transform_2(%arg0: i32, %arg1: i32) -> (i32, i32) {
    %c0_i32 = arith.constant 0 : i32
    %c0_i32_0 = arith.constant 0 : i32
    %c0_i32_1 = arith.constant 0 : i32
    return %c0_i32, %c0_i32_0 : i32, i32
  }
  func.func @transform_3(%arg0: i32, %arg1: i32) -> (i32, i32) {
    %c0_i32 = arith.constant 0 : i32
    %c0_i32_0 = arith.constant 0 : i32
    %c0_i32_1 = arith.constant 0 : i32
    return %c0_i32, %c0_i32_0 : i32, i32
  }
  func.func @transform_4(%arg0: i32, %arg1: i32) -> (i32, i32) {
    %c0_i32 = arith.constant 0 : i32
    %c0_i32_0 = arith.constant 0 : i32
    %c0_i32_1 = arith.constant 0 : i32
    return %c0_i32, %c0_i32_0 : i32, i32
  }
  func.func @transform_5(%arg0: i32, %arg1: i32) -> (i32, i32) {
    %c0_i32 = arith.constant 0 : i32
    %c0_i32_0 = arith.constant 0 : i32
    %c0_i32_1 = arith.constant 0 : i32
    return %c0_i32, %c0_i32_0 : i32, i32
  }
  func.func @transform_6(%arg0: i32, %arg1: i32) -> (i32, i32, i32) {
    %c0_i32 = arith.constant 0 : i32
    %c0_i32_0 = arith.constant 0 : i32
    return %arg1, %c0_i32, %arg0 : i32, i32, i32
  }
}

module attributes {stable_mosaic.version = 11 : i64} {
  func.func @_mrf_layer_kernel(%arg0: i32, %arg1: i32, %arg2: memref<1x8x128xbf16, #tpu.memory_space<vmem>>, %arg3: memref<1x8x128xbf16, #tpu.memory_space<vmem>>, %arg4: memref<8x40xbf16, #tpu.memory_space<vmem>>, %arg5: memref<8x1xf32, #tpu.memory_space<vmem>>, %arg6: memref<8x40xbf16, #tpu.memory_space<vmem>>, %arg7: memref<8x1xf32, #tpu.memory_space<vmem>>, %arg8: memref<1x8x128xbf16, #tpu.memory_space<vmem>>) attributes {dimension_semantics = [#tpu.dimension_semantics<parallel>, #tpu.dimension_semantics<parallel>], iteration_bounds = array<i64: 1, 2>, scalar_prefetch = 0 : i64, scratch_operands = 0 : i64, tpu.core_type = #tpu.core_type<tc>, window_params = [{transform_indices = @transform_0, window_bounds = array<i64: 1, 8, 128>}, {transform_indices = @transform_1, window_bounds = array<i64: 1, 8, 128>}, {pipeline_mode = #tpu.pipeline_mode<synchronous>, transform_indices = @transform_2, window_bounds = array<i64: 8, 40>}, {pipeline_mode = #tpu.pipeline_mode<synchronous>, transform_indices = @transform_3, window_bounds = array<i64: 8, 1>}, {pipeline_mode = #tpu.pipeline_mode<synchronous>, transform_indices = @transform_4, window_bounds = array<i64: 8, 40>}, {pipeline_mode = #tpu.pipeline_mode<synchronous>, transform_indices = @transform_5, window_bounds = array<i64: 8, 1>}, {transform_indices = @transform_6, window_bounds = array<i64: 1, 8, 128>}]} {
    %c0 = arith.constant 0 : index
    %c0_0 = arith.constant 0 : index
    %c0_1 = arith.constant 0 : index
    %0 = vector.load %arg2[%c0, %c0_0, %c0_1] : memref<1x8x128xbf16, #tpu.memory_space<vmem>>, vector<1x8x128xbf16>
    %1 = vector.shape_cast %0 : vector<1x8x128xbf16> to vector<8x128xbf16>
    %c0_2 = arith.constant 0 : index
    %c0_3 = arith.constant 0 : index
    %c0_4 = arith.constant 0 : index
    %2 = vector.load %arg3[%c0_2, %c0_3, %c0_4] : memref<1x8x128xbf16, #tpu.memory_space<vmem>>, vector<1x8x128xbf16>
    %3 = vector.shape_cast %2 : vector<1x8x128xbf16> to vector<8x128xbf16>
    %4 = tpu.concatenate %1, %3 in 1 : vector<8x128xbf16>, vector<8x128xbf16> -> vector<8x256xbf16>
    %5 = arith.extf %4 : vector<8x256xbf16> to vector<8x256xf32>
    %cst = arith.constant 0.000000e+00 : f32
    %6 = vector.broadcast %cst : f32 to vector<8x256xf32>
    %7 = arith.cmpf oge, %5, %6 : vector<8x256xf32>
    %cst_5 = arith.constant 1.000000e-01 : f32
    %8 = vector.broadcast %cst_5 : f32 to vector<8x256xf32>
    %9 = arith.mulf %8, %5 : vector<8x256xf32>
    %10 = arith.select %7, %5, %9 : vector<8x256xi1>, vector<8x256xf32>
    %11 = arith.truncf %10 : vector<8x256xf32> to vector<8x256xbf16>
    %12 = vector.extract_strided_slice %11 {offsets = [0, 0], sizes = [8, 132], strides = [1, 1]} : vector<8x256xbf16> to vector<8x132xbf16>
    %13 = vector.extract_strided_slice %11 {offsets = [0, 1], sizes = [8, 132], strides = [1, 1]} : vector<8x256xbf16> to vector<8x132xbf16>
    %14 = vector.extract_strided_slice %11 {offsets = [0, 2], sizes = [8, 132], strides = [1, 1]} : vector<8x256xbf16> to vector<8x132xbf16>
    %15 = vector.extract_strided_slice %11 {offsets = [0, 3], sizes = [8, 132], strides = [1, 1]} : vector<8x256xbf16> to vector<8x132xbf16>
    %16 = vector.extract_strided_slice %11 {offsets = [0, 4], sizes = [8, 132], strides = [1, 1]} : vector<8x256xbf16> to vector<8x132xbf16>
    %17 = tpu.concatenate %12, %13, %14, %15, %16 in 0 : vector<8x132xbf16>, vector<8x132xbf16>, vector<8x132xbf16>, vector<8x132xbf16>, vector<8x132xbf16> -> vector<40x132xbf16>
    %c0_6 = arith.constant 0 : index
    %c0_7 = arith.constant 0 : index
    %18 = vector.load %arg4[%c0_6, %c0_7] : memref<8x40xbf16, #tpu.memory_space<vmem>>, vector<8x40xbf16>
    %cst_8 = arith.constant dense<0.000000e+00> : vector<8x132xf32>
    %19 = tpu.matmul %18, %17, %cst_8 {dimension_numbers = #tpu.dot_dimension_numbers<[1], [0], [0], [1], [0, 0, 1, 1], [], []>} : vector<8x40xbf16>, vector<40x132xbf16>, vector<8x132xf32> -> vector<8x132xf32>
    %c0_9 = arith.constant 0 : index
    %c0_10 = arith.constant 0 : index
    %20 = vector.load %arg5[%c0_9, %c0_10] : memref<8x1xf32, #tpu.memory_space<vmem>>, vector<8x1xf32>
    %21 = vector.broadcast %20 : vector<8x1xf32> to vector<8x132xf32>
    %22 = arith.addf %19, %21 : vector<8x132xf32>
    %c128_i32 = arith.constant 128 : i32
    %23 = arith.muli %arg0, %c128_i32 : i32
    %c2_i32 = arith.constant 2 : i32
    %24 = arith.subi %23, %c2_i32 : i32
    %25 = tpu.iota {dimensions = array<i32: 1>} : vector<1x132xi32>
    %26 = vector.broadcast %24 : i32 to vector<1x132xi32>
    %27 = arith.addi %26, %25 : vector<1x132xi32>
    %c0_i32 = arith.constant 0 : i32
    %28 = vector.broadcast %c0_i32 : i32 to vector<1x132xi32>
    %29 = arith.cmpi sge, %27, %28 : vector<1x132xi32>
    %c16_i32 = arith.constant 16 : i32
    %30 = vector.broadcast %c16_i32 : i32 to vector<1x132xi32>
    %31 = arith.cmpi slt, %27, %30 : vector<1x132xi32>
    %32 = arith.andi %29, %31 : vector<1x132xi1>
    %cst_11 = arith.constant 0.000000e+00 : f32
    %33 = vector.shape_cast %32 : vector<1x132xi1> to vector<1x132xi1>
    %34 = vector.broadcast %33 : vector<1x132xi1> to vector<8x132xi1>
    %35 = vector.broadcast %cst_11 : f32 to vector<8x132xf32>
    %36 = arith.select %34, %22, %35 : vector<8x132xi1>, vector<8x132xf32>
    %cst_12 = arith.constant 0.000000e+00 : f32
    %37 = vector.broadcast %cst_12 : f32 to vector<8x132xf32>
    %38 = arith.cmpf oge, %36, %37 : vector<8x132xf32>
    %cst_13 = arith.constant 1.000000e-01 : f32
    %39 = vector.broadcast %cst_13 : f32 to vector<8x132xf32>
    %40 = arith.mulf %39, %36 : vector<8x132xf32>
    %41 = arith.select %38, %36, %40 : vector<8x132xi1>, vector<8x132xf32>
    %42 = arith.truncf %41 : vector<8x132xf32> to vector<8x132xbf16>
    %43 = vector.extract_strided_slice %42 {offsets = [0, 0], sizes = [8, 128], strides = [1, 1]} : vector<8x132xbf16> to vector<8x128xbf16>
    %44 = vector.extract_strided_slice %42 {offsets = [0, 1], sizes = [8, 128], strides = [1, 1]} : vector<8x132xbf16> to vector<8x128xbf16>
    %45 = vector.extract_strided_slice %42 {offsets = [0, 2], sizes = [8, 128], strides = [1, 1]} : vector<8x132xbf16> to vector<8x128xbf16>
    %46 = vector.extract_strided_slice %42 {offsets = [0, 3], sizes = [8, 128], strides = [1, 1]} : vector<8x132xbf16> to vector<8x128xbf16>
    %47 = vector.extract_strided_slice %42 {offsets = [0, 4], sizes = [8, 128], strides = [1, 1]} : vector<8x132xbf16> to vector<8x128xbf16>
    %48 = tpu.concatenate %43, %44, %45, %46, %47 in 0 : vector<8x128xbf16>, vector<8x128xbf16>, vector<8x128xbf16>, vector<8x128xbf16>, vector<8x128xbf16> -> vector<40x128xbf16>
    %c0_14 = arith.constant 0 : index
    %c0_15 = arith.constant 0 : index
    %49 = vector.load %arg6[%c0_14, %c0_15] : memref<8x40xbf16, #tpu.memory_space<vmem>>, vector<8x40xbf16>
    %cst_16 = arith.constant dense<0.000000e+00> : vector<8x128xf32>
    %50 = tpu.matmul %49, %48, %cst_16 {dimension_numbers = #tpu.dot_dimension_numbers<[1], [0], [0], [1], [0, 0, 1, 1], [], []>} : vector<8x40xbf16>, vector<40x128xbf16>, vector<8x128xf32> -> vector<8x128xf32>
    %c0_17 = arith.constant 0 : index
    %c0_18 = arith.constant 0 : index
    %51 = vector.load %arg7[%c0_17, %c0_18] : memref<8x1xf32, #tpu.memory_space<vmem>>, vector<8x1xf32>
    %52 = vector.broadcast %51 : vector<8x1xf32> to vector<8x128xf32>
    %53 = arith.addf %50, %52 : vector<8x128xf32>
    %54 = vector.extract_strided_slice %5 {offsets = [0, 4], sizes = [8, 128], strides = [1, 1]} : vector<8x256xf32> to vector<8x128xf32>
    %55 = arith.addf %53, %54 : vector<8x128xf32>
    %56 = arith.truncf %55 : vector<8x128xf32> to vector<8x128xbf16>
    %c0_19 = arith.constant 0 : index
    %c0_20 = arith.constant 0 : index
    %c0_21 = arith.constant 0 : index
    %57 = vector.load %arg8[%c0_19, %c0_20, %c0_21] : memref<1x8x128xbf16, #tpu.memory_space<vmem>>, vector<1x8x128xbf16>
    %58 = vector.shape_cast %57 : vector<1x8x128xbf16> to vector<8x128xbf16>
    %59 = vector.shape_cast %56 : vector<8x128xbf16> to vector<1x8x128xbf16>
    tpu.vector_store %arg8[%c0_19, %c0_20, %c0_21], %59 {strides = array<i32>} : memref<1x8x128xbf16, #tpu.memory_space<vmem>>, vector<1x8x128xbf16>,
    return
  }
  func.func @transform_0(%arg0: i32, %arg1: i32) -> (i32, i32, i32) {
    %c0_i32 = arith.constant 0 : i32
    %c0_i32_0 = arith.constant 0 : i32
    return %arg1, %c0_i32, %arg0 : i32, i32, i32
  }
  func.func @transform_1(%arg0: i32, %arg1: i32) -> (i32, i32, i32) {
    %c1_i32 = arith.constant 1 : i32
    %0 = arith.addi %arg0, %c1_i32 : i32
    %c1_i32_0 = arith.constant 1 : i32
    %1 = arith.muli %0, %c1_i32_0 : i32
    %c0_i32 = arith.constant 0 : i32
    %c0_i32_1 = arith.constant 0 : i32
    return %arg1, %c0_i32, %1 : i32, i32, i32
  }
  func.func @transform_2(%arg0: i32, %arg1: i32) -> (i32, i32) {
    %c0_i32 = arith.constant 0 : i32
    %c0_i32_0 = arith.constant 0 : i32
    %c0_i32_1 = arith.constant 0 : i32
    return %c0_i32, %c0_i32_0 : i32, i32
  }
  func.func @transform_3(%arg0: i32, %arg1: i32) -> (i32, i32) {
    %c0_i32 = arith.constant 0 : i32
    %c0_i32_0 = arith.constant 0 : i32
    %c0_i32_1 = arith.constant 0 : i32
    return %c0_i32, %c0_i32_0 : i32, i32
  }
  func.func @transform_4(%arg0: i32, %arg1: i32) -> (i32, i32) {
    %c0_i32 = arith.constant 0 : i32
    %c0_i32_0 = arith.constant 0 : i32
    %c0_i32_1 = arith.constant 0 : i32
    return %c0_i32, %c0_i32_0 : i32, i32
  }
  func.func @transform_5(%arg0: i32, %arg1: i32) -> (i32, i32) {
    %c0_i32 = arith.constant 0 : i32
    %c0_i32_0 = arith.constant 0 : i32
    %c0_i32_1 = arith.constant 0 : i32
    return %c0_i32, %c0_i32_0 : i32, i32
  }
  func.func @transform_6(%arg0: i32, %arg1: i32) -> (i32, i32, i32) {
    %c0_i32 = arith.constant 0 : i32
    %c0_i32_0 = arith.constant 0 : i32
    return %arg1, %c0_i32, %arg0 : i32, i32, i32
  }
}

module attributes {stable_mosaic.version = 11 : i64} {
  func.func @_mrf_layer_kernel(%arg0: i32, %arg1: i32, %arg2: memref<1x8x128xbf16, #tpu.memory_space<vmem>>, %arg3: memref<1x8x128xbf16, #tpu.memory_space<vmem>>, %arg4: memref<8x40xbf16, #tpu.memory_space<vmem>>, %arg5: memref<8x1xf32, #tpu.memory_space<vmem>>, %arg6: memref<8x40xbf16, #tpu.memory_space<vmem>>, %arg7: memref<8x1xf32, #tpu.memory_space<vmem>>, %arg8: memref<1x8x128xbf16, #tpu.memory_space<vmem>>) attributes {dimension_semantics = [#tpu.dimension_semantics<parallel>, #tpu.dimension_semantics<parallel>], iteration_bounds = array<i64: 1, 2>, scalar_prefetch = 0 : i64, scratch_operands = 0 : i64, tpu.core_type = #tpu.core_type<tc>, window_params = [{transform_indices = @transform_0, window_bounds = array<i64: 1, 8, 128>}, {transform_indices = @transform_1, window_bounds = array<i64: 1, 8, 128>}, {pipeline_mode = #tpu.pipeline_mode<synchronous>, transform_indices = @transform_2, window_bounds = array<i64: 8, 40>}, {pipeline_mode = #tpu.pipeline_mode<synchronous>, transform_indices = @transform_3, window_bounds = array<i64: 8, 1>}, {pipeline_mode = #tpu.pipeline_mode<synchronous>, transform_indices = @transform_4, window_bounds = array<i64: 8, 40>}, {pipeline_mode = #tpu.pipeline_mode<synchronous>, transform_indices = @transform_5, window_bounds = array<i64: 8, 1>}, {transform_indices = @transform_6, window_bounds = array<i64: 1, 8, 128>}]} {
    %c0 = arith.constant 0 : index
    %c0_0 = arith.constant 0 : index
    %c0_1 = arith.constant 0 : index
    %0 = vector.load %arg2[%c0, %c0_0, %c0_1] : memref<1x8x128xbf16, #tpu.memory_space<vmem>>, vector<1x8x128xbf16>
    %1 = vector.shape_cast %0 : vector<1x8x128xbf16> to vector<8x128xbf16>
    %c0_2 = arith.constant 0 : index
    %c0_3 = arith.constant 0 : index
    %c0_4 = arith.constant 0 : index
    %2 = vector.load %arg3[%c0_2, %c0_3, %c0_4] : memref<1x8x128xbf16, #tpu.memory_space<vmem>>, vector<1x8x128xbf16>
    %3 = vector.shape_cast %2 : vector<1x8x128xbf16> to vector<8x128xbf16>
    %4 = tpu.concatenate %1, %3 in 1 : vector<8x128xbf16>, vector<8x128xbf16> -> vector<8x256xbf16>
    %5 = arith.extf %4 : vector<8x256xbf16> to vector<8x256xf32>
    %cst = arith.constant 0.000000e+00 : f32
    %6 = vector.broadcast %cst : f32 to vector<8x256xf32>
    %7 = arith.cmpf oge, %5, %6 : vector<8x256xf32>
    %cst_5 = arith.constant 1.000000e-01 : f32
    %8 = vector.broadcast %cst_5 : f32 to vector<8x256xf32>
    %9 = arith.mulf %8, %5 : vector<8x256xf32>
    %10 = arith.select %7, %5, %9 : vector<8x256xi1>, vector<8x256xf32>
    %11 = arith.truncf %10 : vector<8x256xf32> to vector<8x256xbf16>
    %12 = vector.extract_strided_slice %11 {offsets = [0, 0], sizes = [8, 132], strides = [1, 1]} : vector<8x256xbf16> to vector<8x132xbf16>
    %13 = vector.extract_strided_slice %11 {offsets = [0, 3], sizes = [8, 132], strides = [1, 1]} : vector<8x256xbf16> to vector<8x132xbf16>
    %14 = vector.extract_strided_slice %11 {offsets = [0, 6], sizes = [8, 132], strides = [1, 1]} : vector<8x256xbf16> to vector<8x132xbf16>
    %15 = vector.extract_strided_slice %11 {offsets = [0, 9], sizes = [8, 132], strides = [1, 1]} : vector<8x256xbf16> to vector<8x132xbf16>
    %16 = vector.extract_strided_slice %11 {offsets = [0, 12], sizes = [8, 132], strides = [1, 1]} : vector<8x256xbf16> to vector<8x132xbf16>
    %17 = tpu.concatenate %12, %13, %14, %15, %16 in 0 : vector<8x132xbf16>, vector<8x132xbf16>, vector<8x132xbf16>, vector<8x132xbf16>, vector<8x132xbf16> -> vector<40x132xbf16>
    %c0_6 = arith.constant 0 : index
    %c0_7 = arith.constant 0 : index
    %18 = vector.load %arg4[%c0_6, %c0_7] : memref<8x40xbf16, #tpu.memory_space<vmem>>, vector<8x40xbf16>
    %cst_8 = arith.constant dense<0.000000e+00> : vector<8x132xf32>
    %19 = tpu.matmul %18, %17, %cst_8 {dimension_numbers = #tpu.dot_dimension_numbers<[1], [0], [0], [1], [0, 0, 1, 1], [], []>} : vector<8x40xbf16>, vector<40x132xbf16>, vector<8x132xf32> -> vector<8x132xf32>
    %c0_9 = arith.constant 0 : index
    %c0_10 = arith.constant 0 : index
    %20 = vector.load %arg5[%c0_9, %c0_10] : memref<8x1xf32, #tpu.memory_space<vmem>>, vector<8x1xf32>
    %21 = vector.broadcast %20 : vector<8x1xf32> to vector<8x132xf32>
    %22 = arith.addf %19, %21 : vector<8x132xf32>
    %c128_i32 = arith.constant 128 : i32
    %23 = arith.muli %arg0, %c128_i32 : i32
    %c2_i32 = arith.constant 2 : i32
    %24 = arith.subi %23, %c2_i32 : i32
    %25 = tpu.iota {dimensions = array<i32: 1>} : vector<1x132xi32>
    %26 = vector.broadcast %24 : i32 to vector<1x132xi32>
    %27 = arith.addi %26, %25 : vector<1x132xi32>
    %c0_i32 = arith.constant 0 : i32
    %28 = vector.broadcast %c0_i32 : i32 to vector<1x132xi32>
    %29 = arith.cmpi sge, %27, %28 : vector<1x132xi32>
    %c16_i32 = arith.constant 16 : i32
    %30 = vector.broadcast %c16_i32 : i32 to vector<1x132xi32>
    %31 = arith.cmpi slt, %27, %30 : vector<1x132xi32>
    %32 = arith.andi %29, %31 : vector<1x132xi1>
    %cst_11 = arith.constant 0.000000e+00 : f32
    %33 = vector.shape_cast %32 : vector<1x132xi1> to vector<1x132xi1>
    %34 = vector.broadcast %33 : vector<1x132xi1> to vector<8x132xi1>
    %35 = vector.broadcast %cst_11 : f32 to vector<8x132xf32>
    %36 = arith.select %34, %22, %35 : vector<8x132xi1>, vector<8x132xf32>
    %cst_12 = arith.constant 0.000000e+00 : f32
    %37 = vector.broadcast %cst_12 : f32 to vector<8x132xf32>
    %38 = arith.cmpf oge, %36, %37 : vector<8x132xf32>
    %cst_13 = arith.constant 1.000000e-01 : f32
    %39 = vector.broadcast %cst_13 : f32 to vector<8x132xf32>
    %40 = arith.mulf %39, %36 : vector<8x132xf32>
    %41 = arith.select %38, %36, %40 : vector<8x132xi1>, vector<8x132xf32>
    %42 = arith.truncf %41 : vector<8x132xf32> to vector<8x132xbf16>
    %43 = vector.extract_strided_slice %42 {offsets = [0, 0], sizes = [8, 128], strides = [1, 1]} : vector<8x132xbf16> to vector<8x128xbf16>
    %44 = vector.extract_strided_slice %42 {offsets = [0, 1], sizes = [8, 128], strides = [1, 1]} : vector<8x132xbf16> to vector<8x128xbf16>
    %45 = vector.extract_strided_slice %42 {offsets = [0, 2], sizes = [8, 128], strides = [1, 1]} : vector<8x132xbf16> to vector<8x128xbf16>
    %46 = vector.extract_strided_slice %42 {offsets = [0, 3], sizes = [8, 128], strides = [1, 1]} : vector<8x132xbf16> to vector<8x128xbf16>
    %47 = vector.extract_strided_slice %42 {offsets = [0, 4], sizes = [8, 128], strides = [1, 1]} : vector<8x132xbf16> to vector<8x128xbf16>
    %48 = tpu.concatenate %43, %44, %45, %46, %47 in 0 : vector<8x128xbf16>, vector<8x128xbf16>, vector<8x128xbf16>, vector<8x128xbf16>, vector<8x128xbf16> -> vector<40x128xbf16>
    %c0_14 = arith.constant 0 : index
    %c0_15 = arith.constant 0 : index
    %49 = vector.load %arg6[%c0_14, %c0_15] : memref<8x40xbf16, #tpu.memory_space<vmem>>, vector<8x40xbf16>
    %cst_16 = arith.constant dense<0.000000e+00> : vector<8x128xf32>
    %50 = tpu.matmul %49, %48, %cst_16 {dimension_numbers = #tpu.dot_dimension_numbers<[1], [0], [0], [1], [0, 0, 1, 1], [], []>} : vector<8x40xbf16>, vector<40x128xbf16>, vector<8x128xf32> -> vector<8x128xf32>
    %c0_17 = arith.constant 0 : index
    %c0_18 = arith.constant 0 : index
    %51 = vector.load %arg7[%c0_17, %c0_18] : memref<8x1xf32, #tpu.memory_space<vmem>>, vector<8x1xf32>
    %52 = vector.broadcast %51 : vector<8x1xf32> to vector<8x128xf32>
    %53 = arith.addf %50, %52 : vector<8x128xf32>
    %54 = vector.extract_strided_slice %5 {offsets = [0, 8], sizes = [8, 128], strides = [1, 1]} : vector<8x256xf32> to vector<8x128xf32>
    %55 = arith.addf %53, %54 : vector<8x128xf32>
    %56 = arith.truncf %55 : vector<8x128xf32> to vector<8x128xbf16>
    %c0_19 = arith.constant 0 : index
    %c0_20 = arith.constant 0 : index
    %c0_21 = arith.constant 0 : index
    %57 = vector.load %arg8[%c0_19, %c0_20, %c0_21] : memref<1x8x128xbf16, #tpu.memory_space<vmem>>, vector<1x8x128xbf16>
    %58 = vector.shape_cast %57 : vector<1x8x128xbf16> to vector<8x128xbf16>
    %59 = vector.shape_cast %56 : vector<8x128xbf16> to vector<1x8x128xbf16>
    tpu.vector_store %arg8[%c0_19, %c0_20, %c0_21], %59 {strides = array<i32>} : memref<1x8x128xbf16, #tpu.memory_space<vmem>>, vector<1x8x128xbf16>,
    return
  }
  func.func @transform_0(%arg0: i32, %arg1: i32) -> (i32, i32, i32) {
    %c0_i32 = arith.constant 0 : i32
    %c0_i32_0 = arith.constant 0 : i32
    return %arg1, %c0_i32, %arg0 : i32, i32, i32
  }
  func.func @transform_1(%arg0: i32, %arg1: i32) -> (i32, i32, i32) {
    %c1_i32 = arith.constant 1 : i32
    %0 = arith.addi %arg0, %c1_i32 : i32
    %c1_i32_0 = arith.constant 1 : i32
    %1 = arith.muli %0, %c1_i32_0 : i32
    %c0_i32 = arith.constant 0 : i32
    %c0_i32_1 = arith.constant 0 : i32
    return %arg1, %c0_i32, %1 : i32, i32, i32
  }
  func.func @transform_2(%arg0: i32, %arg1: i32) -> (i32, i32) {
    %c0_i32 = arith.constant 0 : i32
    %c0_i32_0 = arith.constant 0 : i32
    %c0_i32_1 = arith.constant 0 : i32
    return %c0_i32, %c0_i32_0 : i32, i32
  }
  func.func @transform_3(%arg0: i32, %arg1: i32) -> (i32, i32) {
    %c0_i32 = arith.constant 0 : i32
    %c0_i32_0 = arith.constant 0 : i32
    %c0_i32_1 = arith.constant 0 : i32
    return %c0_i32, %c0_i32_0 : i32, i32
  }
  func.func @transform_4(%arg0: i32, %arg1: i32) -> (i32, i32) {
    %c0_i32 = arith.constant 0 : i32
    %c0_i32_0 = arith.constant 0 : i32
    %c0_i32_1 = arith.constant 0 : i32
    return %c0_i32, %c0_i32_0 : i32, i32
  }
  func.func @transform_5(%arg0: i32, %arg1: i32) -> (i32, i32) {
    %c0_i32 = arith.constant 0 : i32
    %c0_i32_0 = arith.constant 0 : i32
    %c0_i32_1 = arith.constant 0 : i32
    return %c0_i32, %c0_i32_0 : i32, i32
  }
  func.func @transform_6(%arg0: i32, %arg1: i32) -> (i32, i32, i32) {
    %c0_i32 = arith.constant 0 : i32
    %c0_i32_0 = arith.constant 0 : i32
    return %arg1, %c0_i32, %arg0 : i32, i32, i32
  }
}

module attributes {stable_mosaic.version = 11 : i64} {
  func.func @_conv1d_kernel(%arg0: i32, %arg1: i32, %arg2: memref<1x8x128xbf16, #tpu.memory_space<vmem>>, %arg3: memref<1x8x128xbf16, #tpu.memory_space<vmem>>, %arg4: memref<8x16xbf16, #tpu.memory_space<vmem>>, %arg5: memref<8x1xf32, #tpu.memory_space<vmem>>, %arg6: memref<1x8x128xbf16, #tpu.memory_space<vmem>>) attributes {dimension_semantics = [#tpu.dimension_semantics<parallel>, #tpu.dimension_semantics<parallel>], iteration_bounds = array<i64: 1, 2>, scalar_prefetch = 0 : i64, scratch_operands = 0 : i64, tpu.core_type = #tpu.core_type<tc>, window_params = [{transform_indices = @transform_0, window_bounds = array<i64: 1, 8, 128>}, {transform_indices = @transform_1, window_bounds = array<i64: 1, 8, 128>}, {pipeline_mode = #tpu.pipeline_mode<synchronous>, transform_indices = @transform_2, window_bounds = array<i64: 8, 16>}, {pipeline_mode = #tpu.pipeline_mode<synchronous>, transform_indices = @transform_3, window_bounds = array<i64: 8, 1>}, {transform_indices = @transform_4, window_bounds = array<i64: 1, 8, 128>}]} {
    %c0 = arith.constant 0 : index
    %c0_0 = arith.constant 0 : index
    %c0_1 = arith.constant 0 : index
    %0 = vector.load %arg2[%c0, %c0_0, %c0_1] : memref<1x8x128xbf16, #tpu.memory_space<vmem>>, vector<1x8x128xbf16>
    %1 = vector.shape_cast %0 : vector<1x8x128xbf16> to vector<8x128xbf16>
    %c0_2 = arith.constant 0 : index
    %c0_3 = arith.constant 0 : index
    %c0_4 = arith.constant 0 : index
    %2 = vector.load %arg3[%c0_2, %c0_3, %c0_4] : memref<1x8x128xbf16, #tpu.memory_space<vmem>>, vector<1x8x128xbf16>
    %3 = vector.shape_cast %2 : vector<1x8x128xbf16> to vector<8x128xbf16>
    %4 = tpu.concatenate %1, %3 in 1 : vector<8x128xbf16>, vector<8x128xbf16> -> vector<8x256xbf16>
    %5 = vector.extract_strided_slice %4 {offsets = [0, 0], sizes = [8, 128], strides = [1, 1]} : vector<8x256xbf16> to vector<8x128xbf16>
    %6 = vector.extract_strided_slice %4 {offsets = [0, 1], sizes = [8, 128], strides = [1, 1]} : vector<8x256xbf16> to vector<8x128xbf16>
    %7 = tpu.concatenate %5, %6 in 0 : vector<8x128xbf16>, vector<8x128xbf16> -> vector<16x128xbf16>
    %c0_5 = arith.constant 0 : index
    %c0_6 = arith.constant 0 : index
    %8 = vector.load %arg4[%c0_5, %c0_6] : memref<8x16xbf16, #tpu.memory_space<vmem>>, vector<8x16xbf16>
    %cst = arith.constant dense<0.000000e+00> : vector<8x128xf32>
    %9 = tpu.matmul %8, %7, %cst {dimension_numbers = #tpu.dot_dimension_numbers<[1], [0], [0], [1], [0, 0, 1, 1], [], []>} : vector<8x16xbf16>, vector<16x128xbf16>, vector<8x128xf32> -> vector<8x128xf32>
    %c0_7 = arith.constant 0 : index
    %c0_8 = arith.constant 0 : index
    %10 = vector.load %arg5[%c0_7, %c0_8] : memref<8x1xf32, #tpu.memory_space<vmem>>, vector<8x1xf32>
    %11 = vector.broadcast %10 : vector<8x1xf32> to vector<8x128xf32>
    %12 = arith.addf %9, %11 : vector<8x128xf32>
    %13 = arith.truncf %12 : vector<8x128xf32> to vector<8x128xbf16>
    %c0_9 = arith.constant 0 : index
    %c0_10 = arith.constant 0 : index
    %c0_11 = arith.constant 0 : index
    %14 = vector.load %arg6[%c0_9, %c0_10, %c0_11] : memref<1x8x128xbf16, #tpu.memory_space<vmem>>, vector<1x8x128xbf16>
    %15 = vector.shape_cast %14 : vector<1x8x128xbf16> to vector<8x128xbf16>
    %16 = vector.shape_cast %13 : vector<8x128xbf16> to vector<1x8x128xbf16>
    tpu.vector_store %arg6[%c0_9, %c0_10, %c0_11], %16 {strides = array<i32>} : memref<1x8x128xbf16, #tpu.memory_space<vmem>>, vector<1x8x128xbf16>,
    return
  }
  func.func @transform_0(%arg0: i32, %arg1: i32) -> (i32, i32, i32) {
    %c0_i32 = arith.constant 0 : i32
    %c0_i32_0 = arith.constant 0 : i32
    return %arg1, %c0_i32, %arg0 : i32, i32, i32
  }
  func.func @transform_1(%arg0: i32, %arg1: i32) -> (i32, i32, i32) {
    %c1_i32 = arith.constant 1 : i32
    %0 = arith.addi %arg0, %c1_i32 : i32
    %c1_i32_0 = arith.constant 1 : i32
    %1 = arith.muli %0, %c1_i32_0 : i32
    %c0_i32 = arith.constant 0 : i32
    %c0_i32_1 = arith.constant 0 : i32
    return %arg1, %c0_i32, %1 : i32, i32, i32
  }
  func.func @transform_2(%arg0: i32, %arg1: i32) -> (i32, i32) {
    %c0_i32 = arith.constant 0 : i32
    %c0_i32_0 = arith.constant 0 : i32
    %c0_i32_1 = arith.constant 0 : i32
    return %c0_i32, %c0_i32_0 : i32, i32
  }
  func.func @transform_3(%arg0: i32, %arg1: i32) -> (i32, i32) {
    %c0_i32 = arith.constant 0 : i32
    %c0_i32_0 = arith.constant 0 : i32
    %c0_i32_1 = arith.constant 0 : i32
    return %c0_i32, %c0_i32_0 : i32, i32
  }
  func.func @transform_4(%arg0: i32, %arg1: i32) -> (i32, i32, i32) {
    %c0_i32 = arith.constant 0 : i32
    %c0_i32_0 = arith.constant 0 : i32
    return %arg1, %c0_i32, %arg0 : i32, i32, i32
  }
}

module attributes {stable_mosaic.version = 11 : i64} {
  func.func @_mrf_layer_kernel(%arg0: i32, %arg1: i32, %arg2: memref<1x4x128xbf16, #tpu.memory_space<vmem>>, %arg3: memref<1x4x128xbf16, #tpu.memory_space<vmem>>, %arg4: memref<4x20xbf16, #tpu.memory_space<vmem>>, %arg5: memref<4x1xf32, #tpu.memory_space<vmem>>, %arg6: memref<4x20xbf16, #tpu.memory_space<vmem>>, %arg7: memref<4x1xf32, #tpu.memory_space<vmem>>, %arg8: memref<1x4x128xbf16, #tpu.memory_space<vmem>>) attributes {dimension_semantics = [#tpu.dimension_semantics<parallel>, #tpu.dimension_semantics<parallel>], iteration_bounds = array<i64: 1, 2>, scalar_prefetch = 0 : i64, scratch_operands = 0 : i64, tpu.core_type = #tpu.core_type<tc>, window_params = [{transform_indices = @transform_0, window_bounds = array<i64: 1, 4, 128>}, {transform_indices = @transform_1, window_bounds = array<i64: 1, 4, 128>}, {pipeline_mode = #tpu.pipeline_mode<synchronous>, transform_indices = @transform_2, window_bounds = array<i64: 4, 20>}, {pipeline_mode = #tpu.pipeline_mode<synchronous>, transform_indices = @transform_3, window_bounds = array<i64: 4, 1>}, {pipeline_mode = #tpu.pipeline_mode<synchronous>, transform_indices = @transform_4, window_bounds = array<i64: 4, 20>}, {pipeline_mode = #tpu.pipeline_mode<synchronous>, transform_indices = @transform_5, window_bounds = array<i64: 4, 1>}, {transform_indices = @transform_6, window_bounds = array<i64: 1, 4, 128>}]} {
    %c0 = arith.constant 0 : index
    %c0_0 = arith.constant 0 : index
    %c0_1 = arith.constant 0 : index
    %0 = vector.load %arg2[%c0, %c0_0, %c0_1] : memref<1x4x128xbf16, #tpu.memory_space<vmem>>, vector<1x4x128xbf16>
    %1 = vector.shape_cast %0 : vector<1x4x128xbf16> to vector<4x128xbf16>
    %c0_2 = arith.constant 0 : index
    %c0_3 = arith.constant 0 : index
    %c0_4 = arith.constant 0 : index
    %2 = vector.load %arg3[%c0_2, %c0_3, %c0_4] : memref<1x4x128xbf16, #tpu.memory_space<vmem>>, vector<1x4x128xbf16>
    %3 = vector.shape_cast %2 : vector<1x4x128xbf16> to vector<4x128xbf16>
    %4 = tpu.concatenate %1, %3 in 1 : vector<4x128xbf16>, vector<4x128xbf16> -> vector<4x256xbf16>
    %5 = arith.extf %4 : vector<4x256xbf16> to vector<4x256xf32>
    %cst = arith.constant 0.000000e+00 : f32
    %6 = vector.broadcast %cst : f32 to vector<4x256xf32>
    %7 = arith.cmpf oge, %5, %6 : vector<4x256xf32>
    %cst_5 = arith.constant 1.000000e-01 : f32
    %8 = vector.broadcast %cst_5 : f32 to vector<4x256xf32>
    %9 = arith.mulf %8, %5 : vector<4x256xf32>
    %10 = arith.select %7, %5, %9 : vector<4x256xi1>, vector<4x256xf32>
    %11 = arith.truncf %10 : vector<4x256xf32> to vector<4x256xbf16>
    %12 = vector.extract_strided_slice %11 {offsets = [0, 0], sizes = [4, 132], strides = [1, 1]} : vector<4x256xbf16> to vector<4x132xbf16>
    %13 = vector.extract_strided_slice %11 {offsets = [0, 1], sizes = [4, 132], strides = [1, 1]} : vector<4x256xbf16> to vector<4x132xbf16>
    %14 = vector.extract_strided_slice %11 {offsets = [0, 2], sizes = [4, 132], strides = [1, 1]} : vector<4x256xbf16> to vector<4x132xbf16>
    %15 = vector.extract_strided_slice %11 {offsets = [0, 3], sizes = [4, 132], strides = [1, 1]} : vector<4x256xbf16> to vector<4x132xbf16>
    %16 = vector.extract_strided_slice %11 {offsets = [0, 4], sizes = [4, 132], strides = [1, 1]} : vector<4x256xbf16> to vector<4x132xbf16>
    %17 = tpu.concatenate %12, %13, %14, %15, %16 in 0 : vector<4x132xbf16>, vector<4x132xbf16>, vector<4x132xbf16>, vector<4x132xbf16>, vector<4x132xbf16> -> vector<20x132xbf16>
    %c0_6 = arith.constant 0 : index
    %c0_7 = arith.constant 0 : index
    %18 = vector.load %arg4[%c0_6, %c0_7] : memref<4x20xbf16, #tpu.memory_space<vmem>>, vector<4x20xbf16>
    %cst_8 = arith.constant dense<0.000000e+00> : vector<4x132xf32>
    %19 = tpu.matmul %18, %17, %cst_8 {dimension_numbers = #tpu.dot_dimension_numbers<[1], [0], [0], [1], [0, 0, 1, 1], [], []>} : vector<4x20xbf16>, vector<20x132xbf16>, vector<4x132xf32> -> vector<4x132xf32>
    %c0_9 = arith.constant 0 : index
    %c0_10 = arith.constant 0 : index
    %20 = vector.load %arg5[%c0_9, %c0_10] : memref<4x1xf32, #tpu.memory_space<vmem>>, vector<4x1xf32>
    %21 = vector.broadcast %20 : vector<4x1xf32> to vector<4x132xf32>
    %22 = arith.addf %19, %21 : vector<4x132xf32>
    %c128_i32 = arith.constant 128 : i32
    %23 = arith.muli %arg0, %c128_i32 : i32
    %c2_i32 = arith.constant 2 : i32
    %24 = arith.subi %23, %c2_i32 : i32
    %25 = tpu.iota {dimensions = array<i32: 1>} : vector<1x132xi32>
    %26 = vector.broadcast %24 : i32 to vector<1x132xi32>
    %27 = arith.addi %26, %25 : vector<1x132xi32>
    %c0_i32 = arith.constant 0 : i32
    %28 = vector.broadcast %c0_i32 : i32 to vector<1x132xi32>
    %29 = arith.cmpi sge, %27, %28 : vector<1x132xi32>
    %c32_i32 = arith.constant 32 : i32
    %30 = vector.broadcast %c32_i32 : i32 to vector<1x132xi32>
    %31 = arith.cmpi slt, %27, %30 : vector<1x132xi32>
    %32 = arith.andi %29, %31 : vector<1x132xi1>
    %cst_11 = arith.constant 0.000000e+00 : f32
    %33 = vector.shape_cast %32 : vector<1x132xi1> to vector<1x132xi1>
    %34 = vector.broadcast %33 : vector<1x132xi1> to vector<4x132xi1>
    %35 = vector.broadcast %cst_11 : f32 to vector<4x132xf32>
    %36 = arith.select %34, %22, %35 : vector<4x132xi1>, vector<4x132xf32>
    %cst_12 = arith.constant 0.000000e+00 : f32
    %37 = vector.broadcast %cst_12 : f32 to vector<4x132xf32>
    %38 = arith.cmpf oge, %36, %37 : vector<4x132xf32>
    %cst_13 = arith.constant 1.000000e-01 : f32
    %39 = vector.broadcast %cst_13 : f32 to vector<4x132xf32>
    %40 = arith.mulf %39, %36 : vector<4x132xf32>
    %41 = arith.select %38, %36, %40 : vector<4x132xi1>, vector<4x132xf32>
    %42 = arith.truncf %41 : vector<4x132xf32> to vector<4x132xbf16>
    %43 = vector.extract_strided_slice %42 {offsets = [0, 0], sizes = [4, 128], strides = [1, 1]} : vector<4x132xbf16> to vector<4x128xbf16>
    %44 = vector.extract_strided_slice %42 {offsets = [0, 1], sizes = [4, 128], strides = [1, 1]} : vector<4x132xbf16> to vector<4x128xbf16>
    %45 = vector.extract_strided_slice %42 {offsets = [0, 2], sizes = [4, 128], strides = [1, 1]} : vector<4x132xbf16> to vector<4x128xbf16>
    %46 = vector.extract_strided_slice %42 {offsets = [0, 3], sizes = [4, 128], strides = [1, 1]} : vector<4x132xbf16> to vector<4x128xbf16>
    %47 = vector.extract_strided_slice %42 {offsets = [0, 4], sizes = [4, 128], strides = [1, 1]} : vector<4x132xbf16> to vector<4x128xbf16>
    %48 = tpu.concatenate %43, %44, %45, %46, %47 in 0 : vector<4x128xbf16>, vector<4x128xbf16>, vector<4x128xbf16>, vector<4x128xbf16>, vector<4x128xbf16> -> vector<20x128xbf16>
    %c0_14 = arith.constant 0 : index
    %c0_15 = arith.constant 0 : index
    %49 = vector.load %arg6[%c0_14, %c0_15] : memref<4x20xbf16, #tpu.memory_space<vmem>>, vector<4x20xbf16>
    %cst_16 = arith.constant dense<0.000000e+00> : vector<4x128xf32>
    %50 = tpu.matmul %49, %48, %cst_16 {dimension_numbers = #tpu.dot_dimension_numbers<[1], [0], [0], [1], [0, 0, 1, 1], [], []>} : vector<4x20xbf16>, vector<20x128xbf16>, vector<4x128xf32> -> vector<4x128xf32>
    %c0_17 = arith.constant 0 : index
    %c0_18 = arith.constant 0 : index
    %51 = vector.load %arg7[%c0_17, %c0_18] : memref<4x1xf32, #tpu.memory_space<vmem>>, vector<4x1xf32>
    %52 = vector.broadcast %51 : vector<4x1xf32> to vector<4x128xf32>
    %53 = arith.addf %50, %52 : vector<4x128xf32>
    %54 = vector.extract_strided_slice %5 {offsets = [0, 4], sizes = [4, 128], strides = [1, 1]} : vector<4x256xf32> to vector<4x128xf32>
    %55 = arith.addf %53, %54 : vector<4x128xf32>
    %56 = arith.truncf %55 : vector<4x128xf32> to vector<4x128xbf16>
    %c0_19 = arith.constant 0 : index
    %c0_20 = arith.constant 0 : index
    %c0_21 = arith.constant 0 : index
    %57 = vector.load %arg8[%c0_19, %c0_20, %c0_21] : memref<1x4x128xbf16, #tpu.memory_space<vmem>>, vector<1x4x128xbf16>
    %58 = vector.shape_cast %57 : vector<1x4x128xbf16> to vector<4x128xbf16>
    %59 = vector.shape_cast %56 : vector<4x128xbf16> to vector<1x4x128xbf16>
    tpu.vector_store %arg8[%c0_19, %c0_20, %c0_21], %59 {strides = array<i32>} : memref<1x4x128xbf16, #tpu.memory_space<vmem>>, vector<1x4x128xbf16>,
    return
  }
  func.func @transform_0(%arg0: i32, %arg1: i32) -> (i32, i32, i32) {
    %c0_i32 = arith.constant 0 : i32
    %c0_i32_0 = arith.constant 0 : i32
    return %arg1, %c0_i32, %arg0 : i32, i32, i32
  }
  func.func @transform_1(%arg0: i32, %arg1: i32) -> (i32, i32, i32) {
    %c1_i32 = arith.constant 1 : i32
    %0 = arith.addi %arg0, %c1_i32 : i32
    %c1_i32_0 = arith.constant 1 : i32
    %1 = arith.muli %0, %c1_i32_0 : i32
    %c0_i32 = arith.constant 0 : i32
    %c0_i32_1 = arith.constant 0 : i32
    return %arg1, %c0_i32, %1 : i32, i32, i32
  }
  func.func @transform_2(%arg0: i32, %arg1: i32) -> (i32, i32) {
    %c0_i32 = arith.constant 0 : i32
    %c0_i32_0 = arith.constant 0 : i32
    %c0_i32_1 = arith.constant 0 : i32
    return %c0_i32, %c0_i32_0 : i32, i32
  }
  func.func @transform_3(%arg0: i32, %arg1: i32) -> (i32, i32) {
    %c0_i32 = arith.constant 0 : i32
    %c0_i32_0 = arith.constant 0 : i32
    %c0_i32_1 = arith.constant 0 : i32
    return %c0_i32, %c0_i32_0 : i32, i32
  }
  func.func @transform_4(%arg0: i32, %arg1: i32) -> (i32, i32) {
    %c0_i32 = arith.constant 0 : i32
    %c0_i32_0 = arith.constant 0 : i32
    %c0_i32_1 = arith.constant 0 : i32
    return %c0_i32, %c0_i32_0 : i32, i32
  }
  func.func @transform_5(%arg0: i32, %arg1: i32) -> (i32, i32) {
    %c0_i32 = arith.constant 0 : i32
    %c0_i32_0 = arith.constant 0 : i32
    %c0_i32_1 = arith.constant 0 : i32
    return %c0_i32, %c0_i32_0 : i32, i32
  }
  func.func @transform_6(%arg0: i32, %arg1: i32) -> (i32, i32, i32) {
    %c0_i32 = arith.constant 0 : i32
    %c0_i32_0 = arith.constant 0 : i32
    return %arg1, %c0_i32, %arg0 : i32, i32, i32
  }
}

module attributes {stable_mosaic.version = 11 : i64} {
  func.func @_mrf_layer_kernel(%arg0: i32, %arg1: i32, %arg2: memref<1x4x128xbf16, #tpu.memory_space<vmem>>, %arg3: memref<1x4x128xbf16, #tpu.memory_space<vmem>>, %arg4: memref<4x20xbf16, #tpu.memory_space<vmem>>, %arg5: memref<4x1xf32, #tpu.memory_space<vmem>>, %arg6: memref<4x20xbf16, #tpu.memory_space<vmem>>, %arg7: memref<4x1xf32, #tpu.memory_space<vmem>>, %arg8: memref<1x4x128xbf16, #tpu.memory_space<vmem>>) attributes {dimension_semantics = [#tpu.dimension_semantics<parallel>, #tpu.dimension_semantics<parallel>], iteration_bounds = array<i64: 1, 2>, scalar_prefetch = 0 : i64, scratch_operands = 0 : i64, tpu.core_type = #tpu.core_type<tc>, window_params = [{transform_indices = @transform_0, window_bounds = array<i64: 1, 4, 128>}, {transform_indices = @transform_1, window_bounds = array<i64: 1, 4, 128>}, {pipeline_mode = #tpu.pipeline_mode<synchronous>, transform_indices = @transform_2, window_bounds = array<i64: 4, 20>}, {pipeline_mode = #tpu.pipeline_mode<synchronous>, transform_indices = @transform_3, window_bounds = array<i64: 4, 1>}, {pipeline_mode = #tpu.pipeline_mode<synchronous>, transform_indices = @transform_4, window_bounds = array<i64: 4, 20>}, {pipeline_mode = #tpu.pipeline_mode<synchronous>, transform_indices = @transform_5, window_bounds = array<i64: 4, 1>}, {transform_indices = @transform_6, window_bounds = array<i64: 1, 4, 128>}]} {
    %c0 = arith.constant 0 : index
    %c0_0 = arith.constant 0 : index
    %c0_1 = arith.constant 0 : index
    %0 = vector.load %arg2[%c0, %c0_0, %c0_1] : memref<1x4x128xbf16, #tpu.memory_space<vmem>>, vector<1x4x128xbf16>
    %1 = vector.shape_cast %0 : vector<1x4x128xbf16> to vector<4x128xbf16>
    %c0_2 = arith.constant 0 : index
    %c0_3 = arith.constant 0 : index
    %c0_4 = arith.constant 0 : index
    %2 = vector.load %arg3[%c0_2, %c0_3, %c0_4] : memref<1x4x128xbf16, #tpu.memory_space<vmem>>, vector<1x4x128xbf16>
    %3 = vector.shape_cast %2 : vector<1x4x128xbf16> to vector<4x128xbf16>
    %4 = tpu.concatenate %1, %3 in 1 : vector<4x128xbf16>, vector<4x128xbf16> -> vector<4x256xbf16>
    %5 = arith.extf %4 : vector<4x256xbf16> to vector<4x256xf32>
    %cst = arith.constant 0.000000e+00 : f32
    %6 = vector.broadcast %cst : f32 to vector<4x256xf32>
    %7 = arith.cmpf oge, %5, %6 : vector<4x256xf32>
    %cst_5 = arith.constant 1.000000e-01 : f32
    %8 = vector.broadcast %cst_5 : f32 to vector<4x256xf32>
    %9 = arith.mulf %8, %5 : vector<4x256xf32>
    %10 = arith.select %7, %5, %9 : vector<4x256xi1>, vector<4x256xf32>
    %11 = arith.truncf %10 : vector<4x256xf32> to vector<4x256xbf16>
    %12 = vector.extract_strided_slice %11 {offsets = [0, 0], sizes = [4, 132], strides = [1, 1]} : vector<4x256xbf16> to vector<4x132xbf16>
    %13 = vector.extract_strided_slice %11 {offsets = [0, 3], sizes = [4, 132], strides = [1, 1]} : vector<4x256xbf16> to vector<4x132xbf16>
    %14 = vector.extract_strided_slice %11 {offsets = [0, 6], sizes = [4, 132], strides = [1, 1]} : vector<4x256xbf16> to vector<4x132xbf16>
    %15 = vector.extract_strided_slice %11 {offsets = [0, 9], sizes = [4, 132], strides = [1, 1]} : vector<4x256xbf16> to vector<4x132xbf16>
    %16 = vector.extract_strided_slice %11 {offsets = [0, 12], sizes = [4, 132], strides = [1, 1]} : vector<4x256xbf16> to vector<4x132xbf16>
    %17 = tpu.concatenate %12, %13, %14, %15, %16 in 0 : vector<4x132xbf16>, vector<4x132xbf16>, vector<4x132xbf16>, vector<4x132xbf16>, vector<4x132xbf16> -> vector<20x132xbf16>
    %c0_6 = arith.constant 0 : index
    %c0_7 = arith.constant 0 : index
    %18 = vector.load %arg4[%c0_6, %c0_7] : memref<4x20xbf16, #tpu.memory_space<vmem>>, vector<4x20xbf16>
    %cst_8 = arith.constant dense<0.000000e+00> : vector<4x132xf32>
    %19 = tpu.matmul %18, %17, %cst_8 {dimension_numbers = #tpu.dot_dimension_numbers<[1], [0], [0], [1], [0, 0, 1, 1], [], []>} : vector<4x20xbf16>, vector<20x132xbf16>, vector<4x132xf32> -> vector<4x132xf32>
    %c0_9 = arith.constant 0 : index
    %c0_10 = arith.constant 0 : index
    %20 = vector.load %arg5[%c0_9, %c0_10] : memref<4x1xf32, #tpu.memory_space<vmem>>, vector<4x1xf32>
    %21 = vector.broadcast %20 : vector<4x1xf32> to vector<4x132xf32>
    %22 = arith.addf %19, %21 : vector<4x132xf32>
    %c128_i32 = arith.constant 128 : i32
    %23 = arith.muli %arg0, %c128_i32 : i32
    %c2_i32 = arith.constant 2 : i32
    %24 = arith.subi %23, %c2_i32 : i32
    %25 = tpu.iota {dimensions = array<i32: 1>} : vector<1x132xi32>
    %26 = vector.broadcast %24 : i32 to vector<1x132xi32>
    %27 = arith.addi %26, %25 : vector<1x132xi32>
    %c0_i32 = arith.constant 0 : i32
    %28 = vector.broadcast %c0_i32 : i32 to vector<1x132xi32>
    %29 = arith.cmpi sge, %27, %28 : vector<1x132xi32>
    %c32_i32 = arith.constant 32 : i32
    %30 = vector.broadcast %c32_i32 : i32 to vector<1x132xi32>
    %31 = arith.cmpi slt, %27, %30 : vector<1x132xi32>
    %32 = arith.andi %29, %31 : vector<1x132xi1>
    %cst_11 = arith.constant 0.000000e+00 : f32
    %33 = vector.shape_cast %32 : vector<1x132xi1> to vector<1x132xi1>
    %34 = vector.broadcast %33 : vector<1x132xi1> to vector<4x132xi1>
    %35 = vector.broadcast %cst_11 : f32 to vector<4x132xf32>
    %36 = arith.select %34, %22, %35 : vector<4x132xi1>, vector<4x132xf32>
    %cst_12 = arith.constant 0.000000e+00 : f32
    %37 = vector.broadcast %cst_12 : f32 to vector<4x132xf32>
    %38 = arith.cmpf oge, %36, %37 : vector<4x132xf32>
    %cst_13 = arith.constant 1.000000e-01 : f32
    %39 = vector.broadcast %cst_13 : f32 to vector<4x132xf32>
    %40 = arith.mulf %39, %36 : vector<4x132xf32>
    %41 = arith.select %38, %36, %40 : vector<4x132xi1>, vector<4x132xf32>
    %42 = arith.truncf %41 : vector<4x132xf32> to vector<4x132xbf16>
    %43 = vector.extract_strided_slice %42 {offsets = [0, 0], sizes = [4, 128], strides = [1, 1]} : vector<4x132xbf16> to vector<4x128xbf16>
    %44 = vector.extract_strided_slice %42 {offsets = [0, 1], sizes = [4, 128], strides = [1, 1]} : vector<4x132xbf16> to vector<4x128xbf16>
    %45 = vector.extract_strided_slice %42 {offsets = [0, 2], sizes = [4, 128], strides = [1, 1]} : vector<4x132xbf16> to vector<4x128xbf16>
    %46 = vector.extract_strided_slice %42 {offsets = [0, 3], sizes = [4, 128], strides = [1, 1]} : vector<4x132xbf16> to vector<4x128xbf16>
    %47 = vector.extract_strided_slice %42 {offsets = [0, 4], sizes = [4, 128], strides = [1, 1]} : vector<4x132xbf16> to vector<4x128xbf16>
    %48 = tpu.concatenate %43, %44, %45, %46, %47 in 0 : vector<4x128xbf16>, vector<4x128xbf16>, vector<4x128xbf16>, vector<4x128xbf16>, vector<4x128xbf16> -> vector<20x128xbf16>
    %c0_14 = arith.constant 0 : index
    %c0_15 = arith.constant 0 : index
    %49 = vector.load %arg6[%c0_14, %c0_15] : memref<4x20xbf16, #tpu.memory_space<vmem>>, vector<4x20xbf16>
    %cst_16 = arith.constant dense<0.000000e+00> : vector<4x128xf32>
    %50 = tpu.matmul %49, %48, %cst_16 {dimension_numbers = #tpu.dot_dimension_numbers<[1], [0], [0], [1], [0, 0, 1, 1], [], []>} : vector<4x20xbf16>, vector<20x128xbf16>, vector<4x128xf32> -> vector<4x128xf32>
    %c0_17 = arith.constant 0 : index
    %c0_18 = arith.constant 0 : index
    %51 = vector.load %arg7[%c0_17, %c0_18] : memref<4x1xf32, #tpu.memory_space<vmem>>, vector<4x1xf32>
    %52 = vector.broadcast %51 : vector<4x1xf32> to vector<4x128xf32>
    %53 = arith.addf %50, %52 : vector<4x128xf32>
    %54 = vector.extract_strided_slice %5 {offsets = [0, 8], sizes = [4, 128], strides = [1, 1]} : vector<4x256xf32> to vector<4x128xf32>
    %55 = arith.addf %53, %54 : vector<4x128xf32>
    %56 = arith.truncf %55 : vector<4x128xf32> to vector<4x128xbf16>
    %c0_19 = arith.constant 0 : index
    %c0_20 = arith.constant 0 : index
    %c0_21 = arith.constant 0 : index
    %57 = vector.load %arg8[%c0_19, %c0_20, %c0_21] : memref<1x4x128xbf16, #tpu.memory_space<vmem>>, vector<1x4x128xbf16>
    %58 = vector.shape_cast %57 : vector<1x4x128xbf16> to vector<4x128xbf16>
    %59 = vector.shape_cast %56 : vector<4x128xbf16> to vector<1x4x128xbf16>
    tpu.vector_store %arg8[%c0_19, %c0_20, %c0_21], %59 {strides = array<i32>} : memref<1x4x128xbf16, #tpu.memory_space<vmem>>, vector<1x4x128xbf16>,
    return
  }
  func.func @transform_0(%arg0: i32, %arg1: i32) -> (i32, i32, i32) {
    %c0_i32 = arith.constant 0 : i32
    %c0_i32_0 = arith.constant 0 : i32
    return %arg1, %c0_i32, %arg0 : i32, i32, i32
  }
  func.func @transform_1(%arg0: i32, %arg1: i32) -> (i32, i32, i32) {
    %c1_i32 = arith.constant 1 : i32
    %0 = arith.addi %arg0, %c1_i32 : i32
    %c1_i32_0 = arith.constant 1 : i32
    %1 = arith.muli %0, %c1_i32_0 : i32
    %c0_i32 = arith.constant 0 : i32
    %c0_i32_1 = arith.constant 0 : i32
    return %arg1, %c0_i32, %1 : i32, i32, i32
  }
  func.func @transform_2(%arg0: i32, %arg1: i32) -> (i32, i32) {
    %c0_i32 = arith.constant 0 : i32
    %c0_i32_0 = arith.constant 0 : i32
    %c0_i32_1 = arith.constant 0 : i32
    return %c0_i32, %c0_i32_0 : i32, i32
  }
  func.func @transform_3(%arg0: i32, %arg1: i32) -> (i32, i32) {
    %c0_i32 = arith.constant 0 : i32
    %c0_i32_0 = arith.constant 0 : i32
    %c0_i32_1 = arith.constant 0 : i32
    return %c0_i32, %c0_i32_0 : i32, i32
  }
  func.func @transform_4(%arg0: i32, %arg1: i32) -> (i32, i32) {
    %c0_i32 = arith.constant 0 : i32
    %c0_i32_0 = arith.constant 0 : i32
    %c0_i32_1 = arith.constant 0 : i32
    return %c0_i32, %c0_i32_0 : i32, i32
  }
  func.func @transform_5(%arg0: i32, %arg1: i32) -> (i32, i32) {
    %c0_i32 = arith.constant 0 : i32
    %c0_i32_0 = arith.constant 0 : i32
    %c0_i32_1 = arith.constant 0 : i32
    return %c0_i32, %c0_i32_0 : i32, i32
  }
  func.func @transform_6(%arg0: i32, %arg1: i32) -> (i32, i32, i32) {
    %c0_i32 = arith.constant 0 : i32
    %c0_i32_0 = arith.constant 0 : i32
    return %arg1, %c0_i32, %arg0 : i32, i32, i32
  }
}

module attributes {stable_mosaic.version = 11 : i64} {
  func.func @_mrf_layer_kernel(%arg0: i32, %arg1: i32, %arg2: memref<1x4x128xbf16, #tpu.memory_space<vmem>>, %arg3: memref<1x4x128xbf16, #tpu.memory_space<vmem>>, %arg4: memref<4x12xbf16, #tpu.memory_space<vmem>>, %arg5: memref<4x1xf32, #tpu.memory_space<vmem>>, %arg6: memref<4x12xbf16, #tpu.memory_space<vmem>>, %arg7: memref<4x1xf32, #tpu.memory_space<vmem>>, %arg8: memref<1x4x128xbf16, #tpu.memory_space<vmem>>) attributes {dimension_semantics = [#tpu.dimension_semantics<parallel>, #tpu.dimension_semantics<parallel>], iteration_bounds = array<i64: 1, 2>, scalar_prefetch = 0 : i64, scratch_operands = 0 : i64, tpu.core_type = #tpu.core_type<tc>, window_params = [{transform_indices = @transform_0, window_bounds = array<i64: 1, 4, 128>}, {transform_indices = @transform_1, window_bounds = array<i64: 1, 4, 128>}, {pipeline_mode = #tpu.pipeline_mode<synchronous>, transform_indices = @transform_2, window_bounds = array<i64: 4, 12>}, {pipeline_mode = #tpu.pipeline_mode<synchronous>, transform_indices = @transform_3, window_bounds = array<i64: 4, 1>}, {pipeline_mode = #tpu.pipeline_mode<synchronous>, transform_indices = @transform_4, window_bounds = array<i64: 4, 12>}, {pipeline_mode = #tpu.pipeline_mode<synchronous>, transform_indices = @transform_5, window_bounds = array<i64: 4, 1>}, {transform_indices = @transform_6, window_bounds = array<i64: 1, 4, 128>}]} {
    %c0 = arith.constant 0 : index
    %c0_0 = arith.constant 0 : index
    %c0_1 = arith.constant 0 : index
    %0 = vector.load %arg2[%c0, %c0_0, %c0_1] : memref<1x4x128xbf16, #tpu.memory_space<vmem>>, vector<1x4x128xbf16>
    %1 = vector.shape_cast %0 : vector<1x4x128xbf16> to vector<4x128xbf16>
    %c0_2 = arith.constant 0 : index
    %c0_3 = arith.constant 0 : index
    %c0_4 = arith.constant 0 : index
    %2 = vector.load %arg3[%c0_2, %c0_3, %c0_4] : memref<1x4x128xbf16, #tpu.memory_space<vmem>>, vector<1x4x128xbf16>
    %3 = vector.shape_cast %2 : vector<1x4x128xbf16> to vector<4x128xbf16>
    %4 = tpu.concatenate %1, %3 in 1 : vector<4x128xbf16>, vector<4x128xbf16> -> vector<4x256xbf16>
    %5 = arith.extf %4 : vector<4x256xbf16> to vector<4x256xf32>
    %cst = arith.constant 0.000000e+00 : f32
    %6 = vector.broadcast %cst : f32 to vector<4x256xf32>
    %7 = arith.cmpf oge, %5, %6 : vector<4x256xf32>
    %cst_5 = arith.constant 1.000000e-01 : f32
    %8 = vector.broadcast %cst_5 : f32 to vector<4x256xf32>
    %9 = arith.mulf %8, %5 : vector<4x256xf32>
    %10 = arith.select %7, %5, %9 : vector<4x256xi1>, vector<4x256xf32>
    %11 = arith.truncf %10 : vector<4x256xf32> to vector<4x256xbf16>
    %12 = vector.extract_strided_slice %11 {offsets = [0, 0], sizes = [4, 130], strides = [1, 1]} : vector<4x256xbf16> to vector<4x130xbf16>
    %13 = vector.extract_strided_slice %11 {offsets = [0, 1], sizes = [4, 130], strides = [1, 1]} : vector<4x256xbf16> to vector<4x130xbf16>
    %14 = vector.extract_strided_slice %11 {offsets = [0, 2], sizes = [4, 130], strides = [1, 1]} : vector<4x256xbf16> to vector<4x130xbf16>
    %15 = tpu.concatenate %12, %13, %14 in 0 : vector<4x130xbf16>, vector<4x130xbf16>, vector<4x130xbf16> -> vector<12x130xbf16>
    %c0_6 = arith.constant 0 : index
    %c0_7 = arith.constant 0 : index
    %16 = vector.load %arg4[%c0_6, %c0_7] : memref<4x12xbf16, #tpu.memory_space<vmem>>, vector<4x12xbf16>
    %cst_8 = arith.constant dense<0.000000e+00> : vector<4x130xf32>
    %17 = tpu.matmul %16, %15, %cst_8 {dimension_numbers = #tpu.dot_dimension_numbers<[1], [0], [0], [1], [0, 0, 1, 1], [], []>} : vector<4x12xbf16>, vector<12x130xbf16>, vector<4x130xf32> -> vector<4x130xf32>
    %c0_9 = arith.constant 0 : index
    %c0_10 = arith.constant 0 : index
    %18 = vector.load %arg5[%c0_9, %c0_10] : memref<4x1xf32, #tpu.memory_space<vmem>>, vector<4x1xf32>
    %19 = vector.broadcast %18 : vector<4x1xf32> to vector<4x130xf32>
    %20 = arith.addf %17, %19 : vector<4x130xf32>
    %c128_i32 = arith.constant 128 : i32
    %21 = arith.muli %arg0, %c128_i32 : i32
    %c1_i32 = arith.constant 1 : i32
    %22 = arith.subi %21, %c1_i32 : i32
    %23 = tpu.iota {dimensions = array<i32: 1>} : vector<1x130xi32>
    %24 = vector.broadcast %22 : i32 to vector<1x130xi32>
    %25 = arith.addi %24, %23 : vector<1x130xi32>
    %c0_i32 = arith.constant 0 : i32
    %26 = vector.broadcast %c0_i32 : i32 to vector<1x130xi32>
    %27 = arith.cmpi sge, %25, %26 : vector<1x130xi32>
    %c32_i32 = arith.constant 32 : i32
    %28 = vector.broadcast %c32_i32 : i32 to vector<1x130xi32>
    %29 = arith.cmpi slt, %25, %28 : vector<1x130xi32>
    %30 = arith.andi %27, %29 : vector<1x130xi1>
    %cst_11 = arith.constant 0.000000e+00 : f32
    %31 = vector.shape_cast %30 : vector<1x130xi1> to vector<1x130xi1>
    %32 = vector.broadcast %31 : vector<1x130xi1> to vector<4x130xi1>
    %33 = vector.broadcast %cst_11 : f32 to vector<4x130xf32>
    %34 = arith.select %32, %20, %33 : vector<4x130xi1>, vector<4x130xf32>
    %cst_12 = arith.constant 0.000000e+00 : f32
    %35 = vector.broadcast %cst_12 : f32 to vector<4x130xf32>
    %36 = arith.cmpf oge, %34, %35 : vector<4x130xf32>
    %cst_13 = arith.constant 1.000000e-01 : f32
    %37 = vector.broadcast %cst_13 : f32 to vector<4x130xf32>
    %38 = arith.mulf %37, %34 : vector<4x130xf32>
    %39 = arith.select %36, %34, %38 : vector<4x130xi1>, vector<4x130xf32>
    %40 = arith.truncf %39 : vector<4x130xf32> to vector<4x130xbf16>
    %41 = vector.extract_strided_slice %40 {offsets = [0, 0], sizes = [4, 128], strides = [1, 1]} : vector<4x130xbf16> to vector<4x128xbf16>
    %42 = vector.extract_strided_slice %40 {offsets = [0, 1], sizes = [4, 128], strides = [1, 1]} : vector<4x130xbf16> to vector<4x128xbf16>
    %43 = vector.extract_strided_slice %40 {offsets = [0, 2], sizes = [4, 128], strides = [1, 1]} : vector<4x130xbf16> to vector<4x128xbf16>
    %44 = tpu.concatenate %41, %42, %43 in 0 : vector<4x128xbf16>, vector<4x128xbf16>, vector<4x128xbf16> -> vector<12x128xbf16>
    %c0_14 = arith.constant 0 : index
    %c0_15 = arith.constant 0 : index
    %45 = vector.load %arg6[%c0_14, %c0_15] : memref<4x12xbf16, #tpu.memory_space<vmem>>, vector<4x12xbf16>
    %cst_16 = arith.constant dense<0.000000e+00> : vector<4x128xf32>
    %46 = tpu.matmul %45, %44, %cst_16 {dimension_numbers = #tpu.dot_dimension_numbers<[1], [0], [0], [1], [0, 0, 1, 1], [], []>} : vector<4x12xbf16>, vector<12x128xbf16>, vector<4x128xf32> -> vector<4x128xf32>
    %c0_17 = arith.constant 0 : index
    %c0_18 = arith.constant 0 : index
    %47 = vector.load %arg7[%c0_17, %c0_18] : memref<4x1xf32, #tpu.memory_space<vmem>>, vector<4x1xf32>
    %48 = vector.broadcast %47 : vector<4x1xf32> to vector<4x128xf32>
    %49 = arith.addf %46, %48 : vector<4x128xf32>
    %50 = vector.extract_strided_slice %5 {offsets = [0, 2], sizes = [4, 128], strides = [1, 1]} : vector<4x256xf32> to vector<4x128xf32>
    %51 = arith.addf %49, %50 : vector<4x128xf32>
    %52 = arith.truncf %51 : vector<4x128xf32> to vector<4x128xbf16>
    %c0_19 = arith.constant 0 : index
    %c0_20 = arith.constant 0 : index
    %c0_21 = arith.constant 0 : index
    %53 = vector.load %arg8[%c0_19, %c0_20, %c0_21] : memref<1x4x128xbf16, #tpu.memory_space<vmem>>, vector<1x4x128xbf16>
    %54 = vector.shape_cast %53 : vector<1x4x128xbf16> to vector<4x128xbf16>
    %55 = vector.shape_cast %52 : vector<4x128xbf16> to vector<1x4x128xbf16>
    tpu.vector_store %arg8[%c0_19, %c0_20, %c0_21], %55 {strides = array<i32>} : memref<1x4x128xbf16, #tpu.memory_space<vmem>>, vector<1x4x128xbf16>,
    return
  }
  func.func @transform_0(%arg0: i32, %arg1: i32) -> (i32, i32, i32) {
    %c0_i32 = arith.constant 0 : i32
    %c0_i32_0 = arith.constant 0 : i32
    return %arg1, %c0_i32, %arg0 : i32, i32, i32
  }
  func.func @transform_1(%arg0: i32, %arg1: i32) -> (i32, i32, i32) {
    %c1_i32 = arith.constant 1 : i32
    %0 = arith.addi %arg0, %c1_i32 : i32
    %c1_i32_0 = arith.constant 1 : i32
    %1 = arith.muli %0, %c1_i32_0 : i32
    %c0_i32 = arith.constant 0 : i32
    %c0_i32_1 = arith.constant 0 : i32
    return %arg1, %c0_i32, %1 : i32, i32, i32
  }
  func.func @transform_2(%arg0: i32, %arg1: i32) -> (i32, i32) {
    %c0_i32 = arith.constant 0 : i32
    %c0_i32_0 = arith.constant 0 : i32
    %c0_i32_1 = arith.constant 0 : i32
    return %c0_i32, %c0_i32_0 : i32, i32
  }
  func.func @transform_3(%arg0: i32, %arg1: i32) -> (i32, i32) {
    %c0_i32 = arith.constant 0 : i32
    %c0_i32_0 = arith.constant 0 : i32
    %c0_i32_1 = arith.constant 0 : i32
    return %c0_i32, %c0_i32_0 : i32, i32
  }
  func.func @transform_4(%arg0: i32, %arg1: i32) -> (i32, i32) {
    %c0_i32 = arith.constant 0 : i32
    %c0_i32_0 = arith.constant 0 : i32
    %c0_i32_1 = arith.constant 0 : i32
    return %c0_i32, %c0_i32_0 : i32, i32
  }
  func.func @transform_5(%arg0: i32, %arg1: i32) -> (i32, i32) {
    %c0_i32 = arith.constant 0 : i32
    %c0_i32_0 = arith.constant 0 : i32
    %c0_i32_1 = arith.constant 0 : i32
    return %c0_i32, %c0_i32_0 : i32, i32
  }
  func.func @transform_6(%arg0: i32, %arg1: i32) -> (i32, i32, i32) {
    %c0_i32 = arith.constant 0 : i32
    %c0_i32_0 = arith.constant 0 : i32
    return %arg1, %c0_i32, %arg0 : i32, i32, i32
  }
}

module attributes {stable_mosaic.version = 11 : i64} {
  func.func @_mrf_layer_kernel(%arg0: i32, %arg1: i32, %arg2: memref<1x4x128xbf16, #tpu.memory_space<vmem>>, %arg3: memref<1x4x128xbf16, #tpu.memory_space<vmem>>, %arg4: memref<4x12xbf16, #tpu.memory_space<vmem>>, %arg5: memref<4x1xf32, #tpu.memory_space<vmem>>, %arg6: memref<4x12xbf16, #tpu.memory_space<vmem>>, %arg7: memref<4x1xf32, #tpu.memory_space<vmem>>, %arg8: memref<1x4x128xbf16, #tpu.memory_space<vmem>>) attributes {dimension_semantics = [#tpu.dimension_semantics<parallel>, #tpu.dimension_semantics<parallel>], iteration_bounds = array<i64: 1, 2>, scalar_prefetch = 0 : i64, scratch_operands = 0 : i64, tpu.core_type = #tpu.core_type<tc>, window_params = [{transform_indices = @transform_0, window_bounds = array<i64: 1, 4, 128>}, {transform_indices = @transform_1, window_bounds = array<i64: 1, 4, 128>}, {pipeline_mode = #tpu.pipeline_mode<synchronous>, transform_indices = @transform_2, window_bounds = array<i64: 4, 12>}, {pipeline_mode = #tpu.pipeline_mode<synchronous>, transform_indices = @transform_3, window_bounds = array<i64: 4, 1>}, {pipeline_mode = #tpu.pipeline_mode<synchronous>, transform_indices = @transform_4, window_bounds = array<i64: 4, 12>}, {pipeline_mode = #tpu.pipeline_mode<synchronous>, transform_indices = @transform_5, window_bounds = array<i64: 4, 1>}, {transform_indices = @transform_6, window_bounds = array<i64: 1, 4, 128>}]} {
    %c0 = arith.constant 0 : index
    %c0_0 = arith.constant 0 : index
    %c0_1 = arith.constant 0 : index
    %0 = vector.load %arg2[%c0, %c0_0, %c0_1] : memref<1x4x128xbf16, #tpu.memory_space<vmem>>, vector<1x4x128xbf16>
    %1 = vector.shape_cast %0 : vector<1x4x128xbf16> to vector<4x128xbf16>
    %c0_2 = arith.constant 0 : index
    %c0_3 = arith.constant 0 : index
    %c0_4 = arith.constant 0 : index
    %2 = vector.load %arg3[%c0_2, %c0_3, %c0_4] : memref<1x4x128xbf16, #tpu.memory_space<vmem>>, vector<1x4x128xbf16>
    %3 = vector.shape_cast %2 : vector<1x4x128xbf16> to vector<4x128xbf16>
    %4 = tpu.concatenate %1, %3 in 1 : vector<4x128xbf16>, vector<4x128xbf16> -> vector<4x256xbf16>
    %5 = arith.extf %4 : vector<4x256xbf16> to vector<4x256xf32>
    %cst = arith.constant 0.000000e+00 : f32
    %6 = vector.broadcast %cst : f32 to vector<4x256xf32>
    %7 = arith.cmpf oge, %5, %6 : vector<4x256xf32>
    %cst_5 = arith.constant 1.000000e-01 : f32
    %8 = vector.broadcast %cst_5 : f32 to vector<4x256xf32>
    %9 = arith.mulf %8, %5 : vector<4x256xf32>
    %10 = arith.select %7, %5, %9 : vector<4x256xi1>, vector<4x256xf32>
    %11 = arith.truncf %10 : vector<4x256xf32> to vector<4x256xbf16>
    %12 = vector.extract_strided_slice %11 {offsets = [0, 0], sizes = [4, 130], strides = [1, 1]} : vector<4x256xbf16> to vector<4x130xbf16>
    %13 = vector.extract_strided_slice %11 {offsets = [0, 3], sizes = [4, 130], strides = [1, 1]} : vector<4x256xbf16> to vector<4x130xbf16>
    %14 = vector.extract_strided_slice %11 {offsets = [0, 6], sizes = [4, 130], strides = [1, 1]} : vector<4x256xbf16> to vector<4x130xbf16>
    %15 = tpu.concatenate %12, %13, %14 in 0 : vector<4x130xbf16>, vector<4x130xbf16>, vector<4x130xbf16> -> vector<12x130xbf16>
    %c0_6 = arith.constant 0 : index
    %c0_7 = arith.constant 0 : index
    %16 = vector.load %arg4[%c0_6, %c0_7] : memref<4x12xbf16, #tpu.memory_space<vmem>>, vector<4x12xbf16>
    %cst_8 = arith.constant dense<0.000000e+00> : vector<4x130xf32>
    %17 = tpu.matmul %16, %15, %cst_8 {dimension_numbers = #tpu.dot_dimension_numbers<[1], [0], [0], [1], [0, 0, 1, 1], [], []>} : vector<4x12xbf16>, vector<12x130xbf16>, vector<4x130xf32> -> vector<4x130xf32>
    %c0_9 = arith.constant 0 : index
    %c0_10 = arith.constant 0 : index
    %18 = vector.load %arg5[%c0_9, %c0_10] : memref<4x1xf32, #tpu.memory_space<vmem>>, vector<4x1xf32>
    %19 = vector.broadcast %18 : vector<4x1xf32> to vector<4x130xf32>
    %20 = arith.addf %17, %19 : vector<4x130xf32>
    %c128_i32 = arith.constant 128 : i32
    %21 = arith.muli %arg0, %c128_i32 : i32
    %c1_i32 = arith.constant 1 : i32
    %22 = arith.subi %21, %c1_i32 : i32
    %23 = tpu.iota {dimensions = array<i32: 1>} : vector<1x130xi32>
    %24 = vector.broadcast %22 : i32 to vector<1x130xi32>
    %25 = arith.addi %24, %23 : vector<1x130xi32>
    %c0_i32 = arith.constant 0 : i32
    %26 = vector.broadcast %c0_i32 : i32 to vector<1x130xi32>
    %27 = arith.cmpi sge, %25, %26 : vector<1x130xi32>
    %c32_i32 = arith.constant 32 : i32
    %28 = vector.broadcast %c32_i32 : i32 to vector<1x130xi32>
    %29 = arith.cmpi slt, %25, %28 : vector<1x130xi32>
    %30 = arith.andi %27, %29 : vector<1x130xi1>
    %cst_11 = arith.constant 0.000000e+00 : f32
    %31 = vector.shape_cast %30 : vector<1x130xi1> to vector<1x130xi1>
    %32 = vector.broadcast %31 : vector<1x130xi1> to vector<4x130xi1>
    %33 = vector.broadcast %cst_11 : f32 to vector<4x130xf32>
    %34 = arith.select %32, %20, %33 : vector<4x130xi1>, vector<4x130xf32>
    %cst_12 = arith.constant 0.000000e+00 : f32
    %35 = vector.broadcast %cst_12 : f32 to vector<4x130xf32>
    %36 = arith.cmpf oge, %34, %35 : vector<4x130xf32>
    %cst_13 = arith.constant 1.000000e-01 : f32
    %37 = vector.broadcast %cst_13 : f32 to vector<4x130xf32>
    %38 = arith.mulf %37, %34 : vector<4x130xf32>
    %39 = arith.select %36, %34, %38 : vector<4x130xi1>, vector<4x130xf32>
    %40 = arith.truncf %39 : vector<4x130xf32> to vector<4x130xbf16>
    %41 = vector.extract_strided_slice %40 {offsets = [0, 0], sizes = [4, 128], strides = [1, 1]} : vector<4x130xbf16> to vector<4x128xbf16>
    %42 = vector.extract_strided_slice %40 {offsets = [0, 1], sizes = [4, 128], strides = [1, 1]} : vector<4x130xbf16> to vector<4x128xbf16>
    %43 = vector.extract_strided_slice %40 {offsets = [0, 2], sizes = [4, 128], strides = [1, 1]} : vector<4x130xbf16> to vector<4x128xbf16>
    %44 = tpu.concatenate %41, %42, %43 in 0 : vector<4x128xbf16>, vector<4x128xbf16>, vector<4x128xbf16> -> vector<12x128xbf16>
    %c0_14 = arith.constant 0 : index
    %c0_15 = arith.constant 0 : index
    %45 = vector.load %arg6[%c0_14, %c0_15] : memref<4x12xbf16, #tpu.memory_space<vmem>>, vector<4x12xbf16>
    %cst_16 = arith.constant dense<0.000000e+00> : vector<4x128xf32>
    %46 = tpu.matmul %45, %44, %cst_16 {dimension_numbers = #tpu.dot_dimension_numbers<[1], [0], [0], [1], [0, 0, 1, 1], [], []>} : vector<4x12xbf16>, vector<12x128xbf16>, vector<4x128xf32> -> vector<4x128xf32>
    %c0_17 = arith.constant 0 : index
    %c0_18 = arith.constant 0 : index
    %47 = vector.load %arg7[%c0_17, %c0_18] : memref<4x1xf32, #tpu.memory_space<vmem>>, vector<4x1xf32>
    %48 = vector.broadcast %47 : vector<4x1xf32> to vector<4x128xf32>
    %49 = arith.addf %46, %48 : vector<4x128xf32>
    %50 = vector.extract_strided_slice %5 {offsets = [0, 4], sizes = [4, 128], strides = [1, 1]} : vector<4x256xf32> to vector<4x128xf32>
    %51 = arith.addf %49, %50 : vector<4x128xf32>
    %52 = arith.truncf %51 : vector<4x128xf32> to vector<4x128xbf16>
    %c0_19 = arith.constant 0 : index
    %c0_20 = arith.constant 0 : index
    %c0_21 = arith.constant 0 : index
    %53 = vector.load %arg8[%c0_19, %c0_20, %c0_21] : memref<1x4x128xbf16, #tpu.memory_space<vmem>>, vector<1x4x128xbf16>
    %54 = vector.shape_cast %53 : vector<1x4x128xbf16> to vector<4x128xbf16>
    %55 = vector.shape_cast %52 : vector<4x128xbf16> to vector<1x4x128xbf16>
    tpu.vector_store %arg8[%c0_19, %c0_20, %c0_21], %55 {strides = array<i32>} : memref<1x4x128xbf16, #tpu.memory_space<vmem>>, vector<1x4x128xbf16>,
    return
  }
  func.func @transform_0(%arg0: i32, %arg1: i32) -> (i32, i32, i32) {
    %c0_i32 = arith.constant 0 : i32
    %c0_i32_0 = arith.constant 0 : i32
    return %arg1, %c0_i32, %arg0 : i32, i32, i32
  }
  func.func @transform_1(%arg0: i32, %arg1: i32) -> (i32, i32, i32) {
    %c1_i32 = arith.constant 1 : i32
    %0 = arith.addi %arg0, %c1_i32 : i32
    %c1_i32_0 = arith.constant 1 : i32
    %1 = arith.muli %0, %c1_i32_0 : i32
    %c0_i32 = arith.constant 0 : i32
    %c0_i32_1 = arith.constant 0 : i32
    return %arg1, %c0_i32, %1 : i32, i32, i32
  }
  func.func @transform_2(%arg0: i32, %arg1: i32) -> (i32, i32) {
    %c0_i32 = arith.constant 0 : i32
    %c0_i32_0 = arith.constant 0 : i32
    %c0_i32_1 = arith.constant 0 : i32
    return %c0_i32, %c0_i32_0 : i32, i32
  }
  func.func @transform_3(%arg0: i32, %arg1: i32) -> (i32, i32) {
    %c0_i32 = arith.constant 0 : i32
    %c0_i32_0 = arith.constant 0 : i32
    %c0_i32_1 = arith.constant 0 : i32
    return %c0_i32, %c0_i32_0 : i32, i32
  }
  func.func @transform_4(%arg0: i32, %arg1: i32) -> (i32, i32) {
    %c0_i32 = arith.constant 0 : i32
    %c0_i32_0 = arith.constant 0 : i32
    %c0_i32_1 = arith.constant 0 : i32
    return %c0_i32, %c0_i32_0 : i32, i32
  }
  func.func @transform_5(%arg0: i32, %arg1: i32) -> (i32, i32) {
    %c0_i32 = arith.constant 0 : i32
    %c0_i32_0 = arith.constant 0 : i32
    %c0_i32_1 = arith.constant 0 : i32
    return %c0_i32, %c0_i32_0 : i32, i32
  }
  func.func @transform_6(%arg0: i32, %arg1: i32) -> (i32, i32, i32) {
    %c0_i32 = arith.constant 0 : i32
    %c0_i32_0 = arith.constant 0 : i32
    return %arg1, %c0_i32, %arg0 : i32, i32, i32
  }
}

module attributes {stable_mosaic.version = 11 : i64} {
  func.func @_conv1d_kernel(%arg0: i32, %arg1: i32, %arg2: memref<1x4x128xbf16, #tpu.memory_space<vmem>>, %arg3: memref<1x4x128xbf16, #tpu.memory_space<vmem>>, %arg4: memref<1x28xbf16, #tpu.memory_space<vmem>>, %arg5: memref<1x1xf32, #tpu.memory_space<vmem>>, %arg6: memref<1x1x128xf32, #tpu.memory_space<vmem>>) attributes {dimension_semantics = [#tpu.dimension_semantics<parallel>, #tpu.dimension_semantics<parallel>], iteration_bounds = array<i64: 1, 2>, scalar_prefetch = 0 : i64, scratch_operands = 0 : i64, tpu.core_type = #tpu.core_type<tc>, window_params = [{transform_indices = @transform_0, window_bounds = array<i64: 1, 4, 128>}, {transform_indices = @transform_1, window_bounds = array<i64: 1, 4, 128>}, {pipeline_mode = #tpu.pipeline_mode<synchronous>, transform_indices = @transform_2, window_bounds = array<i64: 1, 28>}, {pipeline_mode = #tpu.pipeline_mode<synchronous>, transform_indices = @transform_3, window_bounds = array<i64: 1, 1>}, {transform_indices = @transform_4, window_bounds = array<i64: 1, 1, 128>}]} {
    %c0 = arith.constant 0 : index
    %c0_0 = arith.constant 0 : index
    %c0_1 = arith.constant 0 : index
    %0 = vector.load %arg2[%c0, %c0_0, %c0_1] : memref<1x4x128xbf16, #tpu.memory_space<vmem>>, vector<1x4x128xbf16>
    %1 = vector.shape_cast %0 : vector<1x4x128xbf16> to vector<4x128xbf16>
    %c0_2 = arith.constant 0 : index
    %c0_3 = arith.constant 0 : index
    %c0_4 = arith.constant 0 : index
    %2 = vector.load %arg3[%c0_2, %c0_3, %c0_4] : memref<1x4x128xbf16, #tpu.memory_space<vmem>>, vector<1x4x128xbf16>
    %3 = vector.shape_cast %2 : vector<1x4x128xbf16> to vector<4x128xbf16>
    %4 = tpu.concatenate %1, %3 in 1 : vector<4x128xbf16>, vector<4x128xbf16> -> vector<4x256xbf16>
    %5 = vector.extract_strided_slice %4 {offsets = [0, 0], sizes = [4, 128], strides = [1, 1]} : vector<4x256xbf16> to vector<4x128xbf16>
    %6 = vector.extract_strided_slice %4 {offsets = [0, 1], sizes = [4, 128], strides = [1, 1]} : vector<4x256xbf16> to vector<4x128xbf16>
    %7 = vector.extract_strided_slice %4 {offsets = [0, 2], sizes = [4, 128], strides = [1, 1]} : vector<4x256xbf16> to vector<4x128xbf16>
    %8 = vector.extract_strided_slice %4 {offsets = [0, 3], sizes = [4, 128], strides = [1, 1]} : vector<4x256xbf16> to vector<4x128xbf16>
    %9 = vector.extract_strided_slice %4 {offsets = [0, 4], sizes = [4, 128], strides = [1, 1]} : vector<4x256xbf16> to vector<4x128xbf16>
    %10 = vector.extract_strided_slice %4 {offsets = [0, 5], sizes = [4, 128], strides = [1, 1]} : vector<4x256xbf16> to vector<4x128xbf16>
    %11 = vector.extract_strided_slice %4 {offsets = [0, 6], sizes = [4, 128], strides = [1, 1]} : vector<4x256xbf16> to vector<4x128xbf16>
    %12 = tpu.concatenate %5, %6, %7, %8, %9, %10, %11 in 0 : vector<4x128xbf16>, vector<4x128xbf16>, vector<4x128xbf16>, vector<4x128xbf16>, vector<4x128xbf16>, vector<4x128xbf16>, vector<4x128xbf16> -> vector<28x128xbf16>
    %c0_5 = arith.constant 0 : index
    %c0_6 = arith.constant 0 : index
    %13 = vector.load %arg4[%c0_5, %c0_6] : memref<1x28xbf16, #tpu.memory_space<vmem>>, vector<1x28xbf16>
    %cst = arith.constant dense<0.000000e+00> : vector<1x128xf32>
    %14 = tpu.matmul %13, %12, %cst {dimension_numbers = #tpu.dot_dimension_numbers<[1], [0], [0], [1], [0, 0, 1, 1], [], []>} : vector<1x28xbf16>, vector<28x128xbf16>, vector<1x128xf32> -> vector<1x128xf32>
    %c0_7 = arith.constant 0 : index
    %c0_8 = arith.constant 0 : index
    %15 = vector.load %arg5[%c0_7, %c0_8] : memref<1x1xf32, #tpu.memory_space<vmem>>, vector<1x1xf32>
    %16 = vector.broadcast %15 : vector<1x1xf32> to vector<1x128xf32>
    %17 = arith.addf %14, %16 : vector<1x128xf32>
    %c0_9 = arith.constant 0 : index
    %c0_10 = arith.constant 0 : index
    %c0_11 = arith.constant 0 : index
    %18 = vector.load %arg6[%c0_9, %c0_10, %c0_11] : memref<1x1x128xf32, #tpu.memory_space<vmem>>, vector<1x1x128xf32>
    %19 = vector.shape_cast %18 : vector<1x1x128xf32> to vector<1x128xf32>
    %20 = vector.shape_cast %17 : vector<1x128xf32> to vector<1x1x128xf32>
    tpu.vector_store %arg6[%c0_9, %c0_10, %c0_11], %20 {strides = array<i32>} : memref<1x1x128xf32, #tpu.memory_space<vmem>>, vector<1x1x128xf32>,
    return
  }
  func.func @transform_0(%arg0: i32, %arg1: i32) -> (i32, i32, i32) {
    %c0_i32 = arith.constant 0 : i32
    %c0_i32_0 = arith.constant 0 : i32
    return %arg1, %c0_i32, %arg0 : i32, i32, i32
  }
  func.func @transform_1(%arg0: i32, %arg1: i32) -> (i32, i32, i32) {
    %c1_i32 = arith.constant 1 : i32
    %0 = arith.addi %arg0, %c1_i32 : i32
    %c1_i32_0 = arith.constant 1 : i32
    %1 = arith.muli %0, %c1_i32_0 : i32
    %c0_i32 = arith.constant 0 : i32
    %c0_i32_1 = arith.constant 0 : i32
    return %arg1, %c0_i32, %1 : i32, i32, i32
  }
  func.func @transform_2(%arg0: i32, %arg1: i32) -> (i32, i32) {
    %c0_i32 = arith.constant 0 : i32
    %c0_i32_0 = arith.constant 0 : i32
    %c0_i32_1 = arith.constant 0 : i32
    return %c0_i32, %c0_i32_0 : i32, i32
  }
  func.func @transform_3(%arg0: i32, %arg1: i32) -> (i32, i32) {
    %c0_i32 = arith.constant 0 : i32
    %c0_i32_0 = arith.constant 0 : i32
    %c0_i32_1 = arith.constant 0 : i32
    return %c0_i32, %c0_i32_0 : i32, i32
  }
  func.func @transform_4(%arg0: i32, %arg1: i32) -> (i32, i32, i32) {
    %c0_i32 = arith.constant 0 : i32
    %c0_i32_0 = arith.constant 0 : i32
    return %arg1, %c0_i32, %arg0 : i32, i32, i32
  }
}

</mosaic_0001>

<bundles_post_ra>
// kernel: generator_forward.13
= control target key start
LH: loop header
LB: loop body
LE: loop exit
PB: predicated region body
PF: predicated region fallthrough
CT: control target
= control target key end

     0   :  { %s707_s15 = smov 0   ;;  %s709_s16 = smov 0   ;;  %s795_s0 = inlined_call_operand.vmem [shape: bf16[2,16,256], index: 0, kind: input, shape index: {}, may-alias: {0,1}]   ;;  %s796_s1 = inlined_call_operand.vmem [shape: bf16[2,16,256], index: 1, kind: input, shape index: {}, may-alias: {0,1}]   ;;  %s797_s2 = inlined_call_operand.vmem [shape: bf16[16,32], index: 2, kind: input, shape index: {}]   ;;  %s798_s3 = inlined_call_operand.vmem [shape: f32[16,1], index: 3, kind: input, shape index: {}]   ;;  %s799_s4 = inlined_call_operand.vmem [shape: bf16[2,16,128], index: 4, kind: output, shape index: {}]  }
   0x1   :  { %s711_s17 = smov 0   ;;  %s713_s18 = smov 0  }
   0x2   :  { %s715_s19 = smov 0  }
   0x3 LB: > { %s23_s20 = sadd.s32 1, %s672_s18  ;;  %p42_p1 = scmp.ne.s32.totalorder %s664_s16, %s660_s15  ;;  %s676_s19 = sphi %s715_s19, %s14_s19   ;;  %s672_s18 = sphi %s713_s18, %s804_s18   ;;  %s668_s17 = sphi %s711_s17, %s803_s17   ;;  %s664_s16 = sphi %s709_s16, %s802_s16   ;;  %s660_s15 = sphi %s707_s15, %s801_s15  }
   0x4   : > { %p24_p0 = scmp.ge.s32.totalorder %s23_s20, 2  ;;  %p43_p2 = scmp.eq.s32.totalorder %s676_s19, 0 }
   0x5   : > { %s35_s23 = sadd.s32 1, %s664_s16  ;;  %p546_p5 = scmp.ge.s32.totalorder %s676_s19, 2 }
   0x6   : > { %s806_s20 = smov (%p24_p0, %s23_s20), 0  ;;  %p738_p3 = por %p43_p2, %p42_p1 }
   0x7   : > { %s30_s22 = ssub.s32 %s672_s18, %s806_s20  ;;  %174 = sbr.rel (%p546_p5) target bundleno = 28 (0x1c), region = 24 }
   0x8   : > { %p33_p4 = scmp.eq.s32.totalorder %s30_s22, 0 }
   0xa   : > { %s746_s24 = scalar_select %p33_p4, %s664_s16, %s35_s23  }
   0xe   : > { %177 = sbr.rel (!%p738_p3) target bundleno = 21 (0x15), region = 28  ;;  %s179_s25 = sand.u32 (%p738_p3), 1, %s664_s16  }
   0xf   : > { %s568_s26 = sshll.u32 (%p738_p3), %s672_s18, 4  ;;  %s547_s27 = sshll.u32 (%p738_p3), %s179_s25, 3 }
  0x10   : > { %s185_s30 = scalar_lea.vmem (%p738_p3), %s795_s0, %s568_s26  ;;  %s181_s5 = scalar_lea.vmem (%p738_p3), [#allocation2], %s547_s27 }
  0x11   : > { %v201_v0 = vld [vmem:[%s185_s30] sm:$0xf] (%p738_p3)  ;;  %v203_v1 = vld [vmem:[%s185_s30 + $0x8] sm:$0xf] (%p738_p3) }
  0x12   : > { %202 = vst [vmem:[%s181_s5] sm:$0xf] (%p738_p3), %v201_v0  ;;  %204 = vst [vmem:[%s181_s5 + $0x4] sm:$0xf] (%p738_p3), %v203_v1 }
  0x15 PF: > { %231 = sbr.rel (!%p738_p3) target bundleno = 28 (0x1c), region = 69  ;;  %s233_s6 = sand.u32 (%p738_p3), 1, %s664_s16  }
  0x16   : > { %s569_s7 = sshll.u32 (%p738_p3), %s672_s18, 4  ;;  %s550_s8 = sshll.u32 (%p738_p3), %s233_s6, 3 }
  0x17   : > { %s475_s11 = scalar_lea.vmem (%p738_p3), %s796_s1, %s569_s7  ;;  %s235_s12 = scalar_lea.vmem (%p738_p3), [#allocation3], %s550_s8 }
  0x18   : > { %v553_v2 = vld [vmem:[%s475_s11 + $0x4] sm:$0xf] (%p738_p3)  ;;  %v554_v3 = vld [vmem:[%s475_s11 + $0xc] sm:$0xf] (%p738_p3) }
  0x19   : > { %257 = vst [vmem:[%s235_s12] sm:$0xf] (%p738_p3), %v553_v2  ;;  %259 = vst [vmem:[%s235_s12 + $0x4] sm:$0xf] (%p738_p3), %v554_v3 }
  0x1c PF: > { %p555_p6 = scmp.ge.s32.totalorder %s676_s19, 1  ;;  %p285_p7 = scmp.lt.s32.totalorder %s676_s19, 3 }
  0x1e   : > { %p286_p8 = pnand %p555_p6, %p285_p7 }
  0x1f   : > { %s292_s13 = sand.u32 (!%p286_p8), 1, %s660_s15   ;;  %v678_v4 = vmov (!%p286_p8), 0.0   ;;  %vm679_vm0 = vmmov (!%p286_p8), 0   ;;  %v365_v5 = vld [vmem:[%s798_s3] sm:$0xff] (!%p286_p8)  ;;  %v680_v7 = vmov (!%p286_p8), 0   ;;  %s681_s26 = smov (!%p286_p8), 127  }
  0x20   : > { %289 = sbr.rel (%p286_p8) target bundleno = 377 (0x179), region = 110  ;;  %s556_s14 = sshll.u32 (!%p286_p8), %s292_s13, 3  ;;  %581 = vmatprep.subr.bf16.mxu0 (!%p286_p8), %v678_v4  ;;  %585 = vmatprep.mubr.msk.bf16.mxu0 (!%p286_p8), %vm679_vm0, %v678_v4  ;;  %v366_v9 = vld [vmem:[%s798_s3 + $0x8] sm:$0xff] (!%p286_p8)  ;;  %vm360_vm1 = vcmask (!%p286_p8), 1039360   ;;  %v637_v13 = vld [vmem:[%s797_s2] sm:$0xff] (!%p286_p8)   ;;  %vm382_vm2 = vcmask (!%p286_p8), 261120  }
  0x21   : > { %s294_s23 = scalar_lea.vmem (!%p286_p8), [#allocation2], %s556_s14  ;;  %633 = vset.pattern.permute.xlu1 (!%p286_p8), %v680_v7  ;;  %634 = vset.pattern.permute.xlu0 (!%p286_p8), %v680_v7  ;;  %s301_s25 = scalar_lea.vmem (!%p286_p8), [#allocation3], %s556_s14 }
  0x22   : > { %v635_v6 = vld [vmem:[%s294_s23] sm:$0xff] (!%p286_p8)   ;;  %369 = vperm.xlu1 (!%p286_p8), %633, %v365_v5   ;;  %v636_v8 = vld [vmem:[%s301_s25] sm:$0xff] (!%p286_p8)   ;;  %p332_p9 = scmp.lt.s32.totalorder (!%p286_p8), %s668_s17, 1 }
  0x23   : > { %356 = vrot.lane.b32.xlu0 (!%p286_p8), %v635_v6, %s681_s26  ;;  %582 = vmatpush3.bf16.msra.mxu0 (!%p286_p8), %v635_v6 }
  0x24   : > { %583 = vmatprep.subr.bf16.mxu0 (!%p286_p8), %v678_v4 }
  0x26   : > { %374 = vperm.xlu1 (!%p286_p8), %633, %v366_v9  }
  0x27   : > { %358 = vrot.lane.b32.xlu0 %v636_v8, %s681_s26  ;;  %s808_s17 = smov (!%p332_p9, %s668_s17), 1 }
  0x28   : > { %s570_s30 = sshll.u32 %s808_s17, 3 }
  0x29   : > { %s339_s7 = scalar_lea.vmem %s799_s4, %s570_s30 }
  0x95   : > { %v357_v10 = vpop.permute.xlu0 %356 }
  0x99   : > { %v359_v11 = vpop.permute.xlu0 %358 }
  0x9a   : > { %v361_v12 = vsel %vm360_vm1, %v357_v10, %v359_v11 }
  0x9b   : > { %584 = vmatpush3.bf16.msra.mxu0 %v361_v12 }
  0x9e   : > { %586 = vmatmul.mubr.msk.bf16.vlgmr.msra.gmra.mrb[0].mxu0 %vm382_vm2, %v637_v13 }
  0xa1   : > { %v370_v14 = vpop.permute.xlu1 %369 }
  0xa5   : > { %v375_v17 = vpop.permute.xlu1 %374 }
 0x171   : > { %v420_v15 = vpop.f32.mrb[0].mxu0 }
 0x172   : > { %v587_v16 = vpop.f32.mrb[1].mxu0  ;;  %v421_v19 = vadd.f32 %v420_v15, %v370_v14 }
 0x173   : > { %v423_v18 = vpop.f32.mrb[2].mxu0 }
 0x174   : > { %v424_v20 = vadd.f32 %v423_v18, %v375_v17  ;;  %v588_v21 = vpop.f32.mrb[3].mxu0 }
 0x176   : > { %v576_v22 = vpack.c.bf16 %v424_v20, %v421_v19 }
 0x178   : > { %577 = vst [vmem:[%s339_s7] sm:$0xff] %v576_v22  }
 0x179 PF: > { %s14_s19 = sadd.s32 1, %s676_s19   ;;  %s801_s15 = smov %s664_s16 }
 0x17a   : > { %p11_p10 = scmp.ge.s32.totalorder %s14_s19, 4   ;;  %s802_s16 = smov %s746_s24 }
 0x17b   : > { %s803_s17 = smov %s672_s18  ;;  %s804_s18 = smov %s806_s20 }
 0x17c   :  { %13 = sbr.rel (!%p11_p10) target bundleno = 3 (0x3), region = 161 }

// kernel: generator_forward.12
= control target key start
LH: loop header
LB: loop body
LE: loop exit
PB: predicated region body
PF: predicated region fallthrough
CT: control target
= control target key end

     0   :  { %s641_s15 = smov 0   ;;  %s643_s16 = smov 0   ;;  %s700_s0 = inlined_call_operand.vmem [shape: bf16[2,8,256], index: 0, kind: input, shape index: {}, may-alias: {0,1}]   ;;  %s701_s1 = inlined_call_operand.vmem [shape: bf16[2,8,256], index: 1, kind: input, shape index: {}, may-alias: {0,1}]   ;;  %s702_s2 = inlined_call_operand.vmem [shape: bf16[16,56], index: 2, kind: input, shape index: {}]   ;;  %s703_s3 = inlined_call_operand.vmem [shape: f32[16,1], index: 3, kind: input, shape index: {}]   ;;  %s704_s4 = inlined_call_operand.vmem [shape: bf16[2,16,128], index: 4, kind: output, shape index: {}]  }
   0x1   :  { %s645_s17 = smov 0  }
   0x2 LB: > { %s23_s18 = sadd.s32 1, %s601_s16  ;;  %p505_p0 = scmp.ge.s32.totalorder %s605_s17, 1  ;;  %s605_s17 = sphi %s645_s17, %s14_s17   ;;  %s601_s16 = sphi %s643_s16, %s706_s16   ;;  %s597_s15 = sphi %s641_s15, %s705_s15  }
   0x3   : > { %p24_p1 = scmp.ge.s32.totalorder %s23_s18, 2  ;;  %p200_p2 = scmp.lt.s32.totalorder %s605_s17, 3 }
   0x5   : > { %s708_s18 = smov (%p24_p1, %s23_s18), 0  ;;  %p201_p3 = pnand %p505_p0, %p200_p2 }
   0x6   : > { %p241_p4 = scmp.lt.s32.totalorder (!%p201_p3), %s597_s15, 1  ;;  %v607_v0 = vmov (!%p201_p3), 0.0   ;;  %s608_s27 = smov (!%p201_p3), 126   ;;  %vm612_vm0 = vmmov (!%p201_p3), 0   ;;  %v613_v5 = vmov (!%p201_p3), 0   ;;  %v326_v6 = vld [vmem:[%s703_s3 + $0x8] sm:$0xff] (!%p201_p3) }
   0x7   : > { %204 = sbr.rel (%p201_p3) target bundleno = 379 (0x17b), region = 36  ;;  %535 = vmatprep.subr.bf16.mxu0 (!%p201_p3), %v607_v0  ;;  %s609_s28 = smov (!%p201_p3), 127   ;;  %543 = vmatprep.mubr.msk.bf16.mxu0 (!%p201_p3), %vm612_vm0, %v607_v0  ;;  %v325_v7 = vld [vmem:[%s703_s3] sm:$0xff] (!%p201_p3)  ;;  %vm278_vm1 = vcmask (!%p201_p3), 1039360   ;;  %vm290_vm2 = vcmask (!%p201_p3), 1022976   ;;  %vm310_vm3 = vcmask (!%p201_p3), 1043456  }
   0x8   : > { %s610_s29 = smov (!%p201_p3), 125   ;;  %s611_s30 = smov (!%p201_p3), 124   ;;  %580 = vset.pattern.permute.xlu0 (!%p201_p3), %v613_v5  ;;  %581 = vset.pattern.permute.xlu1 (!%p201_p3), %v613_v5  ;;  %vm284_vm4 = vcmask (!%p201_p3), 1031168   ;;  %vm296_vm5 = vcmask (!%p201_p3), 1014784   ;;  %vm302_vm6 = vcmask (!%p201_p3), 1006592   ;;  %vm308_vm7 = vcmask (!%p201_p3), 998400  }
   0x9   : > { %s614_s5 = smov (!%p201_p3), 123   ;;  %s615_s6 = smov (!%p201_p3), 122   ;;  %v582_v30 = vld [vmem:[%s702_s2] sm:$0xff] (!%p201_p3)   ;;  %vm342_vm8 = vcmask (!%p201_p3), 457728  }
   0xe   : > { %s710_s15 = smov (!%p241_p4, %s597_s15), 1 }
   0xf   : > { %s659_s19 = sshll.u32 %s710_s15, 3 }
  0x10   : > { %s248_s22 = scalar_lea.vmem %s700_s0, %s659_s19  ;;  %s520_s23 = sadd.s32 4, %s659_s19 }
  0x11   : > { %v268_v1 = vld [vmem:[%s248_s22] sm:$0xf]  ;;  %s257_s26 = scalar_lea.vmem %s701_s1, %s520_s23  ;;  %s266_s15 = scalar_lea.vmem %s704_s4, %s659_s19 }
  0x12   : > { %280 = vrot.lane.b32.xlu1 %v268_v1, %s608_s27  ;;  %v272_v2 = vrot.slane %v268_v1, 4  ;;  %v269_v3 = vld [vmem:[%s257_s26] sm:$0xf] }
  0x13   : > { %v273_v4 = vrot.slane %v269_v3, 4 }
  0x14   : > { %274 = vrot.lane.b32.xlu0 %v272_v2, %s609_s28 }
  0x16   : > { %282 = vrot.lane.b32.xlu1 %v269_v3, %s608_s27 }
  0x18   : > { %286 = vrot.lane.b32.xlu0 %v272_v2, %s610_s29 }
  0x1a   : > { %288 = vrot.lane.b32.xlu1 %v273_v4, %s610_s29 }
  0x1c   : > { %276 = vrot.lane.b32.xlu0 %v273_v4, %s609_s28 }
  0x1e   : > { %294 = vrot.lane.b32.xlu1 %v269_v3, %s611_s30 }
  0x20   : > { %292 = vrot.lane.b32.xlu0 %v268_v1, %s611_s30 }
  0x22   : > { %300 = vrot.lane.b32.xlu1 %v273_v4, %s614_s5 }
  0x24   : > { %298 = vrot.lane.b32.xlu0 %v272_v2, %s614_s5 }
  0x26   : > { %306 = vrot.lane.b32.xlu1 %v269_v3, %s615_s6 }
  0x28   : > { %304 = vrot.lane.b32.xlu0 %v268_v1, %s615_s6 }
  0x2a   : > { %334 = vperm.xlu1 %581, %v326_v6  }
  0x2c   : > { %329 = vperm.xlu0 %580, %v325_v7  }
  0x84   : > { %v281_v8 = vpop.permute.xlu1 %280 }
  0x86   : > { %v275_v9 = vpop.permute.xlu0 %274 }
  0x88   : > { %v283_v10 = vpop.permute.xlu1 %282 }
  0x89   : > { %v285_v19 = vsel %vm284_vm4, %v281_v8, %v283_v10 }
  0x8a   : > { %v287_v11 = vpop.permute.xlu0 %286 }
  0x8c   : > { %v289_v12 = vpop.permute.xlu1 %288 }
  0x8d   : > { %v291_v17 = vsel %vm290_vm2, %v287_v11, %v289_v12 }
  0x8e   : > { %v277_v13 = vpop.permute.xlu0 %276  ;;  %v317_v20 = vsel %vm310_vm3, %v285_v19, %v291_v17 }
  0x8f   : > { %v279_v14 = vsel %vm278_vm1, %v275_v9, %v277_v13 }
  0x90   : > { %v313_v15 = vsel %vm310_vm3, %v268_v1, %v279_v14  ;;  %v295_v16 = vpop.permute.xlu1 %294 }
  0x91   : > { %536 = vmatpush3.bf16.msra.mxu0 %v313_v15 }
  0x92   : > { %v293_v18 = vpop.permute.xlu0 %292  ;;  %537 = vmatprep.subr.bf16.mxu0 %v607_v0 }
  0x93   : > { %v297_v23 = vsel %vm296_vm5, %v293_v18, %v295_v16 }
  0x94   : > { %v301_v21 = vpop.permute.xlu1 %300 }
  0x95   : > { %538 = vmatpush3.bf16.msra.mxu0 %v317_v20 }
  0x96   : > { %v299_v22 = vpop.permute.xlu0 %298  ;;  %539 = vmatprep.subr.bf16.mxu0 %v607_v0 }
  0x97   : > { %v303_v24 = vsel %vm302_vm6, %v299_v22, %v301_v21 }
  0x98   : > { %v321_v25 = vsel %vm310_vm3, %v297_v23, %v303_v24  ;;  %v307_v26 = vpop.permute.xlu1 %306 }
  0x99   : > { %540 = vmatpush3.bf16.msra.mxu0 %v321_v25 }
  0x9a   : > { %v305_v27 = vpop.permute.xlu0 %304  ;;  %541 = vmatprep.subr.bf16.mxu0 %v607_v0 }
  0x9b   : > { %v309_v28 = vsel %vm308_vm7, %v305_v27, %v307_v26 }
  0x9c   : > { %v347_v29 = vsel %vm310_vm3, %v309_v28, 0 }
  0x9d   : > { %542 = vmatpush3.bf16.msra.mxu0 %v347_v29 }
  0xa0   : > { %544 = vmatmul.mubr.msk.bf16.vlgmr.msra.gmra.mrb[0].mxu0 %vm342_vm8, %v582_v30 }
  0xa9   : > { %v335_v33 = vpop.permute.xlu1 %334 }
  0xab   : > { %v330_v31 = vpop.permute.xlu0 %329 }
 0x173   : > { %v383_v32 = vpop.f32.mrb[0].mxu0 }
 0x174   : > { %v545_v34 = vpop.f32.mrb[1].mxu0  ;;  %v384_v36 = vadd.f32 %v383_v32, %v330_v31 }
 0x175   : > { %v386_v35 = vpop.f32.mrb[2].mxu0 }
 0x176   : > { %v387_v37 = vadd.f32 %v386_v35, %v335_v33  ;;  %v546_v38 = vpop.f32.mrb[3].mxu0 }
 0x178   : > { %v527_v39 = vpack.c.bf16 %v387_v37, %v384_v36 }
 0x17a   : > { %528 = vst [vmem:[%s266_s15] sm:$0xff] %v527_v39  }
 0x17b PF: > { %s14_s17 = sadd.s32 1, %s605_s17   ;;  %s705_s15 = smov %s601_s16 }
 0x17c   : > { %p11_p5 = scmp.ge.s32.totalorder %s14_s17, 4   ;;  %s706_s16 = smov %s708_s18 }
 0x17e   :  { %13 = sbr.rel (!%p11_p5) target bundleno = 2 (0x2), region = 69 }

// kernel: generator_forward.15
= control target key start
LH: loop header
LB: loop body
LE: loop exit
PB: predicated region body
PF: predicated region fallthrough
CT: control target
= control target key end

     0   :  { %s760_s21 = smov 0   ;;  %s762_s22 = smov 0   ;;  %s832_s0 = inlined_call_operand.vmem [shape: bf16[2,8,256], index: 0, kind: input, shape index: {}, may-alias: {0,1}]   ;;  %s833_s1 = inlined_call_operand.vmem [shape: bf16[2,8,256], index: 1, kind: input, shape index: {}, may-alias: {0,1}]   ;;  %s834_s2 = inlined_call_operand.vmem [shape: bf16[8,24], index: 2, kind: input, shape index: {}]   ;;  %s835_s3 = inlined_call_operand.vmem [shape: f32[8,1], index: 3, kind: input, shape index: {}]   ;;  %s836_s4 = inlined_call_operand.vmem [shape: bf16[8,24], index: 4, kind: input, shape index: {}]   ;;  %s837_s5 = inlined_call_operand.vmem [shape: f32[8,1], index: 5, kind: input, shape index: {}]   ;;  %s838_s6 = inlined_call_operand.vmem [shape: bf16[2,8,128], index: 6, kind: output, shape index: {}]  }
   0x1   :  { %s764_s23 = smov 0  }
   0x2 LB: > { %s25_s24 = sadd.s32 1, %s710_s22  ;;  %p627_p0 = scmp.ge.s32.totalorder %s714_s23, 1  ;;  %s714_s23 = sphi %s764_s23, %s16_s23   ;;  %s710_s22 = sphi %s762_s22, %s840_s22   ;;  %s706_s21 = sphi %s760_s21, %s839_s21  }
   0x3   : > { %p26_p1 = scmp.ge.s32.totalorder %s25_s24, 2  ;;  %p250_p2 = scmp.lt.s32.totalorder %s714_s23, 3 }
   0x5   : > { %s842_s24 = smov (%p26_p1, %s25_s24), 0  ;;  %p251_p3 = pnand %p627_p0, %p250_p2 }
   0x6   : > { %p294_p4 = scmp.lt.s32.totalorder (!%p251_p3), %s706_s21, 1  ;;  %s716_s9 = smov (!%p251_p3), 122   ;;  %v717_v11 = vmov (!%p251_p3), 0   ;;  %v358_v13 = vld [vmem:[%s835_s3] sm:$0xff] (!%p251_p3)  ;;  %vm340_vm2 = vcmask (!%p251_p3), 1022976   ;;  %vm348_vm3 = vcmask (!%p251_p3), 1043456   ;;  %v417_v26 = vlaneseq (!%p251_p3) }
   0x7   : > { %254 = sbr.rel (%p251_p3) target bundleno = 720 (0x2d0), region = 44  ;;  %406 = vmatprep.mubr.bf16.mxu0 (!%p251_p3), %v717_v11  ;;  %686 = vset.pattern.permute.xlu0 (!%p251_p3), %v717_v11  ;;  %s718_s10 = smov (!%p251_p3), 125   ;;  %vm346_vm4 = vcmask (!%p251_p3), 998400   ;;  %v357_v23 = vld [vmem:[%s834_s2] sm:$0xf] (!%p251_p3)  ;;  %vm364_vm5 = vcmask (!%p251_p3), 195584  }
   0x8   : > { %v719_v24 = vmov (!%p251_p3), 0.0|0.0   ;;  %s720_s15 = smov (!%p251_p3), 127   ;;  %v418_v27 = vand.u32 (!%p251_p3), 127, %v417_v26  ;;  %v721_v30 = vmov (!%p251_p3), 0.0   ;;  %vm722_vm10 = vmmov (!%p251_p3), 0   ;;  %s723_s16 = smov (!%p251_p3), 126  }
   0x9   : > { %v446_v25 = vrot.slane (!%p251_p3), %v719_v24, 4  ;;  %645 = vmatprep.subr.bf16.mxu1 (!%p251_p3), %v721_v30  ;;  %649 = vmatprep.mubr.msk.bf16.mxu1 (!%p251_p3), %vm722_vm10, %v721_v30  ;;  %v464_v41 = vld [vmem:[%s837_s5] sm:$0xff] (!%p251_p3)  ;;  %s724_s19 = smov (!%p251_p3), 124   ;;  %vm451_vm11 = vcmask (!%p251_p3), 1039360   ;;  %vm457_vm12 = vcmask (!%p251_p3), 1031168   ;;  %vm522_vm13 = vcmask (!%p251_p3), 1014784  }
   0xa   : > { %v421_v28 = vadd.s32 (!%p251_p3), 4294967295, %v418_v27  ;;  %v463_v51 = vld [vmem:[%s836_s4] sm:$0xf] (!%p251_p3) }
   0xc   : > { %vm423_vm6 = vcmp.ge.s32.totalorder (!%p251_p3), %v421_v28, 0  ;;  %vm425_vm7 = vcmp.lt.s32.totalorder (!%p251_p3), %v421_v28, 16 }
   0xd   : > { %vm427_vm8 = vmand (!%p251_p3), %vm423_vm6, %vm425_vm7 }
   0xe   : > { %s844_s21 = smov (!%p294_p4, %s706_s21), 1 }
   0xf   : > { %s638_s25 = sshll.u32 %s844_s21, 3  ;;  %s632_s26 = sshll.u32 %s844_s21, 2 }
  0x10   : > { %s301_s28 = scalar_lea.vmem %s832_s0, %s638_s25  ;;  %s640_s29 = sadd.s32 4, %s638_s25 }
  0x11   : > { %v320_v0 = vld [vmem:[%s301_s28] sm:$0xf]  ;;  %s310_s8 = scalar_lea.vmem %s833_s1, %s640_s29  ;;  %s318_s29 = scalar_lea.vmem %s838_s6, %s632_s26 }
  0x12   : > { %v787_v1 = vunpack.c.l.bf16 %v320_v0  ;;  %v321_v2 = vld [vmem:[%s310_s8] sm:$0xf] }
  0x13   : > { %v789_v3 = vunpack.c.l.bf16 %v321_v2 }
  0x14   : > { %vm324_vm0 = vcmp.ge.f32.partialorder %v787_v1, 0.0  ;;  %v326_v4 = vmul.f32 0.1, %v787_v1 }
  0x15   : > { %vm325_vm1 = vcmp.ge.f32.partialorder %v789_v3, 0.0  ;;  %v327_v5 = vmul.f32 0.1, %v789_v3  ;;  %v687_v42 = vpack.i.bf16 %v789_v3, %v787_v1 }
  0x16   : > { %v328_v6 = vsel %vm324_vm0, %v787_v1, %v326_v4 }
  0x17   : > { %v330_v7 = vpack.c.bf16 %v328_v6, %v328_v6  ;;  %v329_v8 = vsel %vm325_vm1, %v789_v3, %v327_v5 }
  0x18   : > { %v331_v9 = vpack.c.bf16 %v329_v8, %v329_v8 }
  0x19   : > { %342 = vrot.lane.b32.xlu1 %v330_v7, %s716_s9  ;;  %v334_v10 = vrot.slane %v330_v7, 4 }
  0x1a   : > { %v335_v12 = vrot.slane %v331_v9, 4 }
  0x1b   : > { %336 = vrot.lane.b32.xlu0 %v334_v10, %s718_s10 }
  0x1d   : > { %344 = vrot.lane.b32.xlu1 %v331_v9, %s716_s9 }
  0x1f   : > { %338 = vrot.lane.b32.xlu0 %v335_v12, %s718_s10 }
  0x21   : > { %449 = vrot.lane.b32.xlu1 %v446_v25, %s720_s15 }
  0x23   : > { %361 = vperm.xlu0 %686, %v358_v13  }
  0x8b   : > { %v343_v14 = vpop.permute.xlu1 %342 }
  0x8d   : > { %v337_v15 = vpop.permute.xlu0 %336 }
  0x8f   : > { %v345_v16 = vpop.permute.xlu1 %344 }
  0x90   : > { %v347_v21 = vsel %vm346_vm4, %v343_v14, %v345_v16 }
  0x91   : > { %v339_v17 = vpop.permute.xlu0 %338  ;;  %v369_v22 = vsel %vm348_vm3, %v347_v21, 0 }
  0x92   : > { %v341_v18 = vsel %vm340_vm2, %v337_v15, %v339_v17  ;;  %v355_v19 = vsel %vm348_vm3, %v331_v9, %v339_v17 }
  0x93   : > { %374 = vmatprep.subr.bf16.mxu0 %v355_v19  ;;  %v351_v20 = vsel %vm348_vm3, %v330_v7, %v341_v18  ;;  %v450_v43 = vpop.permute.xlu1 %449 }
  0x94   : > { %375 = vmatpush1.bf16.msra.mxu0 %v351_v20 }
  0x95   : > { %633 = vmatprep.subr.msk.bf16.mxu0 %vm348_vm3, %v345_v16 }
  0x98   : > { %377 = vmatpush1.bf16.msra.mxu0 %v369_v22 }
  0x9b   : > { %634 = vmatmul.mubr.msk.bf16.vlgmr.msra.gmra.mrb[0].mxu0 %vm364_vm5, %v357_v23 }
  0xa2   : > { %v362_v29 = vpop.permute.xlu0 %361 }
 0x16e   : > { %v408_v31 = vpop.f32.mrb[0].mxu0 }
 0x16f   : > { %v409_v32 = vadd.f32 %v408_v31, %v362_v29  ;;  %v410_v33 = vpop.f32.mrb[1].mxu0 }
 0x170   : > { %v412_v34 = vpop.f32.mrb[2].mxu0 }
 0x171   : > { %v433_v35 = vsel %vm427_vm8, %v409_v32, 0.0  ;;  %v413_v36 = vpop.f32.mrb[3].mxu0 }
 0x172   : > { %vm435_vm9 = vcmp.ge.f32.partialorder %v433_v35, 0.0  ;;  %v437_v37 = vmul.f32 0.1, %v433_v35 }
 0x174   : > { %v439_v38 = vsel %vm435_vm9, %v433_v35, %v437_v37 }
 0x175   : > { %v441_v39 = vpack.c.bf16 %v439_v38, %v439_v38 }
 0x177   : > { %453 = vrot.lane.b32.xlu0 %v441_v39, %s723_s16  ;;  %v445_v40 = vrot.slane %v441_v39, 4 }
 0x179   : > { %447 = vrot.lane.b32.xlu1 %v445_v40, %s720_s15 }
 0x17b   : > { %467 = vperm.xlu0 %686, %v464_v41  }
 0x17d   : > { %455 = vrot.lane.b32.xlu1 %v719_v24, %s723_s16 }
 0x181   : > { %688 = vrot.lane.b32.xlu1 %v687_v42, %s724_s19 }
 0x1e9   : > { %v454_v47 = vpop.permute.xlu0 %453 }
 0x1eb   : > { %v448_v44 = vpop.permute.xlu1 %447 }
 0x1ec   : > { %v452_v45 = vsel %vm451_vm11, %v448_v44, %v450_v43 }
 0x1ed   : > { %v461_v46 = vsel %vm348_vm3, %v441_v39, %v452_v45 }
 0x1ee   : > { %646 = vmatpush3.bf16.msra.mxu1 %v461_v46 }
 0x1ef   : > { %v456_v48 = vpop.permute.xlu1 %455  ;;  %647 = vmatprep.subr.bf16.mxu1 %v721_v30 }
 0x1f0   : > { %v458_v49 = vsel %vm457_vm12, %v454_v47, %v456_v48 }
 0x1f1   : > { %v474_v50 = vsel %vm348_vm3, %v458_v49, 0 }
 0x1f2   : > { %648 = vmatpush3.bf16.msra.mxu1 %v474_v50 }
 0x1f3   : > { %v689_v52 = vpop.permute.xlu1 %688 }
 0x1f4   : > { %v691_v53 = vunpack.i.h.bf16 %v689_v52  ;;  %v690_v54 = vunpack.i.l.bf16 %v689_v52 }
 0x1f5   : > { %650 = vmatmul.mubr.msk.bf16.vlgmr.msra.gmra.mrb[0].mxu1 %vm364_vm5, %v463_v51 }
 0x1f6   : > { %v523_v57 = vsel %vm522_vm13, %v690_v54, %v691_v53 }
 0x1fa   : > { %v468_v55 = vpop.permute.xlu0 %467 }
 0x2c8   : > { %v510_v56 = vpop.f32.mrb[0].mxu1 }
 0x2c9   : > { %v511_v58 = vadd.f32 %v510_v56, %v468_v55  ;;  %v651_v59 = vpop.f32.mrb[1].mxu1 }
 0x2ca   : > { %v513_v60 = vpop.f32.mrb[2].mxu1 }
 0x2cb   : > { %v525_v61 = vadd.f32 %v523_v57, %v511_v58  ;;  %v652_v62 = vpop.f32.mrb[3].mxu1 }
 0x2cd   : > { %v526_v63 = vpack.c.bf16 %v525_v61, %v525_v61 }
 0x2cf   : > { %527 = vst [vmem:[%s318_s29] sm:$0xf] %v526_v63 }
 0x2d0 PF: > { %s16_s23 = sadd.s32 1, %s714_s23   ;;  %s839_s21 = smov %s710_s22 }
 0x2d1   : > { %p13_p5 = scmp.ge.s32.totalorder %s16_s23, 4   ;;  %s840_s22 = smov %s842_s24 }
 0x2d3   :  { %15 = sbr.rel (!%p13_p5) target bundleno = 2 (0x2), region = 77 }

// kernel: generator_forward.14
= control target key start
LH: loop header
LB: loop body
LE: loop exit
PB: predicated region body
PF: predicated region fallthrough
CT: control target
= control target key end

     0   :  { %s752_s21 = smov 0   ;;  %s754_s22 = smov 0   ;;  %s838_s0 = inlined_call_operand.vmem [shape: bf16[2,8,256], index: 0, kind: input, shape index: {}, may-alias: {0,1}]   ;;  %s839_s1 = inlined_call_operand.vmem [shape: bf16[2,8,256], index: 1, kind: input, shape index: {}, may-alias: {0,1}]   ;;  %s840_s2 = inlined_call_operand.vmem [shape: bf16[8,24], index: 2, kind: input, shape index: {}]   ;;  %s841_s3 = inlined_call_operand.vmem [shape: f32[8,1], index: 3, kind: input, shape index: {}]   ;;  %s842_s4 = inlined_call_operand.vmem [shape: bf16[8,24], index: 4, kind: input, shape index: {}]   ;;  %s843_s5 = inlined_call_operand.vmem [shape: f32[8,1], index: 5, kind: input, shape index: {}]   ;;  %s844_s6 = inlined_call_operand.vmem [shape: bf16[2,8,128], index: 6, kind: output, shape index: {}]  }
   0x1   :  { %s756_s23 = smov 0  }
   0x2 LB: > { %s25_s24 = sadd.s32 1, %s705_s22  ;;  %p625_p0 = scmp.ge.s32.totalorder %s709_s23, 1  ;;  %s709_s23 = sphi %s756_s23, %s16_s23   ;;  %s705_s22 = sphi %s754_s22, %s846_s22   ;;  %s701_s21 = sphi %s752_s21, %s845_s21  }
   0x3   : > { %p26_p1 = scmp.ge.s32.totalorder %s25_s24, 2  ;;  %p250_p2 = scmp.lt.s32.totalorder %s709_s23, 3 }
   0x5   : > { %s848_s24 = smov (%p26_p1, %s25_s24), 0  ;;  %p251_p3 = pnand %p625_p0, %p250_p2 }
   0x6   : > { %p294_p4 = scmp.lt.s32.totalorder (!%p251_p3), %s701_s21, 1  ;;  %s711_s9 = smov (!%p251_p3), 126   ;;  %v712_v11 = vmov (!%p251_p3), 0   ;;  %v358_v13 = vld [vmem:[%s841_s3] sm:$0xff] (!%p251_p3)  ;;  %vm340_vm2 = vcmask (!%p251_p3), 1039360   ;;  %vm348_vm3 = vcmask (!%p251_p3), 1043456   ;;  %v417_v26 = vlaneseq (!%p251_p3) }
   0x7   : > { %254 = sbr.rel (%p251_p3) target bundleno = 720 (0x2d0), region = 44  ;;  %406 = vmatprep.mubr.bf16.mxu0 (!%p251_p3), %v712_v11  ;;  %681 = vset.pattern.permute.xlu0 (!%p251_p3), %v712_v11  ;;  %s713_s10 = smov (!%p251_p3), 127   ;;  %vm346_vm4 = vcmask (!%p251_p3), 1031168   ;;  %v357_v23 = vld [vmem:[%s840_s2] sm:$0xf] (!%p251_p3)  ;;  %vm364_vm5 = vcmask (!%p251_p3), 195584  }
   0x8   : > { %v714_v24 = vmov (!%p251_p3), 0.0|0.0   ;;  %v418_v27 = vand.u32 (!%p251_p3), 127, %v417_v26  ;;  %v715_v30 = vmov (!%p251_p3), 0.0   ;;  %vm716_vm10 = vmmov (!%p251_p3), 0   ;;  %v462_v41 = vld [vmem:[%s843_s5] sm:$0xff] (!%p251_p3) }
   0x9   : > { %v446_v25 = vrot.slane (!%p251_p3), %v714_v24, 4  ;;  %643 = vmatprep.subr.bf16.mxu1 (!%p251_p3), %v715_v30  ;;  %647 = vmatprep.mubr.msk.bf16.mxu1 (!%p251_p3), %vm716_vm10, %v715_v30  ;;  %v461_v51 = vld [vmem:[%s842_s4] sm:$0xf] (!%p251_p3) }
   0xa   : > { %v421_v28 = vadd.s32 (!%p251_p3), 4294967295, %v418_v27 }
   0xc   : > { %vm423_vm6 = vcmp.ge.s32.totalorder (!%p251_p3), %v421_v28, 0  ;;  %vm425_vm7 = vcmp.lt.s32.totalorder (!%p251_p3), %v421_v28, 16 }
   0xd   : > { %vm427_vm8 = vmand (!%p251_p3), %vm423_vm6, %vm425_vm7 }
   0xe   : > { %s850_s21 = smov (!%p294_p4, %s701_s21), 1 }
   0xf   : > { %s636_s25 = sshll.u32 %s850_s21, 3  ;;  %s630_s19 = sshll.u32 %s850_s21, 2 }
  0x10   : > { %s301_s28 = scalar_lea.vmem %s838_s0, %s636_s25  ;;  %s638_s29 = sadd.s32 4, %s636_s25 }
  0x11   : > { %v320_v0 = vld [vmem:[%s301_s28] sm:$0xf]  ;;  %s310_s8 = scalar_lea.vmem %s839_s1, %s638_s29  ;;  %s318_s26 = scalar_lea.vmem %s844_s6, %s630_s19 }
  0x12   : > { %v779_v1 = vunpack.c.l.bf16 %v320_v0  ;;  %v321_v2 = vld [vmem:[%s310_s8] sm:$0xf] }
  0x13   : > { %v781_v3 = vunpack.c.l.bf16 %v321_v2 }
  0x14   : > { %vm324_vm0 = vcmp.ge.f32.partialorder %v779_v1, 0.0  ;;  %v326_v4 = vmul.f32 0.1, %v779_v1 }
  0x15   : > { %vm325_vm1 = vcmp.ge.f32.partialorder %v781_v3, 0.0  ;;  %v327_v5 = vmul.f32 0.1, %v781_v3  ;;  %v682_v42 = vpack.i.bf16 %v781_v3, %v779_v1 }
  0x16   : > { %v328_v6 = vsel %vm324_vm0, %v779_v1, %v326_v4 }
  0x17   : > { %v330_v7 = vpack.c.bf16 %v328_v6, %v328_v6  ;;  %v329_v8 = vsel %vm325_vm1, %v781_v3, %v327_v5 }
  0x18   : > { %v331_v9 = vpack.c.bf16 %v329_v8, %v329_v8 }
  0x19   : > { %342 = vrot.lane.b32.xlu1 %v330_v7, %s711_s9  ;;  %v334_v10 = vrot.slane %v330_v7, 4 }
  0x1a   : > { %v335_v12 = vrot.slane %v331_v9, 4 }
  0x1b   : > { %336 = vrot.lane.b32.xlu0 %v334_v10, %s713_s10 }
  0x1d   : > { %344 = vrot.lane.b32.xlu1 %v331_v9, %s711_s9 }
  0x1f   : > { %338 = vrot.lane.b32.xlu0 %v335_v12, %s713_s10 }
  0x21   : > { %449 = vrot.lane.b32.xlu1 %v446_v25, %s713_s10 }
  0x23   : > { %361 = vperm.xlu0 %681, %v358_v13  }
  0x8b   : > { %v343_v14 = vpop.permute.xlu1 %342 }
  0x8d   : > { %v337_v15 = vpop.permute.xlu0 %336 }
  0x8f   : > { %v345_v16 = vpop.permute.xlu1 %344 }
  0x90   : > { %v347_v21 = vsel %vm346_vm4, %v343_v14, %v345_v16 }
  0x91   : > { %v339_v17 = vpop.permute.xlu0 %338  ;;  %v369_v22 = vsel %vm348_vm3, %v347_v21, 0 }
  0x92   : > { %v341_v18 = vsel %vm340_vm2, %v337_v15, %v339_v17  ;;  %v355_v19 = vsel %vm348_vm3, %v331_v9, %v339_v17 }
  0x93   : > { %374 = vmatprep.subr.bf16.mxu0 %v355_v19  ;;  %v351_v20 = vsel %vm348_vm3, %v330_v7, %v341_v18  ;;  %v450_v43 = vpop.permute.xlu1 %449 }
  0x94   : > { %375 = vmatpush1.bf16.msra.mxu0 %v351_v20 }
  0x95   : > { %631 = vmatprep.subr.msk.bf16.mxu0 %vm348_vm3, %v345_v16 }
  0x98   : > { %377 = vmatpush1.bf16.msra.mxu0 %v369_v22 }
  0x9b   : > { %632 = vmatmul.mubr.msk.bf16.vlgmr.msra.gmra.mrb[0].mxu0 %vm364_vm5, %v357_v23 }
  0xa2   : > { %v362_v29 = vpop.permute.xlu0 %361 }
 0x16e   : > { %v408_v31 = vpop.f32.mrb[0].mxu0 }
 0x16f   : > { %v409_v32 = vadd.f32 %v408_v31, %v362_v29  ;;  %v410_v33 = vpop.f32.mrb[1].mxu0 }
 0x170   : > { %v412_v34 = vpop.f32.mrb[2].mxu0 }
 0x171   : > { %v433_v35 = vsel %vm427_vm8, %v409_v32, 0.0  ;;  %v413_v36 = vpop.f32.mrb[3].mxu0 }
 0x172   : > { %vm435_vm9 = vcmp.ge.f32.partialorder %v433_v35, 0.0  ;;  %v437_v37 = vmul.f32 0.1, %v433_v35 }
 0x174   : > { %v439_v38 = vsel %vm435_vm9, %v433_v35, %v437_v37 }
 0x175   : > { %v441_v39 = vpack.c.bf16 %v439_v38, %v439_v38 }
 0x177   : > { %452 = vrot.lane.b32.xlu0 %v441_v39, %s711_s9  ;;  %v445_v40 = vrot.slane %v441_v39, 4 }
 0x179   : > { %447 = vrot.lane.b32.xlu1 %v445_v40, %s713_s10 }
 0x17b   : > { %465 = vperm.xlu0 %681, %v462_v41  }
 0x17d   : > { %454 = vrot.lane.b32.xlu1 %v714_v24, %s711_s9 }
 0x181   : > { %683 = vrot.lane.b32.xlu1 %v682_v42, %s711_s9 }
 0x1e9   : > { %v453_v47 = vpop.permute.xlu0 %452 }
 0x1eb   : > { %v448_v44 = vpop.permute.xlu1 %447 }
 0x1ec   : > { %v451_v45 = vsel %vm340_vm2, %v448_v44, %v450_v43 }
 0x1ed   : > { %v459_v46 = vsel %vm348_vm3, %v441_v39, %v451_v45 }
 0x1ee   : > { %644 = vmatpush3.bf16.msra.mxu1 %v459_v46 }
 0x1ef   : > { %v455_v48 = vpop.permute.xlu1 %454  ;;  %645 = vmatprep.subr.bf16.mxu1 %v715_v30 }
 0x1f0   : > { %v456_v49 = vsel %vm346_vm4, %v453_v47, %v455_v48 }
 0x1f1   : > { %v472_v50 = vsel %vm348_vm3, %v456_v49, 0 }
 0x1f2   : > { %646 = vmatpush3.bf16.msra.mxu1 %v472_v50 }
 0x1f3   : > { %v684_v52 = vpop.permute.xlu1 %683 }
 0x1f4   : > { %v686_v53 = vunpack.i.h.bf16 %v684_v52  ;;  %v685_v54 = vunpack.i.l.bf16 %v684_v52 }
 0x1f5   : > { %648 = vmatmul.mubr.msk.bf16.vlgmr.msra.gmra.mrb[0].mxu1 %vm364_vm5, %v461_v51 }
 0x1f6   : > { %v521_v57 = vsel %vm346_vm4, %v685_v54, %v686_v53 }
 0x1fa   : > { %v466_v55 = vpop.permute.xlu0 %465 }
 0x2c8   : > { %v508_v56 = vpop.f32.mrb[0].mxu1 }
 0x2c9   : > { %v509_v58 = vadd.f32 %v508_v56, %v466_v55  ;;  %v649_v59 = vpop.f32.mrb[1].mxu1 }
 0x2ca   : > { %v511_v60 = vpop.f32.mrb[2].mxu1 }
 0x2cb   : > { %v523_v61 = vadd.f32 %v521_v57, %v509_v58  ;;  %v650_v62 = vpop.f32.mrb[3].mxu1 }
 0x2cd   : > { %v524_v63 = vpack.c.bf16 %v523_v61, %v523_v61 }
 0x2cf   : > { %525 = vst [vmem:[%s318_s26] sm:$0xf] %v524_v63 }
 0x2d0 PF: > { %s16_s23 = sadd.s32 1, %s709_s23   ;;  %s845_s21 = smov %s705_s22 }
 0x2d1   : > { %p13_p5 = scmp.ge.s32.totalorder %s16_s23, 4   ;;  %s846_s22 = smov %s848_s24 }
 0x2d3   :  { %15 = sbr.rel (!%p13_p5) target bundleno = 2 (0x2), region = 77 }

// kernel: generator_forward.16
= control target key start
LH: loop header
LB: loop body
LE: loop exit
PB: predicated region body
PF: predicated region fallthrough
CT: control target
= control target key end

     0   :  { %s793_s21 = smov 0   ;;  %s795_s22 = smov 0   ;;  %s894_s0 = inlined_call_operand.vmem [shape: bf16[2,8,256], index: 0, kind: input, shape index: {}, may-alias: {0,1}]   ;;  %s895_s1 = inlined_call_operand.vmem [shape: bf16[2,8,256], index: 1, kind: input, shape index: {}, may-alias: {0,1}]   ;;  %s896_s2 = inlined_call_operand.vmem [shape: bf16[8,40], index: 2, kind: input, shape index: {}]   ;;  %s897_s3 = inlined_call_operand.vmem [shape: f32[8,1], index: 3, kind: input, shape index: {}]   ;;  %s898_s4 = inlined_call_operand.vmem [shape: bf16[8,40], index: 4, kind: input, shape index: {}]   ;;  %s899_s5 = inlined_call_operand.vmem [shape: f32[8,1], index: 5, kind: input, shape index: {}]   ;;  %s900_s6 = inlined_call_operand.vmem [shape: bf16[2,8,128], index: 6, kind: output, shape index: {}]  }
   0x1   :  { %s797_s23 = smov 0  }
   0x2 LB: > { %s25_s24 = sadd.s32 1, %s744_s22  ;;  %p659_p0 = scmp.ge.s32.totalorder %s748_s23, 1  ;;  %s748_s23 = sphi %s797_s23, %s16_s23   ;;  %s744_s22 = sphi %s795_s22, %s902_s22   ;;  %s740_s21 = sphi %s793_s21, %s901_s21  }
   0x3   : > { %p26_p1 = scmp.ge.s32.totalorder %s25_s24, 2  ;;  %p250_p2 = scmp.lt.s32.totalorder %s748_s23, 3 }
   0x5   : > { %s904_s24 = smov (%p26_p1, %s25_s24), 0  ;;  %p251_p3 = pnand %p659_p0, %p250_p2 }
   0x6   : > { %p294_p4 = scmp.lt.s32.totalorder (!%p251_p3), %s740_s21, 1  ;;  %s750_s9 = smov (!%p251_p3), 126   ;;  %v752_v12 = vmov (!%p251_p3), 0   ;;  %v378_v13 = vld [vmem:[%s897_s3] sm:$0xff] (!%p251_p3)  ;;  %vm340_vm2 = vcmask (!%p251_p3), 1039360   ;;  %vm360_vm3 = vcmask (!%p251_p3), 1043456   ;;  %v437_v34 = vlaneseq (!%p251_p3) }
   0x7   : > { %254 = sbr.rel (%p251_p3) target bundleno = 728 (0x2d8), region = 44  ;;  %s751_s10 = smov (!%p251_p3), 127   ;;  %426 = vmatprep.mubr.bf16.mxu0 (!%p251_p3), %v752_v12  ;;  %720 = vset.pattern.permute.xlu0 (!%p251_p3), %v752_v12  ;;  %vm346_vm4 = vcmask (!%p251_p3), 1031168   ;;  %vm352_vm5 = vcmask (!%p251_p3), 1022976   ;;  %vm358_vm6 = vcmask (!%p251_p3), 1014784   ;;  %vm384_vm7 = vcmask (!%p251_p3), 326656  }
   0x8   : > { %s753_s11 = smov (!%p251_p3), 125   ;;  %s754_s12 = smov (!%p251_p3), 124   ;;  %v377_v31 = vld [vmem:[%s896_s2] sm:$0xf] (!%p251_p3)  ;;  %v755_v32 = vmov (!%p251_p3), 0.0|0.0   ;;  %v438_v35 = vand.u32 (!%p251_p3), 127, %v437_v34 }
   0x9   : > { %v466_v33 = vrot.slane (!%p251_p3), %v755_v32, 4  ;;  %v756_v38 = vmov (!%p251_p3), 0.0   ;;  %vm757_vm12 = vmmov (!%p251_p3), 0   ;;  %v496_v49 = vld [vmem:[%s899_s5] sm:$0xff] (!%p251_p3) }
   0xa   : > { %v441_v36 = vadd.s32 (!%p251_p3), 4294967294, %v438_v35  ;;  %678 = vmatprep.subr.bf16.mxu1 (!%p251_p3), %v756_v38  ;;  %684 = vmatprep.mubr.msk.bf16.mxu1 (!%p251_p3), %vm757_vm12, %v756_v38 }
   0xc   : > { %vm443_vm8 = vcmp.ge.s32.totalorder (!%p251_p3), %v441_v36, 0  ;;  %vm445_vm9 = vcmp.lt.s32.totalorder (!%p251_p3), %v441_v36, 16 }
   0xd   : > { %vm447_vm10 = vmand (!%p251_p3), %vm443_vm8, %vm445_vm9 }
   0xe   : > { %s906_s21 = smov (!%p294_p4, %s740_s21), 1 }
   0xf   : > { %s670_s25 = sshll.u32 %s906_s21, 3 }
  0x10   : > { %s301_s28 = scalar_lea.vmem %s894_s0, %s670_s25  ;;  %s672_s29 = sadd.s32 4, %s670_s25 }
  0x11   : > { %v320_v0 = vld [vmem:[%s301_s28] sm:$0xf]  ;;  %s310_s8 = scalar_lea.vmem %s895_s1, %s672_s29  ;;  %s664_s25 = sshll.u32 %s906_s21, 2 }
  0x12   : > { %v820_v1 = vunpack.c.l.bf16 %v320_v0  ;;  %v321_v2 = vld [vmem:[%s310_s8] sm:$0xf]  ;;  %s318_s28 = scalar_lea.vmem %s900_s6, %s664_s25 }
  0x13   : > { %v822_v3 = vunpack.c.l.bf16 %v321_v2  ;;  %v495_v2 = vld [vmem:[%s898_s4] sm:$0xf] }
  0x14   : > { %vm324_vm0 = vcmp.ge.f32.partialorder %v820_v1, 0.0  ;;  %v326_v4 = vmul.f32 0.1, %v820_v1 }
  0x15   : > { %vm325_vm1 = vcmp.ge.f32.partialorder %v822_v3, 0.0  ;;  %v327_v5 = vmul.f32 0.1, %v822_v3  ;;  %v721_v50 = vpack.i.bf16 %v822_v3, %v820_v1 }
  0x16   : > { %v328_v6 = vsel %vm324_vm0, %v820_v1, %v326_v4 }
  0x17   : > { %v330_v7 = vpack.c.bf16 %v328_v6, %v328_v6  ;;  %v329_v8 = vsel %vm325_vm1, %v822_v3, %v327_v5 }
  0x18   : > { %v331_v9 = vpack.c.bf16 %v329_v8, %v329_v8 }
  0x19   : > { %342 = vrot.lane.b32.xlu1 %v330_v7, %s750_s9  ;;  %v334_v10 = vrot.slane %v330_v7, 4 }
  0x1a   : > { %v335_v11 = vrot.slane %v331_v9, 4 }
  0x1b   : > { %336 = vrot.lane.b32.xlu0 %v334_v10, %s751_s10 }
  0x1d   : > { %344 = vrot.lane.b32.xlu1 %v331_v9, %s750_s9 }
  0x1f   : > { %338 = vrot.lane.b32.xlu0 %v335_v11, %s751_s10 }
  0x21   : > { %350 = vrot.lane.b32.xlu1 %v335_v11, %s753_s11 }
  0x23   : > { %348 = vrot.lane.b32.xlu0 %v334_v10, %s753_s11 }
  0x25   : > { %356 = vrot.lane.b32.xlu1 %v331_v9, %s754_s12 }
  0x27   : > { %354 = vrot.lane.b32.xlu0 %v330_v7, %s754_s12 }
  0x29   : > { %469 = vrot.lane.b32.xlu1 %v466_v33, %s751_s10 }
  0x2b   : > { %381 = vperm.xlu0 %720, %v378_v13  }
  0x2d   : > { %474 = vrot.lane.b32.xlu1 %v755_v32, %s750_s9 }
  0x8b   : > { %v343_v14 = vpop.permute.xlu1 %342 }
  0x8d   : > { %v337_v15 = vpop.permute.xlu0 %336 }
  0x8f   : > { %v345_v16 = vpop.permute.xlu1 %344 }
  0x90   : > { %v347_v24 = vsel %vm346_vm4, %v343_v14, %v345_v16 }
  0x91   : > { %v339_v17 = vpop.permute.xlu0 %338 }
  0x92   : > { %v341_v18 = vsel %vm340_vm2, %v337_v15, %v339_v17  ;;  %v367_v19 = vsel %vm360_vm3, %v331_v9, %v339_v17 }
  0x93   : > { %v351_v20 = vpop.permute.xlu1 %350  ;;  %394 = vmatprep.subr.bf16.mxu0 %v367_v19  ;;  %v363_v21 = vsel %vm360_vm3, %v330_v7, %v341_v18 }
  0x94   : > { %395 = vmatpush1.bf16.msra.mxu0 %v363_v21  ;;  %v375_v22 = vsel %vm360_vm3, %v345_v16, %v351_v20 }
  0x95   : > { %396 = vmatprep.subr.bf16.mxu0 %v375_v22  ;;  %v349_v23 = vpop.permute.xlu0 %348 }
  0x96   : > { %v353_v25 = vsel %vm352_vm5, %v349_v23, %v351_v20 }
  0x97   : > { %v371_v26 = vsel %vm360_vm3, %v347_v24, %v353_v25  ;;  %v357_v27 = vpop.permute.xlu1 %356 }
  0x98   : > { %397 = vmatpush1.bf16.msra.mxu0 %v371_v26 }
  0x99   : > { %v355_v28 = vpop.permute.xlu0 %354  ;;  %665 = vmatprep.subr.msk.bf16.mxu0 %vm360_vm3, %v357_v27 }
  0x9a   : > { %v359_v29 = vsel %vm358_vm6, %v355_v28, %v357_v27 }
  0x9b   : > { %v389_v30 = vsel %vm360_vm3, %v359_v29, 0  ;;  %v470_v51 = vpop.permute.xlu1 %469 }
  0x9c   : > { %399 = vmatpush1.bf16.msra.mxu0 %v389_v30 }
  0x9f   : > { %666 = vmatmul.mubr.msk.bf16.vlgmr.msra.gmra.mrb[0].mxu0 %vm384_vm7, %v377_v31  ;;  %v475_v52 = vpop.permute.xlu1 %474 }
  0xaa   : > { %v382_v37 = vpop.permute.xlu0 %381 }
 0x172   : > { %v428_v39 = vpop.f32.mrb[0].mxu0 }
 0x173   : > { %v429_v40 = vadd.f32 %v428_v39, %v382_v37  ;;  %v430_v41 = vpop.f32.mrb[1].mxu0 }
 0x174   : > { %v432_v42 = vpop.f32.mrb[2].mxu0 }
 0x175   : > { %v453_v43 = vsel %vm447_vm10, %v429_v40, 0.0  ;;  %v433_v44 = vpop.f32.mrb[3].mxu0 }
 0x176   : > { %vm455_vm11 = vcmp.ge.f32.partialorder %v453_v43, 0.0  ;;  %v457_v45 = vmul.f32 0.1, %v453_v43 }
 0x178   : > { %v459_v46 = vsel %vm455_vm11, %v453_v43, %v457_v45 }
 0x179   : > { %v461_v47 = vpack.c.bf16 %v459_v46, %v459_v46 }
 0x17b   : > { %472 = vrot.lane.b32.xlu0 %v461_v47, %s750_s9  ;;  %v465_v48 = vrot.slane %v461_v47, 4 }
 0x17d   : > { %467 = vrot.lane.b32.xlu1 %v465_v48, %s751_s10 }
 0x17f   : > { %477 = vrot.lane.b32.xlu0 %v465_v48, %s753_s11 }
 0x181   : > { %479 = vrot.lane.b32.xlu1 %v466_v33, %s753_s11 }
 0x183   : > { %482 = vrot.lane.b32.xlu0 %v461_v47, %s754_s12 }
 0x185   : > { %484 = vrot.lane.b32.xlu1 %v755_v32, %s754_s12 }
 0x187   : > { %499 = vperm.xlu0 %720, %v496_v49  }
 0x189   : > { %722 = vrot.lane.b32.xlu1 %v721_v50, %s754_s12 }
 0x1ed   : > { %v473_v53 = vpop.permute.xlu0 %472 }
 0x1ee   : > { %v476_v59 = vsel %vm346_vm4, %v473_v53, %v475_v52 }
 0x1ef   : > { %v468_v54 = vpop.permute.xlu1 %467 }
 0x1f0   : > { %v471_v55 = vsel %vm340_vm2, %v468_v54, %v470_v51 }
 0x1f1   : > { %v478_v56 = vpop.permute.xlu0 %477  ;;  %v489_v57 = vsel %vm360_vm3, %v461_v47, %v471_v55 }
 0x1f2   : > { %679 = vmatpush3.bf16.msra.mxu1 %v489_v57 }
 0x1f3   : > { %v480_v58 = vpop.permute.xlu1 %479  ;;  %680 = vmatprep.subr.bf16.mxu1 %v756_v38 }
 0x1f4   : > { %v481_v60 = vsel %vm352_vm5, %v478_v56, %v480_v58 }
 0x1f5   : > { %v493_v61 = vsel %vm360_vm3, %v476_v59, %v481_v60  ;;  %v483_v62 = vpop.permute.xlu0 %482 }
 0x1f6   : > { %681 = vmatpush3.bf16.msra.mxu1 %v493_v61 }
 0x1f7   : > { %v485_v63 = vpop.permute.xlu1 %484  ;;  %682 = vmatprep.subr.bf16.mxu1 %v756_v38 }
 0x1f8   : > { %v486_v0 = vsel %vm358_vm6, %v483_v62, %v485_v63 }
 0x1f9   : > { %v506_v1 = vsel %vm360_vm3, %v486_v0, 0 }
 0x1fa   : > { %683 = vmatpush3.bf16.msra.mxu1 %v506_v1 }
 0x1fb   : > { %v723_v3 = vpop.permute.xlu1 %722 }
 0x1fc   : > { %v725_v4 = vunpack.i.h.bf16 %v723_v3  ;;  %v724_v5 = vunpack.i.l.bf16 %v723_v3 }
 0x1fd   : > { %685 = vmatmul.mubr.msk.bf16.vlgmr.msra.gmra.mrb[0].mxu1 %vm384_vm7, %v495_v2 }
 0x1fe   : > { %v555_v8 = vsel %vm358_vm6, %v724_v5, %v725_v4 }
 0x206   : > { %v500_v6 = vpop.permute.xlu0 %499 }
 0x2d0   : > { %v542_v7 = vpop.f32.mrb[0].mxu1 }
 0x2d1   : > { %v543_v9 = vadd.f32 %v542_v7, %v500_v6  ;;  %v686_v10 = vpop.f32.mrb[1].mxu1 }
 0x2d2   : > { %v545_v11 = vpop.f32.mrb[2].mxu1 }
 0x2d3   : > { %v557_v12 = vadd.f32 %v555_v8, %v543_v9  ;;  %v687_v13 = vpop.f32.mrb[3].mxu1 }
 0x2d5   : > { %v558_v14 = vpack.c.bf16 %v557_v12, %v557_v12 }
 0x2d7   : > { %559 = vst [vmem:[%s318_s28] sm:$0xf] %v558_v14 }
 0x2d8 PF: > { %s16_s23 = sadd.s32 1, %s748_s23   ;;  %s901_s21 = smov %s744_s22 }
 0x2d9   : > { %p13_p5 = scmp.ge.s32.totalorder %s16_s23, 4   ;;  %s902_s22 = smov %s904_s24 }
 0x2db   :  { %15 = sbr.rel (!%p13_p5) target bundleno = 2 (0x2), region = 77 }

// kernel: generator_forward.17
= control target key start
LH: loop header
LB: loop body
LE: loop exit
PB: predicated region body
PF: predicated region fallthrough
CT: control target
= control target key end

     0   :  { %s804_s21 = smov 0   ;;  %s806_s22 = smov 0   ;;  %s885_s0 = inlined_call_operand.vmem [shape: bf16[2,8,256], index: 0, kind: input, shape index: {}, may-alias: {0,1}]   ;;  %s886_s1 = inlined_call_operand.vmem [shape: bf16[2,8,256], index: 1, kind: input, shape index: {}, may-alias: {0,1}]   ;;  %s887_s2 = inlined_call_operand.vmem [shape: bf16[8,40], index: 2, kind: input, shape index: {}]   ;;  %s888_s3 = inlined_call_operand.vmem [shape: f32[8,1], index: 3, kind: input, shape index: {}]   ;;  %s889_s4 = inlined_call_operand.vmem [shape: bf16[8,40], index: 4, kind: input, shape index: {}]   ;;  %s890_s5 = inlined_call_operand.vmem [shape: f32[8,1], index: 5, kind: input, shape index: {}]   ;;  %s891_s6 = inlined_call_operand.vmem [shape: bf16[2,8,128], index: 6, kind: output, shape index: {}]  }
   0x1   :  { %s808_s23 = smov 0  }
   0x2 LB: > { %s25_s24 = sadd.s32 1, %s751_s22  ;;  %p662_p0 = scmp.ge.s32.totalorder %s755_s23, 1  ;;  %s755_s23 = sphi %s808_s23, %s16_s23   ;;  %s751_s22 = sphi %s806_s22, %s893_s22   ;;  %s747_s21 = sphi %s804_s21, %s892_s21  }
   0x3   : > { %p26_p1 = scmp.ge.s32.totalorder %s25_s24, 2  ;;  %p250_p2 = scmp.lt.s32.totalorder %s755_s23, 3 }
   0x5   : > { %s895_s24 = smov (%p26_p1, %s25_s24), 0  ;;  %p251_p3 = pnand %p662_p0, %p250_p2 }
   0x6   : > { %p294_p4 = scmp.lt.s32.totalorder (!%p251_p3), %s747_s21, 1  ;;  %s757_s9 = smov (!%p251_p3), 122   ;;  %v759_v12 = vmov (!%p251_p3), 0   ;;  %v378_v13 = vld [vmem:[%s888_s3] sm:$0xff] (!%p251_p3)  ;;  %vm340_vm2 = vcmask (!%p251_p3), 1022976   ;;  %vm360_vm3 = vcmask (!%p251_p3), 1043456   ;;  %v437_v34 = vlaneseq (!%p251_p3) }
   0x7   : > { %254 = sbr.rel (%p251_p3) target bundleno = 728 (0x2d8), region = 44  ;;  %s758_s10 = smov (!%p251_p3), 125   ;;  %426 = vmatprep.mubr.bf16.mxu0 (!%p251_p3), %v759_v12  ;;  %727 = vset.pattern.permute.xlu0 (!%p251_p3), %v759_v12  ;;  %vm346_vm4 = vcmask (!%p251_p3), 998400   ;;  %vm352_vm5 = vcmask (!%p251_p3), 973824   ;;  %vm358_vm6 = vcmask (!%p251_p3), 949248   ;;  %vm384_vm7 = vcmask (!%p251_p3), 326656  }
   0x8   : > { %s760_s11 = smov (!%p251_p3), 119   ;;  %s761_s12 = smov (!%p251_p3), 116   ;;  %v377_v31 = vld [vmem:[%s887_s2] sm:$0xf] (!%p251_p3)  ;;  %v762_v32 = vmov (!%p251_p3), 0.0|0.0   ;;  %v438_v35 = vand.u32 (!%p251_p3), 127, %v437_v34 }
   0x9   : > { %v466_v33 = vrot.slane (!%p251_p3), %v762_v32, 4  ;;  %s763_s17 = smov (!%p251_p3), 127   ;;  %s764_s18 = smov (!%p251_p3), 126   ;;  %v765_v38 = vmov (!%p251_p3), 0.0   ;;  %vm766_vm12 = vmmov (!%p251_p3), 0   ;;  %v499_v49 = vld [vmem:[%s890_s5] sm:$0xff] (!%p251_p3) }
   0xa   : > { %v441_v36 = vadd.s32 (!%p251_p3), 4294967294, %v438_v35  ;;  %681 = vmatprep.subr.bf16.mxu1 (!%p251_p3), %v765_v38  ;;  %687 = vmatprep.mubr.msk.bf16.mxu1 (!%p251_p3), %vm766_vm12, %v765_v38  ;;  %s767_s19 = smov (!%p251_p3), 124   ;;  %s768_s26 = smov (!%p251_p3), 120   ;;  %vm471_vm13 = vcmask (!%p251_p3), 1039360   ;;  %vm477_vm14 = vcmask (!%p251_p3), 1031168   ;;  %vm488_vm15 = vcmask (!%p251_p3), 1014784  }
   0xc   : > { %vm443_vm8 = vcmp.ge.s32.totalorder (!%p251_p3), %v441_v36, 0  ;;  %vm445_vm9 = vcmp.lt.s32.totalorder (!%p251_p3), %v441_v36, 16 }
   0xd   : > { %vm447_vm10 = vmand (!%p251_p3), %vm443_vm8, %vm445_vm9 }
   0xe   : > { %s897_s21 = smov (!%p294_p4, %s747_s21), 1 }
   0xf   : > { %s673_s25 = sshll.u32 %s897_s21, 3 }
  0x10   : > { %s301_s28 = scalar_lea.vmem %s885_s0, %s673_s25  ;;  %s675_s29 = sadd.s32 4, %s673_s25 }
  0x11   : > { %v320_v0 = vld [vmem:[%s301_s28] sm:$0xf]  ;;  %s310_s8 = scalar_lea.vmem %s886_s1, %s675_s29  ;;  %s667_s29 = sshll.u32 %s897_s21, 2 }
  0x12   : > { %v831_v1 = vunpack.c.l.bf16 %v320_v0  ;;  %v321_v2 = vld [vmem:[%s310_s8] sm:$0xf]  ;;  %s318_s8 = scalar_lea.vmem %s891_s6, %s667_s29 }
  0x13   : > { %v833_v3 = vunpack.c.l.bf16 %v321_v2  ;;  %v498_v2 = vld [vmem:[%s889_s4] sm:$0xf] }
  0x14   : > { %vm324_vm0 = vcmp.ge.f32.partialorder %v831_v1, 0.0  ;;  %v326_v4 = vmul.f32 0.1, %v831_v1 }
  0x15   : > { %vm325_vm1 = vcmp.ge.f32.partialorder %v833_v3, 0.0  ;;  %v327_v5 = vmul.f32 0.1, %v833_v3  ;;  %v728_v50 = vpack.i.bf16 %v833_v3, %v831_v1 }
  0x16   : > { %v328_v6 = vsel %vm324_vm0, %v831_v1, %v326_v4  ;;  %vm557_vm0 = vcmask 982016  }
  0x17   : > { %v330_v7 = vpack.c.bf16 %v328_v6, %v328_v6  ;;  %v329_v8 = vsel %vm325_vm1, %v833_v3, %v327_v5 }
  0x18   : > { %v331_v9 = vpack.c.bf16 %v329_v8, %v329_v8 }
  0x19   : > { %342 = vrot.lane.b32.xlu1 %v330_v7, %s757_s9  ;;  %v334_v10 = vrot.slane %v330_v7, 4 }
  0x1a   : > { %v335_v11 = vrot.slane %v331_v9, 4 }
  0x1b   : > { %336 = vrot.lane.b32.xlu0 %v334_v10, %s758_s10 }
  0x1d   : > { %344 = vrot.lane.b32.xlu1 %v331_v9, %s757_s9 }
  0x1f   : > { %338 = vrot.lane.b32.xlu0 %v335_v11, %s758_s10 }
  0x21   : > { %350 = vrot.lane.b32.xlu1 %v335_v11, %s760_s11 }
  0x23   : > { %348 = vrot.lane.b32.xlu0 %v334_v10, %s760_s11 }
  0x25   : > { %356 = vrot.lane.b32.xlu1 %v331_v9, %s761_s12 }
  0x27   : > { %354 = vrot.lane.b32.xlu0 %v330_v7, %s761_s12 }
  0x29   : > { %469 = vrot.lane.b32.xlu1 %v466_v33, %s763_s17 }
  0x2b   : > { %381 = vperm.xlu0 %727, %v378_v13  }
  0x2d   : > { %475 = vrot.lane.b32.xlu1 %v762_v32, %s764_s18 }
  0x8b   : > { %v343_v14 = vpop.permute.xlu1 %342 }
  0x8d   : > { %v337_v15 = vpop.permute.xlu0 %336 }
  0x8f   : > { %v345_v16 = vpop.permute.xlu1 %344 }
  0x90   : > { %v347_v24 = vsel %vm346_vm4, %v343_v14, %v345_v16 }
  0x91   : > { %v339_v17 = vpop.permute.xlu0 %338 }
  0x92   : > { %v341_v18 = vsel %vm340_vm2, %v337_v15, %v339_v17  ;;  %v367_v19 = vsel %vm360_vm3, %v331_v9, %v339_v17 }
  0x93   : > { %v351_v20 = vpop.permute.xlu1 %350  ;;  %394 = vmatprep.subr.bf16.mxu0 %v367_v19  ;;  %v363_v21 = vsel %vm360_vm3, %v330_v7, %v341_v18 }
  0x94   : > { %395 = vmatpush1.bf16.msra.mxu0 %v363_v21  ;;  %v375_v22 = vsel %vm360_vm3, %v345_v16, %v351_v20 }
  0x95   : > { %396 = vmatprep.subr.bf16.mxu0 %v375_v22  ;;  %v349_v23 = vpop.permute.xlu0 %348 }
  0x96   : > { %v353_v25 = vsel %vm352_vm5, %v349_v23, %v351_v20 }
  0x97   : > { %v371_v26 = vsel %vm360_vm3, %v347_v24, %v353_v25  ;;  %v357_v27 = vpop.permute.xlu1 %356 }
  0x98   : > { %397 = vmatpush1.bf16.msra.mxu0 %v371_v26 }
  0x99   : > { %v355_v28 = vpop.permute.xlu0 %354  ;;  %668 = vmatprep.subr.msk.bf16.mxu0 %vm360_vm3, %v357_v27 }
  0x9a   : > { %v359_v29 = vsel %vm358_vm6, %v355_v28, %v357_v27 }
  0x9b   : > { %v389_v30 = vsel %vm360_vm3, %v359_v29, 0  ;;  %v470_v51 = vpop.permute.xlu1 %469 }
  0x9c   : > { %399 = vmatpush1.bf16.msra.mxu0 %v389_v30 }
  0x9f   : > { %669 = vmatmul.mubr.msk.bf16.vlgmr.msra.gmra.mrb[0].mxu0 %vm384_vm7, %v377_v31  ;;  %v476_v52 = vpop.permute.xlu1 %475 }
  0xaa   : > { %v382_v37 = vpop.permute.xlu0 %381 }
 0x172   : > { %v428_v39 = vpop.f32.mrb[0].mxu0 }
 0x173   : > { %v429_v40 = vadd.f32 %v428_v39, %v382_v37  ;;  %v430_v41 = vpop.f32.mrb[1].mxu0 }
 0x174   : > { %v432_v42 = vpop.f32.mrb[2].mxu0 }
 0x175   : > { %v453_v43 = vsel %vm447_vm10, %v429_v40, 0.0  ;;  %v433_v44 = vpop.f32.mrb[3].mxu0 }
 0x176   : > { %vm455_vm11 = vcmp.ge.f32.partialorder %v453_v43, 0.0  ;;  %v457_v45 = vmul.f32 0.1, %v453_v43 }
 0x178   : > { %v459_v46 = vsel %vm455_vm11, %v453_v43, %v457_v45 }
 0x179   : > { %v461_v47 = vpack.c.bf16 %v459_v46, %v459_v46 }
 0x17b   : > { %473 = vrot.lane.b32.xlu0 %v461_v47, %s764_s18  ;;  %v465_v48 = vrot.slane %v461_v47, 4 }
 0x17d   : > { %467 = vrot.lane.b32.xlu1 %v465_v48, %s763_s17 }
 0x17f   : > { %479 = vrot.lane.b32.xlu0 %v465_v48, %s758_s10 }
 0x181   : > { %481 = vrot.lane.b32.xlu1 %v466_v33, %s758_s10 }
 0x183   : > { %484 = vrot.lane.b32.xlu0 %v461_v47, %s767_s19 }
 0x185   : > { %486 = vrot.lane.b32.xlu1 %v762_v32, %s767_s19 }
 0x187   : > { %502 = vperm.xlu0 %727, %v499_v49  }
 0x189   : > { %729 = vrot.lane.b32.xlu1 %v728_v50, %s768_s26 }
 0x1ed   : > { %v474_v53 = vpop.permute.xlu0 %473 }
 0x1ee   : > { %v478_v59 = vsel %vm477_vm14, %v474_v53, %v476_v52 }
 0x1ef   : > { %v468_v54 = vpop.permute.xlu1 %467 }
 0x1f0   : > { %v472_v55 = vsel %vm471_vm13, %v468_v54, %v470_v51 }
 0x1f1   : > { %v480_v56 = vpop.permute.xlu0 %479  ;;  %v492_v57 = vsel %vm360_vm3, %v461_v47, %v472_v55 }
 0x1f2   : > { %682 = vmatpush3.bf16.msra.mxu1 %v492_v57 }
 0x1f3   : > { %v482_v58 = vpop.permute.xlu1 %481  ;;  %683 = vmatprep.subr.bf16.mxu1 %v765_v38 }
 0x1f4   : > { %v483_v60 = vsel %vm340_vm2, %v480_v56, %v482_v58 }
 0x1f5   : > { %v496_v61 = vsel %vm360_vm3, %v478_v59, %v483_v60  ;;  %v485_v62 = vpop.permute.xlu0 %484 }
 0x1f6   : > { %684 = vmatpush3.bf16.msra.mxu1 %v496_v61 }
 0x1f7   : > { %v487_v63 = vpop.permute.xlu1 %486  ;;  %685 = vmatprep.subr.bf16.mxu1 %v765_v38 }
 0x1f8   : > { %v489_v0 = vsel %vm488_vm15, %v485_v62, %v487_v63 }
 0x1f9   : > { %v509_v1 = vsel %vm360_vm3, %v489_v0, 0 }
 0x1fa   : > { %686 = vmatpush3.bf16.msra.mxu1 %v509_v1 }
 0x1fb   : > { %v730_v3 = vpop.permute.xlu1 %729 }
 0x1fc   : > { %v732_v4 = vunpack.i.h.bf16 %v730_v3  ;;  %v731_v5 = vunpack.i.l.bf16 %v730_v3 }
 0x1fd   : > { %688 = vmatmul.mubr.msk.bf16.vlgmr.msra.gmra.mrb[0].mxu1 %vm384_vm7, %v498_v2 }
 0x1fe   : > { %v558_v8 = vsel %vm557_vm0, %v731_v5, %v732_v4 }
 0x206   : > { %v503_v6 = vpop.permute.xlu0 %502 }
 0x2d0   : > { %v545_v7 = vpop.f32.mrb[0].mxu1 }
 0x2d1   : > { %v546_v9 = vadd.f32 %v545_v7, %v503_v6  ;;  %v689_v10 = vpop.f32.mrb[1].mxu1 }
 0x2d2   : > { %v548_v11 = vpop.f32.mrb[2].mxu1 }
 0x2d3   : > { %v560_v12 = vadd.f32 %v558_v8, %v546_v9  ;;  %v690_v13 = vpop.f32.mrb[3].mxu1 }
 0x2d5   : > { %v561_v14 = vpack.c.bf16 %v560_v12, %v560_v12 }
 0x2d7   : > { %562 = vst [vmem:[%s318_s8] sm:$0xf] %v561_v14 }
 0x2d8 PF: > { %s16_s23 = sadd.s32 1, %s755_s23   ;;  %s892_s21 = smov %s751_s22 }
 0x2d9   : > { %p13_p5 = scmp.ge.s32.totalorder %s16_s23, 4   ;;  %s893_s22 = smov %s895_s24 }
 0x2db   :  { %15 = sbr.rel (!%p13_p5) target bundleno = 2 (0x2), region = 77 }

// kernel: generator_forward.18
= control target key start
LH: loop header
LB: loop body
LE: loop exit
PB: predicated region body
PF: predicated region fallthrough
CT: control target
= control target key end

     0   :  { %s539_s15 = smov 0   ;;  %s541_s16 = smov 0   ;;  %s585_s0 = inlined_call_operand.vmem [shape: bf16[2,8,256], index: 0, kind: input, shape index: {}, may-alias: {0,1}]   ;;  %s586_s1 = inlined_call_operand.vmem [shape: bf16[2,8,256], index: 1, kind: input, shape index: {}, may-alias: {0,1}]   ;;  %s587_s2 = inlined_call_operand.vmem [shape: bf16[8,16], index: 2, kind: input, shape index: {}]   ;;  %s588_s3 = inlined_call_operand.vmem [shape: f32[8,1], index: 3, kind: input, shape index: {}]   ;;  %s589_s4 = inlined_call_operand.vmem [shape: bf16[2,8,128], index: 4, kind: output, shape index: {}]  }
   0x1   :  { %s543_s17 = smov 0  }
   0x2 LB: > { %s23_s18 = sadd.s32 1, %s504_s16  ;;  %p435_p0 = scmp.ge.s32.totalorder %s508_s17, 1  ;;  %s508_s17 = sphi %s543_s17, %s14_s17   ;;  %s504_s16 = sphi %s541_s16, %s591_s16   ;;  %s500_s15 = sphi %s539_s15, %s590_s15  }
   0x3   : > { %p24_p1 = scmp.ge.s32.totalorder %s23_s18, 2  ;;  %p200_p2 = scmp.lt.s32.totalorder %s508_s17, 3 }
   0x5   : > { %s593_s18 = smov (%p24_p1, %s23_s18), 0  ;;  %p201_p3 = pnand %p435_p0, %p200_p2 }
   0x6   : > { %p240_p4 = scmp.lt.s32.totalorder (!%p201_p3), %s500_s15, 1  ;;  %v510_v0 = vmov (!%p201_p3), 0.0   ;;  %vm511_vm0 = vmmov (!%p201_p3), 0   ;;  %v284_v1 = vld [vmem:[%s588_s3] sm:$0xff] (!%p201_p3)  ;;  %v512_v3 = vmov (!%p201_p3), 0   ;;  %s513_s29 = smov (!%p201_p3), 127  }
   0x7   : > { %204 = sbr.rel (%p201_p3) target bundleno = 361 (0x169), region = 36  ;;  %450 = vmatprep.subr.bf16.mxu0 (!%p201_p3), %v510_v0  ;;  %452 = vmatprep.mubr.msk.bf16.mxu0 (!%p201_p3), %vm511_vm0, %v510_v0  ;;  %vm276_vm1 = vcmask (!%p201_p3), 1039360   ;;  %vm278_vm2 = vcmask (!%p201_p3), 1043456   ;;  %v283_v11 = vld [vmem:[%s587_s2] sm:$0xf] (!%p201_p3)  ;;  %vm290_vm3 = vcmask (!%p201_p3), 130048  }
   0x8   : > { %484 = vset.pattern.permute.xlu1 (!%p201_p3), %v512_v3  ;;  %485 = vset.pattern.permute.xlu0 (!%p201_p3), %v512_v3 }
   0x9   : > { %287 = vperm.xlu1 (!%p201_p3), %484, %v284_v1  }
   0xe   : > { %s595_s15 = smov (!%p240_p4, %s500_s15), 1 }
   0xf   : > { %s444_s19 = sshll.u32 %s595_s15, 3  ;;  %s440_s6 = sshll.u32 %s595_s15, 2 }
  0x10   : > { %s247_s22 = scalar_lea.vmem %s585_s0, %s444_s19  ;;  %s446_s23 = sadd.s32 4, %s444_s19 }
  0x11   : > { %v266_v2 = vld [vmem:[%s247_s22] sm:$0xf]  ;;  %s256_s28 = scalar_lea.vmem %s586_s1, %s446_s23  ;;  %s264_s9 = scalar_lea.vmem %s589_s4, %s440_s6 }
  0x12   : > { %v270_v4 = vrot.slane %v266_v2, 4  ;;  %v267_v5 = vld [vmem:[%s256_s28] sm:$0xf] }
  0x13   : > { %v271_v6 = vrot.slane %v267_v5, 4 }
  0x14   : > { %272 = vrot.lane.b32.xlu0 %v270_v4, %s513_s29 }
  0x18   : > { %274 = vrot.lane.b32.xlu0 %v271_v6, %s513_s29 }
  0x86   : > { %v273_v7 = vpop.permute.xlu0 %272 }
  0x88   : > { %v288_v12 = vpop.permute.xlu1 %287 }
  0x8a   : > { %v275_v8 = vpop.permute.xlu0 %274 }
  0x8b   : > { %v277_v9 = vsel %vm276_vm1, %v273_v7, %v275_v8 }
  0x8c   : > { %v281_v10 = vsel %vm278_vm2, %v266_v2, %v277_v9 }
  0x8d   : > { %451 = vmatpush3.bf16.msra.mxu0 %v281_v10 }
  0x90   : > { %453 = vmatmul.mubr.msk.bf16.vlgmr.msra.gmra.mrb[0].mxu0 %vm290_vm3, %v283_v11 }
 0x163   : > { %v328_v13 = vpop.f32.mrb[0].mxu0 }
 0x164   : > { %v329_v14 = vadd.f32 %v328_v13, %v288_v12  ;;  %v454_v15 = vpop.f32.mrb[1].mxu0 }
 0x165   : > { %v331_v16 = vpop.f32.mrb[2].mxu0 }
 0x166   : > { %v334_v17 = vpack.c.bf16 %v329_v14, %v329_v14  ;;  %v455_v18 = vpop.f32.mrb[3].mxu0 }
 0x168   : > { %335 = vst [vmem:[%s264_s9] sm:$0xf] %v334_v17 }
 0x169 PF: > { %s14_s17 = sadd.s32 1, %s508_s17   ;;  %s590_s15 = smov %s504_s16 }
 0x16a   : > { %p11_p5 = scmp.ge.s32.totalorder %s14_s17, 4   ;;  %s591_s16 = smov %s593_s18 }
 0x16c   :  { %13 = sbr.rel (!%p11_p5) target bundleno = 2 (0x2), region = 69 }

// kernel: generator_forward.21
= control target key start
LH: loop header
LB: loop body
LE: loop exit
PB: predicated region body
PF: predicated region fallthrough
CT: control target
= control target key end

     0   :  { %s800_s21 = smov 0   ;;  %s802_s22 = smov 0   ;;  %s904_s0 = inlined_call_operand.vmem [shape: bf16[2,4,256], index: 0, kind: input, shape index: {}, may-alias: {0,1}]   ;;  %s905_s1 = inlined_call_operand.vmem [shape: bf16[2,4,256], index: 1, kind: input, shape index: {}, may-alias: {0,1}]   ;;  %s906_s2 = inlined_call_operand.vmem [shape: bf16[4,20], index: 2, kind: input, shape index: {}]   ;;  %s907_s3 = inlined_call_operand.vmem [shape: f32[4,1], index: 3, kind: input, shape index: {}]   ;;  %s908_s4 = inlined_call_operand.vmem [shape: bf16[4,20], index: 4, kind: input, shape index: {}]   ;;  %s909_s5 = inlined_call_operand.vmem [shape: f32[4,1], index: 5, kind: input, shape index: {}]   ;;  %s910_s6 = inlined_call_operand.vmem [shape: bf16[2,4,128], index: 6, kind: output, shape index: {}]  }
   0x1   :  { %s804_s23 = smov 0  }
   0x2 LB: > { %s25_s24 = sadd.s32 1, %s751_s22  ;;  %p669_p0 = scmp.ge.s32.totalorder %s755_s23, 1  ;;  %s755_s23 = sphi %s804_s23, %s16_s23   ;;  %s751_s22 = sphi %s802_s22, %s912_s22   ;;  %s747_s21 = sphi %s800_s21, %s911_s21  }
   0x3   : > { %p26_p1 = scmp.ge.s32.totalorder %s25_s24, 2  ;;  %p250_p2 = scmp.lt.s32.totalorder %s755_s23, 3 }
   0x5   : > { %s914_s24 = smov (%p26_p1, %s25_s24), 0  ;;  %p251_p3 = pnand %p669_p0, %p250_p2 }
   0x6   : > { %p294_p4 = scmp.lt.s32.totalorder (!%p251_p3), %s747_s21, 1  ;;  %s757_s9 = smov (!%p251_p3), 126   ;;  %v759_v14 = vmov (!%p251_p3), 0   ;;  %v384_v17 = vld [vmem:[%s907_s3] sm:$0xf] (!%p251_p3)  ;;  %vm340_vm2 = vcmask (!%p251_p3), 1039360   ;;  %v443_v41 = vlaneseq (!%p251_p3) }
   0x7   : > { %254 = sbr.rel (%p251_p3) target bundleno = 728 (0x2d8), region = 44  ;;  %s758_s10 = smov (!%p251_p3), 127   ;;  %432 = vmatprep.mubr.bf16.mxu0 (!%p251_p3), %v759_v14  ;;  %727 = vset.pattern.permute.xlu0 (!%p251_p3), %v759_v14  ;;  %vm364_vm3 = vcmask (!%p251_p3), 1041408   ;;  %vm348_vm4 = vcmask (!%p251_p3), 1031168   ;;  %vm371_vm5 = vcmask (!%p251_p3), 1043456   ;;  %vm356_vm6 = vcmask (!%p251_p3), 1022976  }
   0x8   : > { %s760_s11 = smov (!%p251_p3), 125   ;;  %s761_s12 = smov (!%p251_p3), 124   ;;  %vm376_vm7 = vcmask (!%p251_p3), 1045504   ;;  %vm362_vm8 = vcmask (!%p251_p3), 1014784   ;;  %v383_v37 = vld [vmem:[%s906_s2] sm:$0x3] (!%p251_p3) }
   0x9   : > { %vm390_vm9 = vcmask (!%p251_p3), 162816   ;;  %v762_v38 = vmov (!%p251_p3), 0.0|0.0   ;;  %v444_v42 = vand.u32 (!%p251_p3), 127, %v443_v41  ;;  %v763_v51 = vmov (!%p251_p3), 0.0   ;;  %v506_v59 = vld [vmem:[%s909_s5] sm:$0xf] (!%p251_p3) }
   0xa   : > { %v472_v39 = vrot.slane (!%p251_p3), %v762_v38, 6  ;;  %v479_v40 = vrot.slane (!%p251_p3), %v762_v38, 4  ;;  %687 = vmatprep.subr.bf16.mxu1 (!%p251_p3), %v763_v51  ;;  %vm764_vm14 = vmmov (!%p251_p3), 0   ;;  %v486_v57 = vrot.slane (!%p251_p3), %v762_v38, 2 }
   0xb   : > { %v447_v43 = vadd.s32 (!%p251_p3), 4294967294, %v444_v42  ;;  %691 = vmatprep.mubr.msk.bf16.mxu1 (!%p251_p3), %vm764_vm14, %v763_v51 }
   0xd   : > { %vm449_vm10 = vcmp.ge.s32.totalorder (!%p251_p3), %v447_v43, 0  ;;  %vm451_vm11 = vcmp.lt.s32.totalorder (!%p251_p3), %v447_v43, 32 }
   0xe   : > { %s916_s21 = smov (!%p294_p4, %s747_s21), 1  ;;  %vm453_vm12 = vmand %vm449_vm10, %vm451_vm11 }
   0xf   : > { %s680_s25 = sshll.u32 %s916_s21, 2 }
  0x10   : > { %s301_s28 = scalar_lea.vmem %s904_s0, %s680_s25  ;;  %s682_s29 = sadd.s32 2, %s680_s25 }
  0x11   : > { %s310_s8 = scalar_lea.vmem %s905_s1, %s682_s29  ;;  %v320_v0 = vld [vmem:[%s301_s28] sm:$0x3]  ;;  %s674_s25 = sshll.u32 %s916_s21, 1 }
  0x12   : > { %v827_v1 = vunpack.c.l.bf16 %v320_v0  ;;  %v321_v2 = vld [vmem:[%s310_s8] sm:$0x3]  ;;  %s318_s28 = scalar_lea.vmem %s910_s6, %s674_s25 }
  0x13   : > { %v829_v3 = vunpack.c.l.bf16 %v321_v2 }
  0x14   : > { %vm324_vm0 = vcmp.ge.f32.partialorder %v827_v1, 0.0  ;;  %v326_v4 = vmul.f32 0.1, %v827_v1 }
  0x15   : > { %vm325_vm1 = vcmp.ge.f32.partialorder %v829_v3, 0.0  ;;  %v327_v5 = vmul.f32 0.1, %v829_v3  ;;  %v728_v60 = vpack.i.bf16 %v829_v3, %v827_v1 }
  0x16   : > { %v328_v6 = vsel %vm324_vm0, %v827_v1, %v326_v4 }
  0x17   : > { %v330_v7 = vpack.c.bf16 %v328_v6, %v328_v6  ;;  %v329_v8 = vsel %vm325_vm1, %v829_v3, %v327_v5 }
  0x18   : > { %v331_v9 = vpack.c.bf16 %v329_v8, %v329_v8 }
  0x19   : > { %v342_v10 = vrot.slane %v330_v7, 4  ;;  %v334_v11 = vrot.slane %v330_v7, 6  ;;  %v350_v16 = vrot.slane %v330_v7, 2 }
  0x1a   : > { %v343_v12 = vrot.slane %v331_v9, 4  ;;  %v335_v13 = vrot.slane %v331_v9, 6  ;;  %v351_v15 = vrot.slane %v331_v9, 2 }
  0x1b   : > { %344 = vrot.lane.b32.xlu1 %v342_v10, %s757_s9  ;;  %336 = vrot.lane.b32.xlu0 %v334_v11, %s758_s10 }
  0x1f   : > { %346 = vrot.lane.b32.xlu1 %v343_v12, %s757_s9  ;;  %338 = vrot.lane.b32.xlu0 %v335_v13, %s758_s10  ;;  %v505_v13 = vld [vmem:[%s908_s4] sm:$0x3] }
  0x23   : > { %354 = vrot.lane.b32.xlu1 %v351_v15, %s760_s11  ;;  %352 = vrot.lane.b32.xlu0 %v350_v16, %s760_s11 }
  0x27   : > { %360 = vrot.lane.b32.xlu1 %v331_v9, %s761_s12  ;;  %358 = vrot.lane.b32.xlu0 %v330_v7, %s761_s12 }
  0x2b   : > { %387 = vperm.xlu0 %727, %v384_v17   ;;  %475 = vrot.lane.b32.xlu1 %v472_v39, %s758_s10 }
  0x2f   : > { %482 = vrot.lane.b32.xlu1 %v479_v40, %s757_s9 }
  0x8d   : > { %v345_v18 = vpop.permute.xlu1 %344  ;;  %v337_v19 = vpop.permute.xlu0 %336 }
  0x91   : > { %v347_v20 = vpop.permute.xlu1 %346  ;;  %v339_v21 = vpop.permute.xlu0 %338 }
  0x92   : > { %v341_v22 = vsel %vm340_vm2, %v337_v19, %v339_v21  ;;  %v370_v23 = vsel %vm364_vm3, %v331_v9, %v339_v21  ;;  %v349_v24 = vsel %vm348_vm4, %v345_v18, %v347_v20 }
  0x93   : > { %v367_v25 = vsel %vm364_vm3, %v330_v7, %v341_v22  ;;  %v375_v28 = vsel %vm371_vm5, %v370_v23, %v347_v20 }
  0x94   : > { %v373_v31 = vsel %vm371_vm5, %v367_v25, %v349_v24 }
  0x95   : > { %v355_v26 = vpop.permute.xlu1 %354  ;;  %v353_v27 = vpop.permute.xlu0 %352 }
  0x96   : > { %v357_v29 = vsel %vm356_vm6, %v353_v27, %v355_v26  ;;  %v381_v30 = vsel %vm376_vm7, %v375_v28, %v355_v26 }
  0x97   : > { %400 = vmatprep.subr.bf16.mxu0 %v381_v30  ;;  %v378_v32 = vsel %vm376_vm7, %v373_v31, %v357_v29 }
  0x98   : > { %401 = vmatpush1.bf16.msra.mxu0 %v378_v32 }
  0x99   : > { %v361_v33 = vpop.permute.xlu1 %360  ;;  %v359_v34 = vpop.permute.xlu0 %358 }
  0x9a   : > { %v363_v35 = vsel %vm362_vm8, %v359_v34, %v361_v33  ;;  %675 = vmatprep.subr.msk.bf16.mxu0 %vm364_vm3, %v361_v33 }
  0x9b   : > { %v395_v36 = vsel %vm364_vm3, %v363_v35, 0 }
  0x9c   : > { %403 = vmatpush1.bf16.msra.mxu0 %v395_v36 }
  0x9d   : > { %v476_v61 = vpop.permute.xlu1 %475 }
  0x9f   : > { %676 = vmatmul.mubr.msk.bf16.vlgmr.msra.gmra.mrb[0].mxu0 %vm390_vm9, %v383_v37 }
  0xa1   : > { %v483_v62 = vpop.permute.xlu1 %482 }
  0xaa   : > { %v388_v44 = vpop.permute.xlu0 %387 }
 0x172   : > { %v434_v45 = vpop.f32.mrb[0].mxu0 }
 0x173   : > { %v435_v46 = vadd.f32 %v434_v45, %v388_v44  ;;  %v436_v47 = vpop.f32.mrb[1].mxu0 }
 0x174   : > { %v438_v48 = vpop.f32.mrb[2].mxu0 }
 0x175   : > { %v459_v49 = vsel %vm453_vm12, %v435_v46, 0.0  ;;  %v439_v50 = vpop.f32.mrb[3].mxu0 }
 0x176   : > { %vm461_vm13 = vcmp.ge.f32.partialorder %v459_v49, 0.0  ;;  %v463_v52 = vmul.f32 0.1, %v459_v49 }
 0x178   : > { %v465_v53 = vsel %vm461_vm13, %v459_v49, %v463_v52 }
 0x179   : > { %v467_v54 = vpack.c.bf16 %v465_v53, %v465_v53 }
 0x17b   : > { %v478_v55 = vrot.slane %v467_v54, 4  ;;  %v471_v56 = vrot.slane %v467_v54, 6  ;;  %v485_v58 = vrot.slane %v467_v54, 2 }
 0x17d   : > { %480 = vrot.lane.b32.xlu0 %v478_v55, %s757_s9  ;;  %473 = vrot.lane.b32.xlu1 %v471_v56, %s758_s10 }
 0x181   : > { %487 = vrot.lane.b32.xlu0 %v485_v58, %s760_s11  ;;  %489 = vrot.lane.b32.xlu1 %v486_v57, %s760_s11 }
 0x185   : > { %492 = vrot.lane.b32.xlu0 %v467_v54, %s761_s12  ;;  %494 = vrot.lane.b32.xlu1 %v762_v38, %s761_s12 }
 0x189   : > { %509 = vperm.xlu0 %727, %v506_v59   ;;  %729 = vrot.lane.b32.xlu1 %v728_v60, %s761_s12 }
 0x1ef   : > { %v481_v63 = vpop.permute.xlu0 %480  ;;  %v474_v0 = vpop.permute.xlu1 %473 }
 0x1f0   : > { %v477_v2 = vsel %vm340_vm2, %v474_v0, %v476_v61  ;;  %v484_v4 = vsel %vm348_vm4, %v481_v63, %v483_v62 }
 0x1f1   : > { %v499_v5 = vsel %vm364_vm3, %v467_v54, %v477_v2 }
 0x1f2   : > { %v501_v9 = vsel %vm371_vm5, %v499_v5, %v484_v4 }
 0x1f3   : > { %v488_v6 = vpop.permute.xlu0 %487  ;;  %v490_v7 = vpop.permute.xlu1 %489 }
 0x1f4   : > { %v491_v8 = vsel %vm356_vm6, %v488_v6, %v490_v7 }
 0x1f5   : > { %v503_v1 = vsel %vm376_vm7, %v501_v9, %v491_v8 }
 0x1f6   : > { %688 = vmatpush3.bf16.msra.mxu1 %v503_v1 }
 0x1f7   : > { %v493_v3 = vpop.permute.xlu0 %492  ;;  %v495_v10 = vpop.permute.xlu1 %494  ;;  %689 = vmatprep.subr.bf16.mxu1 %v763_v51 }
 0x1f8   : > { %v496_v11 = vsel %vm362_vm8, %v493_v3, %v495_v10 }
 0x1f9   : > { %v516_v12 = vsel %vm364_vm3, %v496_v11, 0 }
 0x1fa   : > { %690 = vmatpush3.bf16.msra.mxu1 %v516_v12 }
 0x1fb   : > { %v730_v14 = vpop.permute.xlu1 %729 }
 0x1fc   : > { %v732_v15 = vunpack.i.h.bf16 %v730_v14  ;;  %v731_v16 = vunpack.i.l.bf16 %v730_v14 }
 0x1fd   : > { %692 = vmatmul.mubr.msk.bf16.vlgmr.msra.gmra.mrb[0].mxu1 %vm390_vm9, %v505_v13 }
 0x1fe   : > { %v565_v19 = vsel %vm362_vm8, %v731_v16, %v732_v15 }
 0x208   : > { %v510_v17 = vpop.permute.xlu0 %509 }
 0x2d0   : > { %v552_v18 = vpop.f32.mrb[0].mxu1 }
 0x2d1   : > { %v553_v20 = vadd.f32 %v552_v18, %v510_v17  ;;  %v693_v21 = vpop.f32.mrb[1].mxu1 }
 0x2d2   : > { %v555_v22 = vpop.f32.mrb[2].mxu1 }
 0x2d3   : > { %v567_v23 = vadd.f32 %v565_v19, %v553_v20  ;;  %v694_v24 = vpop.f32.mrb[3].mxu1 }
 0x2d5   : > { %v568_v25 = vpack.c.bf16 %v567_v23, %v567_v23 }
 0x2d7   : > { %569 = vst [vmem:[%s318_s28] sm:$0x3] %v568_v25 }
 0x2d8 PF: > { %s16_s23 = sadd.s32 1, %s755_s23   ;;  %s911_s21 = smov %s751_s22 }
 0x2d9   : > { %p13_p5 = scmp.ge.s32.totalorder %s16_s23, 4   ;;  %s912_s22 = smov %s914_s24 }
 0x2db   :  { %15 = sbr.rel (!%p13_p5) target bundleno = 2 (0x2), region = 77 }

// kernel: generator_forward.22
= control target key start
LH: loop header
LB: loop body
LE: loop exit
PB: predicated region body
PF: predicated region fallthrough
CT: control target
= control target key end

     0   :  { %s811_s21 = smov 0   ;;  %s813_s22 = smov 0   ;;  %s895_s0 = inlined_call_operand.vmem [shape: bf16[2,4,256], index: 0, kind: input, shape index: {}, may-alias: {0,1}]   ;;  %s896_s1 = inlined_call_operand.vmem [shape: bf16[2,4,256], index: 1, kind: input, shape index: {}, may-alias: {0,1}]   ;;  %s897_s2 = inlined_call_operand.vmem [shape: bf16[4,20], index: 2, kind: input, shape index: {}]   ;;  %s898_s3 = inlined_call_operand.vmem [shape: f32[4,1], index: 3, kind: input, shape index: {}]   ;;  %s899_s4 = inlined_call_operand.vmem [shape: bf16[4,20], index: 4, kind: input, shape index: {}]   ;;  %s900_s5 = inlined_call_operand.vmem [shape: f32[4,1], index: 5, kind: input, shape index: {}]   ;;  %s901_s6 = inlined_call_operand.vmem [shape: bf16[2,4,128], index: 6, kind: output, shape index: {}]  }
   0x1   :  { %s815_s23 = smov 0  }
   0x2 LB: > { %s25_s24 = sadd.s32 1, %s758_s22  ;;  %p672_p0 = scmp.ge.s32.totalorder %s762_s23, 1  ;;  %s762_s23 = sphi %s815_s23, %s16_s23   ;;  %s758_s22 = sphi %s813_s22, %s903_s22   ;;  %s754_s21 = sphi %s811_s21, %s902_s21  }
   0x3   : > { %p26_p1 = scmp.ge.s32.totalorder %s25_s24, 2  ;;  %p250_p2 = scmp.lt.s32.totalorder %s762_s23, 3 }
   0x5   : > { %s905_s24 = smov (%p26_p1, %s25_s24), 0  ;;  %p251_p3 = pnand %p672_p0, %p250_p2 }
   0x6   : > { %p294_p4 = scmp.lt.s32.totalorder (!%p251_p3), %s754_s21, 1  ;;  %s764_s9 = smov (!%p251_p3), 122   ;;  %v766_v14 = vmov (!%p251_p3), 0   ;;  %v384_v17 = vld [vmem:[%s898_s3] sm:$0xf] (!%p251_p3)  ;;  %vm340_vm2 = vcmask (!%p251_p3), 1022976   ;;  %v443_v41 = vlaneseq (!%p251_p3) }
   0x7   : > { %254 = sbr.rel (%p251_p3) target bundleno = 728 (0x2d8), region = 44  ;;  %s765_s10 = smov (!%p251_p3), 125   ;;  %432 = vmatprep.mubr.bf16.mxu0 (!%p251_p3), %v766_v14  ;;  %734 = vset.pattern.permute.xlu0 (!%p251_p3), %v766_v14  ;;  %vm364_vm3 = vcmask (!%p251_p3), 1041408   ;;  %vm348_vm4 = vcmask (!%p251_p3), 998400   ;;  %vm371_vm5 = vcmask (!%p251_p3), 1043456   ;;  %vm356_vm6 = vcmask (!%p251_p3), 973824  }
   0x8   : > { %s767_s11 = smov (!%p251_p3), 119   ;;  %s768_s12 = smov (!%p251_p3), 116   ;;  %vm376_vm7 = vcmask (!%p251_p3), 1045504   ;;  %vm362_vm8 = vcmask (!%p251_p3), 949248   ;;  %v383_v37 = vld [vmem:[%s897_s2] sm:$0x3] (!%p251_p3) }
   0x9   : > { %vm390_vm9 = vcmask (!%p251_p3), 162816   ;;  %v769_v38 = vmov (!%p251_p3), 0.0|0.0   ;;  %s770_s17 = smov (!%p251_p3), 127   ;;  %s771_s18 = smov (!%p251_p3), 126   ;;  %v444_v42 = vand.u32 (!%p251_p3), 127, %v443_v41  ;;  %v772_v51 = vmov (!%p251_p3), 0.0  }
   0xa   : > { %v472_v39 = vrot.slane (!%p251_p3), %v769_v38, 6  ;;  %v480_v40 = vrot.slane (!%p251_p3), %v769_v38, 4  ;;  %690 = vmatprep.subr.bf16.mxu1 (!%p251_p3), %v772_v51  ;;  %vm773_vm14 = vmmov (!%p251_p3), 0   ;;  %v488_v57 = vrot.slane (!%p251_p3), %v769_v38, 2  ;;  %s774_s19 = smov (!%p251_p3), 124   ;;  %s775_s26 = smov (!%p251_p3), 120  }
   0xb   : > { %v447_v43 = vadd.s32 (!%p251_p3), 4294967294, %v444_v42  ;;  %694 = vmatprep.mubr.msk.bf16.mxu1 (!%p251_p3), %vm773_vm14, %v772_v51  ;;  %v509_v59 = vld [vmem:[%s900_s5] sm:$0xf] (!%p251_p3)  ;;  %vm477_vm15 = vcmask (!%p251_p3), 1039360  }
   0xd   : > { %vm449_vm10 = vcmp.ge.s32.totalorder (!%p251_p3), %v447_v43, 0  ;;  %vm451_vm11 = vcmp.lt.s32.totalorder (!%p251_p3), %v447_v43, 32 }
   0xe   : > { %s907_s21 = smov (!%p294_p4, %s754_s21), 1  ;;  %vm453_vm12 = vmand %vm449_vm10, %vm451_vm11 }
   0xf   : > { %s683_s25 = sshll.u32 %s907_s21, 2 }
  0x10   : > { %s301_s28 = scalar_lea.vmem %s895_s0, %s683_s25  ;;  %s685_s29 = sadd.s32 2, %s683_s25 }
  0x11   : > { %s310_s8 = scalar_lea.vmem %s896_s1, %s685_s29  ;;  %v320_v0 = vld [vmem:[%s301_s28] sm:$0x3]  ;;  %s677_s29 = sshll.u32 %s907_s21, 1 }
  0x12   : > { %v838_v1 = vunpack.c.l.bf16 %v320_v0  ;;  %v321_v2 = vld [vmem:[%s310_s8] sm:$0x3]  ;;  %s318_s8 = scalar_lea.vmem %s901_s6, %s677_s29 }
  0x13   : > { %v840_v3 = vunpack.c.l.bf16 %v321_v2 }
  0x14   : > { %vm324_vm0 = vcmp.ge.f32.partialorder %v838_v1, 0.0  ;;  %v326_v4 = vmul.f32 0.1, %v838_v1 }
  0x15   : > { %vm325_vm1 = vcmp.ge.f32.partialorder %v840_v3, 0.0  ;;  %v327_v5 = vmul.f32 0.1, %v840_v3  ;;  %v735_v60 = vpack.i.bf16 %v840_v3, %v838_v1 }
  0x16   : > { %v328_v6 = vsel %vm324_vm0, %v838_v1, %v326_v4  ;;  %vm485_vm0 = vcmask 1031168  }
  0x17   : > { %v330_v7 = vpack.c.bf16 %v328_v6, %v328_v6  ;;  %v329_v8 = vsel %vm325_vm1, %v840_v3, %v327_v5  ;;  %vm498_vm1 = vcmask 1014784  }
  0x18   : > { %v331_v9 = vpack.c.bf16 %v329_v8, %v329_v8 }
  0x19   : > { %v342_v10 = vrot.slane %v330_v7, 4  ;;  %v334_v11 = vrot.slane %v330_v7, 6  ;;  %v350_v16 = vrot.slane %v330_v7, 2 }
  0x1a   : > { %v343_v12 = vrot.slane %v331_v9, 4  ;;  %v335_v13 = vrot.slane %v331_v9, 6  ;;  %v351_v15 = vrot.slane %v331_v9, 2 }
  0x1b   : > { %344 = vrot.lane.b32.xlu1 %v342_v10, %s764_s9  ;;  %336 = vrot.lane.b32.xlu0 %v334_v11, %s765_s10 }
  0x1f   : > { %346 = vrot.lane.b32.xlu1 %v343_v12, %s764_s9  ;;  %338 = vrot.lane.b32.xlu0 %v335_v13, %s765_s10  ;;  %v508_v13 = vld [vmem:[%s899_s4] sm:$0x3] }
  0x23   : > { %354 = vrot.lane.b32.xlu1 %v351_v15, %s767_s11  ;;  %352 = vrot.lane.b32.xlu0 %v350_v16, %s767_s11 }
  0x27   : > { %360 = vrot.lane.b32.xlu1 %v331_v9, %s768_s12  ;;  %358 = vrot.lane.b32.xlu0 %v330_v7, %s768_s12 }
  0x2b   : > { %387 = vperm.xlu0 %734, %v384_v17   ;;  %475 = vrot.lane.b32.xlu1 %v472_v39, %s770_s17 }
  0x2f   : > { %483 = vrot.lane.b32.xlu1 %v480_v40, %s771_s18 }
  0x8d   : > { %v345_v18 = vpop.permute.xlu1 %344  ;;  %v337_v19 = vpop.permute.xlu0 %336 }
  0x91   : > { %v347_v20 = vpop.permute.xlu1 %346  ;;  %v339_v21 = vpop.permute.xlu0 %338 }
  0x92   : > { %v341_v22 = vsel %vm340_vm2, %v337_v19, %v339_v21  ;;  %v370_v23 = vsel %vm364_vm3, %v331_v9, %v339_v21  ;;  %v349_v24 = vsel %vm348_vm4, %v345_v18, %v347_v20 }
  0x93   : > { %v367_v25 = vsel %vm364_vm3, %v330_v7, %v341_v22  ;;  %v375_v28 = vsel %vm371_vm5, %v370_v23, %v347_v20 }
  0x94   : > { %v373_v31 = vsel %vm371_vm5, %v367_v25, %v349_v24 }
  0x95   : > { %v355_v26 = vpop.permute.xlu1 %354  ;;  %v353_v27 = vpop.permute.xlu0 %352 }
  0x96   : > { %v357_v29 = vsel %vm356_vm6, %v353_v27, %v355_v26  ;;  %v381_v30 = vsel %vm376_vm7, %v375_v28, %v355_v26 }
  0x97   : > { %400 = vmatprep.subr.bf16.mxu0 %v381_v30  ;;  %v378_v32 = vsel %vm376_vm7, %v373_v31, %v357_v29 }
  0x98   : > { %401 = vmatpush1.bf16.msra.mxu0 %v378_v32 }
  0x99   : > { %v361_v33 = vpop.permute.xlu1 %360  ;;  %v359_v34 = vpop.permute.xlu0 %358 }
  0x9a   : > { %v363_v35 = vsel %vm362_vm8, %v359_v34, %v361_v33  ;;  %678 = vmatprep.subr.msk.bf16.mxu0 %vm364_vm3, %v361_v33 }
  0x9b   : > { %v395_v36 = vsel %vm364_vm3, %v363_v35, 0 }
  0x9c   : > { %403 = vmatpush1.bf16.msra.mxu0 %v395_v36 }
  0x9d   : > { %v476_v61 = vpop.permute.xlu1 %475 }
  0x9f   : > { %679 = vmatmul.mubr.msk.bf16.vlgmr.msra.gmra.mrb[0].mxu0 %vm390_vm9, %v383_v37 }
  0xa1   : > { %v484_v62 = vpop.permute.xlu1 %483 }
  0xaa   : > { %v388_v44 = vpop.permute.xlu0 %387 }
 0x172   : > { %v434_v45 = vpop.f32.mrb[0].mxu0 }
 0x173   : > { %v435_v46 = vadd.f32 %v434_v45, %v388_v44  ;;  %v436_v47 = vpop.f32.mrb[1].mxu0 }
 0x174   : > { %v438_v48 = vpop.f32.mrb[2].mxu0 }
 0x175   : > { %v459_v49 = vsel %vm453_vm12, %v435_v46, 0.0  ;;  %v439_v50 = vpop.f32.mrb[3].mxu0 }
 0x176   : > { %vm461_vm13 = vcmp.ge.f32.partialorder %v459_v49, 0.0  ;;  %v463_v52 = vmul.f32 0.1, %v459_v49 }
 0x178   : > { %v465_v53 = vsel %vm461_vm13, %v459_v49, %v463_v52 }
 0x179   : > { %v467_v54 = vpack.c.bf16 %v465_v53, %v465_v53 }
 0x17b   : > { %v479_v55 = vrot.slane %v467_v54, 4  ;;  %v471_v56 = vrot.slane %v467_v54, 6  ;;  %v487_v58 = vrot.slane %v467_v54, 2 }
 0x17d   : > { %481 = vrot.lane.b32.xlu0 %v479_v55, %s771_s18  ;;  %473 = vrot.lane.b32.xlu1 %v471_v56, %s770_s17 }
 0x181   : > { %489 = vrot.lane.b32.xlu0 %v487_v58, %s765_s10  ;;  %491 = vrot.lane.b32.xlu1 %v488_v57, %s765_s10 }
 0x185   : > { %494 = vrot.lane.b32.xlu0 %v467_v54, %s774_s19  ;;  %496 = vrot.lane.b32.xlu1 %v769_v38, %s774_s19 }
 0x189   : > { %512 = vperm.xlu0 %734, %v509_v59   ;;  %736 = vrot.lane.b32.xlu1 %v735_v60, %s775_s26 }
 0x1ef   : > { %v482_v63 = vpop.permute.xlu0 %481  ;;  %v474_v0 = vpop.permute.xlu1 %473 }
 0x1f0   : > { %v478_v2 = vsel %vm477_vm15, %v474_v0, %v476_v61  ;;  %v486_v4 = vsel %vm485_vm0, %v482_v63, %v484_v62 }
 0x1f1   : > { %v502_v5 = vsel %vm364_vm3, %v467_v54, %v478_v2 }
 0x1f2   : > { %v504_v9 = vsel %vm371_vm5, %v502_v5, %v486_v4 }
 0x1f3   : > { %v490_v6 = vpop.permute.xlu0 %489  ;;  %v492_v7 = vpop.permute.xlu1 %491 }
 0x1f4   : > { %v493_v8 = vsel %vm340_vm2, %v490_v6, %v492_v7  ;;  %vm567_vm2 = vcmask 982016  }
 0x1f5   : > { %v506_v1 = vsel %vm376_vm7, %v504_v9, %v493_v8 }
 0x1f6   : > { %691 = vmatpush3.bf16.msra.mxu1 %v506_v1 }
 0x1f7   : > { %v495_v3 = vpop.permute.xlu0 %494  ;;  %v497_v10 = vpop.permute.xlu1 %496  ;;  %692 = vmatprep.subr.bf16.mxu1 %v772_v51 }
 0x1f8   : > { %v499_v11 = vsel %vm498_vm1, %v495_v3, %v497_v10 }
 0x1f9   : > { %v519_v12 = vsel %vm364_vm3, %v499_v11, 0 }
 0x1fa   : > { %693 = vmatpush3.bf16.msra.mxu1 %v519_v12 }
 0x1fb   : > { %v737_v14 = vpop.permute.xlu1 %736 }
 0x1fc   : > { %v739_v15 = vunpack.i.h.bf16 %v737_v14  ;;  %v738_v16 = vunpack.i.l.bf16 %v737_v14 }
 0x1fd   : > { %695 = vmatmul.mubr.msk.bf16.vlgmr.msra.gmra.mrb[0].mxu1 %vm390_vm9, %v508_v13 }
 0x1fe   : > { %v568_v19 = vsel %vm567_vm2, %v738_v16, %v739_v15 }
 0x208   : > { %v513_v17 = vpop.permute.xlu0 %512 }
 0x2d0   : > { %v555_v18 = vpop.f32.mrb[0].mxu1 }
 0x2d1   : > { %v556_v20 = vadd.f32 %v555_v18, %v513_v17  ;;  %v696_v21 = vpop.f32.mrb[1].mxu1 }
 0x2d2   : > { %v558_v22 = vpop.f32.mrb[2].mxu1 }
 0x2d3   : > { %v570_v23 = vadd.f32 %v568_v19, %v556_v20  ;;  %v697_v24 = vpop.f32.mrb[3].mxu1 }
 0x2d5   : > { %v571_v25 = vpack.c.bf16 %v570_v23, %v570_v23 }
 0x2d7   : > { %572 = vst [vmem:[%s318_s8] sm:$0x3] %v571_v25 }
 0x2d8 PF: > { %s16_s23 = sadd.s32 1, %s762_s23   ;;  %s902_s21 = smov %s758_s22 }
 0x2d9   : > { %p13_p5 = scmp.ge.s32.totalorder %s16_s23, 4   ;;  %s903_s22 = smov %s905_s24 }
 0x2db   :  { %15 = sbr.rel (!%p13_p5) target bundleno = 2 (0x2), region = 77 }

// kernel: generator_forward.19
= control target key start
LH: loop header
LB: loop body
LE: loop exit
PB: predicated region body
PF: predicated region fallthrough
CT: control target
= control target key end

     0   :  { %s755_s21 = smov 0   ;;  %s757_s22 = smov 0   ;;  %s844_s0 = inlined_call_operand.vmem [shape: bf16[2,4,256], index: 0, kind: input, shape index: {}, may-alias: {0,1}]   ;;  %s845_s1 = inlined_call_operand.vmem [shape: bf16[2,4,256], index: 1, kind: input, shape index: {}, may-alias: {0,1}]   ;;  %s846_s2 = inlined_call_operand.vmem [shape: bf16[4,12], index: 2, kind: input, shape index: {}]   ;;  %s847_s3 = inlined_call_operand.vmem [shape: f32[4,1], index: 3, kind: input, shape index: {}]   ;;  %s848_s4 = inlined_call_operand.vmem [shape: bf16[4,12], index: 4, kind: input, shape index: {}]   ;;  %s849_s5 = inlined_call_operand.vmem [shape: f32[4,1], index: 5, kind: input, shape index: {}]   ;;  %s850_s6 = inlined_call_operand.vmem [shape: bf16[2,4,128], index: 6, kind: output, shape index: {}]  }
   0x1   :  { %s759_s23 = smov 0  }
   0x2 LB: > { %s25_s24 = sadd.s32 1, %s708_s22  ;;  %p631_p0 = scmp.ge.s32.totalorder %s712_s23, 1  ;;  %s712_s23 = sphi %s759_s23, %s16_s23   ;;  %s708_s22 = sphi %s757_s22, %s852_s22   ;;  %s704_s21 = sphi %s755_s21, %s851_s21  }
   0x3   : > { %p26_p1 = scmp.ge.s32.totalorder %s25_s24, 2  ;;  %p250_p2 = scmp.lt.s32.totalorder %s712_s23, 3 }
   0x5   : > { %s854_s24 = smov (%p26_p1, %s25_s24), 0  ;;  %p251_p3 = pnand %p631_p0, %p250_p2 }
   0x6   : > { %p294_p4 = scmp.lt.s32.totalorder (!%p251_p3), %s704_s21, 1  ;;  %v714_v9 = vmov (!%p251_p3), 0   ;;  %s715_s9 = smov (!%p251_p3), 126   ;;  %v363_v15 = vld [vmem:[%s847_s3] sm:$0xf] (!%p251_p3)  ;;  %vm348_vm2 = vcmask (!%p251_p3), 1031168   ;;  %v421_v30 = vlaneseq (!%p251_p3) }
   0x7   : > { %254 = sbr.rel (%p251_p3) target bundleno = 719 (0x2cf), region = 44  ;;  %410 = vmatprep.mubr.bf16.mxu0 (!%p251_p3), %v714_v9  ;;  %684 = vset.pattern.permute.xlu0 (!%p251_p3), %v714_v9  ;;  %s716_s10 = smov (!%p251_p3), 127   ;;  %vm340_vm3 = vcmask (!%p251_p3), 1039360   ;;  %vm350_vm4 = vcmask (!%p251_p3), 1041408   ;;  %vm357_vm5 = vcmask (!%p251_p3), 1043456   ;;  %vm373_vm6 = vcmask (!%p251_p3), 1045504  }
   0x8   : > { %v362_v27 = vld [vmem:[%s846_s2] sm:$0x3] (!%p251_p3)  ;;  %vm369_vm7 = vcmask (!%p251_p3), 97280   ;;  %v717_v28 = vmov (!%p251_p3), 0.0|0.0   ;;  %v422_v31 = vand.u32 (!%p251_p3), 127, %v421_v30  ;;  %v718_v40 = vmov (!%p251_p3), 0.0  }
   0x9   : > { %v450_v29 = vrot.slane (!%p251_p3), %v717_v28, 6  ;;  %648 = vmatprep.subr.bf16.mxu1 (!%p251_p3), %v718_v40  ;;  %vm719_vm12 = vmmov (!%p251_p3), 0   ;;  %v457_v46 = vrot.slane (!%p251_p3), %v717_v28, 4  ;;  %v469_v47 = vld [vmem:[%s849_s5] sm:$0xf] (!%p251_p3) }
   0xa   : > { %v425_v32 = vadd.s32 (!%p251_p3), 4294967295, %v422_v31  ;;  %650 = vmatprep.mubr.msk.bf16.mxu1 (!%p251_p3), %vm719_vm12, %v718_v40  ;;  %v468_v58 = vld [vmem:[%s848_s4] sm:$0x3] (!%p251_p3) }
   0xc   : > { %vm427_vm8 = vcmp.ge.s32.totalorder (!%p251_p3), %v425_v32, 0  ;;  %vm429_vm9 = vcmp.lt.s32.totalorder (!%p251_p3), %v425_v32, 32 }
   0xd   : > { %vm431_vm10 = vmand (!%p251_p3), %vm427_vm8, %vm429_vm9 }
   0xe   : > { %s856_s21 = smov (!%p294_p4, %s704_s21), 1 }
   0xf   : > { %s642_s25 = sshll.u32 %s856_s21, 2  ;;  %s636_s19 = sshll.u32 %s856_s21, 1 }
  0x10   : > { %s301_s28 = scalar_lea.vmem %s844_s0, %s642_s25  ;;  %s644_s29 = sadd.s32 2, %s642_s25 }
  0x11   : > { %s310_s8 = scalar_lea.vmem %s845_s1, %s644_s29  ;;  %v320_v0 = vld [vmem:[%s301_s28] sm:$0x3]  ;;  %s318_s26 = scalar_lea.vmem %s850_s6, %s636_s19 }
  0x12   : > { %v782_v1 = vunpack.c.l.bf16 %v320_v0  ;;  %v321_v2 = vld [vmem:[%s310_s8] sm:$0x3] }
  0x13   : > { %v784_v3 = vunpack.c.l.bf16 %v321_v2 }
  0x14   : > { %vm324_vm0 = vcmp.ge.f32.partialorder %v782_v1, 0.0  ;;  %v326_v4 = vmul.f32 0.1, %v782_v1 }
  0x15   : > { %vm325_vm1 = vcmp.ge.f32.partialorder %v784_v3, 0.0  ;;  %v327_v5 = vmul.f32 0.1, %v784_v3  ;;  %v685_v48 = vpack.i.bf16 %v784_v3, %v782_v1 }
  0x16   : > { %v328_v6 = vsel %vm324_vm0, %v782_v1, %v326_v4 }
  0x17   : > { %v330_v7 = vpack.c.bf16 %v328_v6, %v328_v6  ;;  %v329_v8 = vsel %vm325_vm1, %v784_v3, %v327_v5 }
  0x18   : > { %v331_v10 = vpack.c.bf16 %v329_v8, %v329_v8 }
  0x19   : > { %v342_v11 = vrot.slane %v330_v7, 4  ;;  %v334_v12 = vrot.slane %v330_v7, 6 }
  0x1a   : > { %v343_v13 = vrot.slane %v331_v10, 4  ;;  %v335_v14 = vrot.slane %v331_v10, 6 }
  0x1b   : > { %344 = vrot.lane.b32.xlu1 %v342_v11, %s715_s9  ;;  %336 = vrot.lane.b32.xlu0 %v334_v12, %s716_s10 }
  0x1f   : > { %346 = vrot.lane.b32.xlu1 %v343_v13, %s715_s9  ;;  %338 = vrot.lane.b32.xlu0 %v335_v14, %s716_s10 }
  0x23   : > { %366 = vperm.xlu0 %684, %v363_v15   ;;  %453 = vrot.lane.b32.xlu1 %v450_v29, %s716_s10 }
  0x8d   : > { %v345_v16 = vpop.permute.xlu1 %344  ;;  %v337_v17 = vpop.permute.xlu0 %336 }
  0x91   : > { %v347_v18 = vpop.permute.xlu1 %346  ;;  %v339_v19 = vpop.permute.xlu0 %338 }
  0x92   : > { %v349_v20 = vsel %vm348_vm2, %v345_v16, %v347_v18  ;;  %v341_v21 = vsel %vm340_vm3, %v337_v17, %v339_v19  ;;  %v356_v22 = vsel %vm350_vm4, %v331_v10, %v339_v19 }
  0x93   : > { %v361_v23 = vsel %vm357_vm5, %v356_v22, %v347_v18  ;;  %v353_v24 = vsel %vm350_vm4, %v330_v7, %v341_v21 }
  0x94   : > { %637 = vmatprep.subr.msk.bf16.mxu0 %vm373_vm6, %v361_v23  ;;  %v359_v25 = vsel %vm357_vm5, %v353_v24, %v349_v20 }
  0x95   : > { %v374_v26 = vsel %vm373_vm6, %v359_v25, 0  ;;  %v454_v49 = vpop.permute.xlu1 %453 }
  0x96   : > { %379 = vmatpush1.bf16.msra.mxu0 %v374_v26 }
  0x99   : > { %638 = vmatmul.mubr.msk.bf16.vlgmr.msra.gmra.mrb[0].mxu0 %vm369_vm7, %v362_v27 }
  0xa2   : > { %v367_v33 = vpop.permute.xlu0 %366 }
 0x16c   : > { %v412_v34 = vpop.f32.mrb[0].mxu0 }
 0x16d   : > { %v413_v35 = vadd.f32 %v412_v34, %v367_v33  ;;  %v414_v36 = vpop.f32.mrb[1].mxu0 }
 0x16e   : > { %v416_v37 = vpop.f32.mrb[2].mxu0 }
 0x16f   : > { %v437_v38 = vsel %vm431_vm10, %v413_v35, 0.0  ;;  %v417_v39 = vpop.f32.mrb[3].mxu0 }
 0x170   : > { %vm439_vm11 = vcmp.ge.f32.partialorder %v437_v38, 0.0  ;;  %v441_v41 = vmul.f32 0.1, %v437_v38 }
 0x172   : > { %v443_v42 = vsel %vm439_vm11, %v437_v38, %v441_v41 }
 0x173   : > { %v445_v43 = vpack.c.bf16 %v443_v42, %v443_v42 }
 0x175   : > { %v456_v44 = vrot.slane %v445_v43, 4  ;;  %v449_v45 = vrot.slane %v445_v43, 6 }
 0x177   : > { %458 = vrot.lane.b32.xlu0 %v456_v44, %s715_s9  ;;  %451 = vrot.lane.b32.xlu1 %v449_v45, %s716_s10 }
 0x17b   : > { %472 = vperm.xlu0 %684, %v469_v47   ;;  %460 = vrot.lane.b32.xlu1 %v457_v46, %s715_s9 }
 0x17f   : > { %686 = vrot.lane.b32.xlu1 %v685_v48, %s715_s9 }
 0x1e9   : > { %v452_v50 = vpop.permute.xlu1 %451  ;;  %v459_v52 = vpop.permute.xlu0 %458 }
 0x1ea   : > { %v455_v51 = vsel %vm340_vm3, %v452_v50, %v454_v49 }
 0x1eb   : > { %v465_v55 = vsel %vm350_vm4, %v445_v43, %v455_v51 }
 0x1ed   : > { %v461_v53 = vpop.permute.xlu1 %460 }
 0x1ee   : > { %v462_v54 = vsel %vm348_vm2, %v459_v52, %v461_v53 }
 0x1ef   : > { %v467_v56 = vsel %vm357_vm5, %v465_v55, %v462_v54 }
 0x1f0   : > { %v478_v57 = vsel %vm373_vm6, %v467_v56, 0 }
 0x1f1   : > { %649 = vmatpush3.bf16.msra.mxu1 %v478_v57  ;;  %v687_v59 = vpop.permute.xlu1 %686 }
 0x1f2   : > { %v689_v60 = vunpack.i.h.bf16 %v687_v59  ;;  %v688_v61 = vunpack.i.l.bf16 %v687_v59 }
 0x1f4   : > { %651 = vmatmul.mubr.msk.bf16.vlgmr.msra.gmra.mrb[0].mxu1 %vm369_vm7, %v468_v58  ;;  %v527_v0 = vsel %vm348_vm2, %v688_v61, %v689_v60 }
 0x1fa   : > { %v473_v62 = vpop.permute.xlu0 %472 }
 0x2c7   : > { %v514_v63 = vpop.f32.mrb[0].mxu1 }
 0x2c8   : > { %v515_v1 = vadd.f32 %v514_v63, %v473_v62  ;;  %v652_v2 = vpop.f32.mrb[1].mxu1 }
 0x2c9   : > { %v517_v3 = vpop.f32.mrb[2].mxu1 }
 0x2ca   : > { %v529_v4 = vadd.f32 %v527_v0, %v515_v1  ;;  %v653_v5 = vpop.f32.mrb[3].mxu1 }
 0x2cc   : > { %v530_v6 = vpack.c.bf16 %v529_v4, %v529_v4 }
 0x2ce   : > { %531 = vst [vmem:[%s318_s26] sm:$0x3] %v530_v6 }
 0x2cf PF: > { %s16_s23 = sadd.s32 1, %s712_s23   ;;  %s851_s21 = smov %s708_s22 }
 0x2d0   : > { %p13_p5 = scmp.ge.s32.totalorder %s16_s23, 4   ;;  %s852_s22 = smov %s854_s24 }
 0x2d2   :  { %15 = sbr.rel (!%p13_p5) target bundleno = 2 (0x2), region = 77 }

// kernel: generator_forward.20
= control target key start
LH: loop header
LB: loop body
LE: loop exit
PB: predicated region body
PF: predicated region fallthrough
CT: control target
= control target key end

     0   :  { %s763_s21 = smov 0   ;;  %s765_s22 = smov 0   ;;  %s838_s0 = inlined_call_operand.vmem [shape: bf16[2,4,256], index: 0, kind: input, shape index: {}, may-alias: {0,1}]   ;;  %s839_s1 = inlined_call_operand.vmem [shape: bf16[2,4,256], index: 1, kind: input, shape index: {}, may-alias: {0,1}]   ;;  %s840_s2 = inlined_call_operand.vmem [shape: bf16[4,12], index: 2, kind: input, shape index: {}]   ;;  %s841_s3 = inlined_call_operand.vmem [shape: f32[4,1], index: 3, kind: input, shape index: {}]   ;;  %s842_s4 = inlined_call_operand.vmem [shape: bf16[4,12], index: 4, kind: input, shape index: {}]   ;;  %s843_s5 = inlined_call_operand.vmem [shape: f32[4,1], index: 5, kind: input, shape index: {}]   ;;  %s844_s6 = inlined_call_operand.vmem [shape: bf16[2,4,128], index: 6, kind: output, shape index: {}]  }
   0x1   :  { %s767_s23 = smov 0  }
   0x2 LB: > { %s25_s24 = sadd.s32 1, %s713_s22  ;;  %p633_p0 = scmp.ge.s32.totalorder %s717_s23, 1  ;;  %s717_s23 = sphi %s767_s23, %s16_s23   ;;  %s713_s22 = sphi %s765_s22, %s846_s22   ;;  %s709_s21 = sphi %s763_s21, %s845_s21  }
   0x3   : > { %p26_p1 = scmp.ge.s32.totalorder %s25_s24, 2  ;;  %p250_p2 = scmp.lt.s32.totalorder %s717_s23, 3 }
   0x5   : > { %s848_s24 = smov (%p26_p1, %s25_s24), 0  ;;  %p251_p3 = pnand %p633_p0, %p250_p2 }
   0x6   : > { %p294_p4 = scmp.lt.s32.totalorder (!%p251_p3), %s709_s21, 1  ;;  %v719_v9 = vmov (!%p251_p3), 0   ;;  %s720_s9 = smov (!%p251_p3), 122   ;;  %v363_v15 = vld [vmem:[%s841_s3] sm:$0xf] (!%p251_p3)  ;;  %vm348_vm2 = vcmask (!%p251_p3), 998400   ;;  %v421_v30 = vlaneseq (!%p251_p3) }
   0x7   : > { %254 = sbr.rel (%p251_p3) target bundleno = 719 (0x2cf), region = 44  ;;  %410 = vmatprep.mubr.bf16.mxu0 (!%p251_p3), %v719_v9  ;;  %689 = vset.pattern.permute.xlu0 (!%p251_p3), %v719_v9  ;;  %s721_s10 = smov (!%p251_p3), 125   ;;  %vm340_vm3 = vcmask (!%p251_p3), 1022976   ;;  %vm350_vm4 = vcmask (!%p251_p3), 1041408   ;;  %vm357_vm5 = vcmask (!%p251_p3), 1043456   ;;  %vm373_vm6 = vcmask (!%p251_p3), 1045504  }
   0x8   : > { %v362_v27 = vld [vmem:[%s840_s2] sm:$0x3] (!%p251_p3)  ;;  %vm369_vm7 = vcmask (!%p251_p3), 97280   ;;  %v722_v28 = vmov (!%p251_p3), 0.0|0.0   ;;  %s723_s15 = smov (!%p251_p3), 127   ;;  %v422_v31 = vand.u32 (!%p251_p3), 127, %v421_v30 }
   0x9   : > { %v450_v29 = vrot.slane (!%p251_p3), %v722_v28, 6  ;;  %v724_v40 = vmov (!%p251_p3), 0.0   ;;  %vm725_vm12 = vmmov (!%p251_p3), 0   ;;  %s726_s16 = smov (!%p251_p3), 126   ;;  %v458_v46 = vrot.slane (!%p251_p3), %v722_v28, 4  ;;  %s727_s19 = smov (!%p251_p3), 124  }
   0xa   : > { %v425_v32 = vadd.s32 (!%p251_p3), 4294967295, %v422_v31  ;;  %650 = vmatprep.subr.bf16.mxu1 (!%p251_p3), %v724_v40  ;;  %652 = vmatprep.mubr.msk.bf16.mxu1 (!%p251_p3), %vm725_vm12, %v724_v40  ;;  %v471_v47 = vld [vmem:[%s843_s5] sm:$0xf] (!%p251_p3)  ;;  %vm455_vm13 = vcmask (!%p251_p3), 1039360   ;;  %vm463_vm14 = vcmask (!%p251_p3), 1031168   ;;  %vm528_vm15 = vcmask (!%p251_p3), 1014784  }
   0xb   : > { %v470_v58 = vld [vmem:[%s842_s4] sm:$0x3] (!%p251_p3) }
   0xc   : > { %vm427_vm8 = vcmp.ge.s32.totalorder (!%p251_p3), %v425_v32, 0  ;;  %vm429_vm9 = vcmp.lt.s32.totalorder (!%p251_p3), %v425_v32, 32 }
   0xd   : > { %vm431_vm10 = vmand (!%p251_p3), %vm427_vm8, %vm429_vm9 }
   0xe   : > { %s850_s21 = smov (!%p294_p4, %s709_s21), 1 }
   0xf   : > { %s644_s25 = sshll.u32 %s850_s21, 2  ;;  %s638_s26 = sshll.u32 %s850_s21, 1 }
  0x10   : > { %s301_s28 = scalar_lea.vmem %s838_s0, %s644_s25  ;;  %s646_s29 = sadd.s32 2, %s644_s25 }
  0x11   : > { %s310_s8 = scalar_lea.vmem %s839_s1, %s646_s29  ;;  %v320_v0 = vld [vmem:[%s301_s28] sm:$0x3]  ;;  %s318_s29 = scalar_lea.vmem %s844_s6, %s638_s26 }
  0x12   : > { %v790_v1 = vunpack.c.l.bf16 %v320_v0  ;;  %v321_v2 = vld [vmem:[%s310_s8] sm:$0x3] }
  0x13   : > { %v792_v3 = vunpack.c.l.bf16 %v321_v2 }
  0x14   : > { %vm324_vm0 = vcmp.ge.f32.partialorder %v790_v1, 0.0  ;;  %v326_v4 = vmul.f32 0.1, %v790_v1 }
  0x15   : > { %vm325_vm1 = vcmp.ge.f32.partialorder %v792_v3, 0.0  ;;  %v327_v5 = vmul.f32 0.1, %v792_v3  ;;  %v690_v48 = vpack.i.bf16 %v792_v3, %v790_v1 }
  0x16   : > { %v328_v6 = vsel %vm324_vm0, %v790_v1, %v326_v4 }
  0x17   : > { %v330_v7 = vpack.c.bf16 %v328_v6, %v328_v6  ;;  %v329_v8 = vsel %vm325_vm1, %v792_v3, %v327_v5 }
  0x18   : > { %v331_v10 = vpack.c.bf16 %v329_v8, %v329_v8 }
  0x19   : > { %v342_v11 = vrot.slane %v330_v7, 4  ;;  %v334_v12 = vrot.slane %v330_v7, 6 }
  0x1a   : > { %v343_v13 = vrot.slane %v331_v10, 4  ;;  %v335_v14 = vrot.slane %v331_v10, 6 }
  0x1b   : > { %344 = vrot.lane.b32.xlu1 %v342_v11, %s720_s9  ;;  %336 = vrot.lane.b32.xlu0 %v334_v12, %s721_s10 }
  0x1f   : > { %346 = vrot.lane.b32.xlu1 %v343_v13, %s720_s9  ;;  %338 = vrot.lane.b32.xlu0 %v335_v14, %s721_s10 }
  0x23   : > { %366 = vperm.xlu0 %689, %v363_v15   ;;  %453 = vrot.lane.b32.xlu1 %v450_v29, %s723_s15 }
  0x8d   : > { %v345_v16 = vpop.permute.xlu1 %344  ;;  %v337_v17 = vpop.permute.xlu0 %336 }
  0x91   : > { %v347_v18 = vpop.permute.xlu1 %346  ;;  %v339_v19 = vpop.permute.xlu0 %338 }
  0x92   : > { %v349_v20 = vsel %vm348_vm2, %v345_v16, %v347_v18  ;;  %v341_v21 = vsel %vm340_vm3, %v337_v17, %v339_v19  ;;  %v356_v22 = vsel %vm350_vm4, %v331_v10, %v339_v19 }
  0x93   : > { %v361_v23 = vsel %vm357_vm5, %v356_v22, %v347_v18  ;;  %v353_v24 = vsel %vm350_vm4, %v330_v7, %v341_v21 }
  0x94   : > { %639 = vmatprep.subr.msk.bf16.mxu0 %vm373_vm6, %v361_v23  ;;  %v359_v25 = vsel %vm357_vm5, %v353_v24, %v349_v20 }
  0x95   : > { %v374_v26 = vsel %vm373_vm6, %v359_v25, 0  ;;  %v454_v49 = vpop.permute.xlu1 %453 }
  0x96   : > { %379 = vmatpush1.bf16.msra.mxu0 %v374_v26 }
  0x99   : > { %640 = vmatmul.mubr.msk.bf16.vlgmr.msra.gmra.mrb[0].mxu0 %vm369_vm7, %v362_v27 }
  0xa2   : > { %v367_v33 = vpop.permute.xlu0 %366 }
 0x16c   : > { %v412_v34 = vpop.f32.mrb[0].mxu0 }
 0x16d   : > { %v413_v35 = vadd.f32 %v412_v34, %v367_v33  ;;  %v414_v36 = vpop.f32.mrb[1].mxu0 }
 0x16e   : > { %v416_v37 = vpop.f32.mrb[2].mxu0 }
 0x16f   : > { %v437_v38 = vsel %vm431_vm10, %v413_v35, 0.0  ;;  %v417_v39 = vpop.f32.mrb[3].mxu0 }
 0x170   : > { %vm439_vm11 = vcmp.ge.f32.partialorder %v437_v38, 0.0  ;;  %v441_v41 = vmul.f32 0.1, %v437_v38 }
 0x172   : > { %v443_v42 = vsel %vm439_vm11, %v437_v38, %v441_v41 }
 0x173   : > { %v445_v43 = vpack.c.bf16 %v443_v42, %v443_v42 }
 0x175   : > { %v457_v44 = vrot.slane %v445_v43, 4  ;;  %v449_v45 = vrot.slane %v445_v43, 6 }
 0x177   : > { %459 = vrot.lane.b32.xlu0 %v457_v44, %s726_s16  ;;  %451 = vrot.lane.b32.xlu1 %v449_v45, %s723_s15 }
 0x17b   : > { %474 = vperm.xlu0 %689, %v471_v47   ;;  %461 = vrot.lane.b32.xlu1 %v458_v46, %s726_s16 }
 0x17f   : > { %691 = vrot.lane.b32.xlu1 %v690_v48, %s727_s19 }
 0x1e9   : > { %v452_v50 = vpop.permute.xlu1 %451  ;;  %v460_v52 = vpop.permute.xlu0 %459 }
 0x1ea   : > { %v456_v51 = vsel %vm455_vm13, %v452_v50, %v454_v49 }
 0x1eb   : > { %v467_v55 = vsel %vm350_vm4, %v445_v43, %v456_v51 }
 0x1ed   : > { %v462_v53 = vpop.permute.xlu1 %461 }
 0x1ee   : > { %v464_v54 = vsel %vm463_vm14, %v460_v52, %v462_v53 }
 0x1ef   : > { %v469_v56 = vsel %vm357_vm5, %v467_v55, %v464_v54 }
 0x1f0   : > { %v480_v57 = vsel %vm373_vm6, %v469_v56, 0 }
 0x1f1   : > { %651 = vmatpush3.bf16.msra.mxu1 %v480_v57  ;;  %v692_v59 = vpop.permute.xlu1 %691 }
 0x1f2   : > { %v694_v60 = vunpack.i.h.bf16 %v692_v59  ;;  %v693_v61 = vunpack.i.l.bf16 %v692_v59 }
 0x1f4   : > { %653 = vmatmul.mubr.msk.bf16.vlgmr.msra.gmra.mrb[0].mxu1 %vm369_vm7, %v470_v58  ;;  %v529_v0 = vsel %vm528_vm15, %v693_v61, %v694_v60 }
 0x1fa   : > { %v475_v62 = vpop.permute.xlu0 %474 }
 0x2c7   : > { %v516_v63 = vpop.f32.mrb[0].mxu1 }
 0x2c8   : > { %v517_v1 = vadd.f32 %v516_v63, %v475_v62  ;;  %v654_v2 = vpop.f32.mrb[1].mxu1 }
 0x2c9   : > { %v519_v3 = vpop.f32.mrb[2].mxu1 }
 0x2ca   : > { %v531_v4 = vadd.f32 %v529_v0, %v517_v1  ;;  %v655_v5 = vpop.f32.mrb[3].mxu1 }
 0x2cc   : > { %v532_v6 = vpack.c.bf16 %v531_v4, %v531_v4 }
 0x2ce   : > { %533 = vst [vmem:[%s318_s29] sm:$0x3] %v532_v6 }
 0x2cf PF: > { %s16_s23 = sadd.s32 1, %s717_s23   ;;  %s845_s21 = smov %s713_s22 }
 0x2d0   : > { %p13_p5 = scmp.ge.s32.totalorder %s16_s23, 4   ;;  %s846_s22 = smov %s848_s24 }
 0x2d2   :  { %15 = sbr.rel (!%p13_p5) target bundleno = 2 (0x2), region = 77 }

// kernel: generator_forward.23
= control target key start
LH: loop header
LB: loop body
LE: loop exit
PB: predicated region body
PF: predicated region fallthrough
CT: control target
= control target key end

     0   :  { %s818_s0 = inlined_call_operand.vmem [shape: bf16[2,4,256], index: 0, kind: input, shape index: {}, may-alias: {0,1}]   ;;  %s819_s1 = inlined_call_operand.vmem [shape: bf16[2,4,256], index: 1, kind: input, shape index: {}, may-alias: {0,1}]   ;;  %s820_s2 = inlined_call_operand.vmem [shape: bf16[1,28], index: 2, kind: input, shape index: {}]   ;;  %s821_s3 = inlined_call_operand.<no memory space> [shape: f32[1,1], index: 3, kind: input, shape index: {}]   ;;  %s822_s4 = inlined_call_operand.hbm [shape: f32[2,1,128], index: 4, kind: output, shape index: {}]  }
   0x1   :  { %v9_v0 = vstv %s821_s3 }
   0x2   :  { %10 = vst [vmem:[#allocation2] sm:$0x1] %v9_v0 }
   0x3   :  { %11 = vsyncpa [#allocation4], 0 }
   0x4   :  { %13 = vsyncpa [#allocation4 + $0x1], 0  ;;  %s694_s17 = smov 0   ;;  %s696_s18 = smov 0  }
   0x5   :  { %s698_s19 = smov 0   ;;  %s700_s20 = smov 0  }
   0x6   :  { %s702_s21 = smov 0   ;;  %s704_s22 = smov 0  }
   0x7 LB: > { %s483_s3 = sadd.s32 4294967295, %s654_s22   ;;  %s484_s23 = sadd.s32 4294967294, %s654_s22   ;;  %s654_s22 = sphi %s704_s22, %s19_s22   ;;  %s650_s21 = sphi %s702_s21, %s829_s21   ;;  %s646_s20 = sphi %s700_s20, %s828_s20   ;;  %s642_s19 = sphi %s698_s19, %s827_s19   ;;  %s638_s18 = sphi %s696_s18, %s826_s18   ;;  %s634_s17 = sphi %s694_s17, %s825_s17  }
   0x8   : > { %s28_s24 = sadd.s32 1, %s650_s21  ;;  %s140_s25 = sadd.s32 1, %s642_s19 }
   0x9   : > { %p29_p0 = scmp.ge.s32.totalorder %s28_s24, 2  ;;  %p150_p1 = scmp.ne.s32.totalorder %s642_s19, %s638_s18 }
   0xa   : > { %p151_p2 = scmp.eq.s32.totalorder %s483_s3, 1  ;;  %p156_p3 = scmp.ne.s32.totalorder %s638_s18, %s634_s17 }
   0xb   : > { %s831_s24 = smov (%p29_p0, %s28_s24), 0  ;;  %p157_p5 = scmp.eq.s32.totalorder %s484_s23, 1 }
   0xc   : > { %p734_p4 = por %p151_p2, %p150_p1  ;;  %s135_s27 = ssub.s32 %s650_s21, %s831_s24 }
   0xd   : > { %p487_p6 = scmp.ge.s32.totalorder %s654_s22, 1  ;;  %p138_p7 = scmp.eq.s32.totalorder %s135_s27, 0 }
   0xe   : > { %p741_p8 = por %p157_p5, %p156_p3  ;;  %p205_p9 = scmp.lt.s32.totalorder %s654_s22, 3 }
   0xf   : > { %s747_s29 = scalar_select %p138_p7, %s642_s19, %s140_s25  }
  0x10   : > { %p206_p10 = pnand %p487_p6, %p205_p9 }
  0x11   : > { %p242_p11 = scmp.lt.s32.totalorder (!%p206_p10), %s646_s20, 1  ;;  %v656_v2 = vmov (!%p206_p10), 0.0   ;;  %s657_s13 = smov (!%p206_p10), 126   ;;  %vm660_vm0 = vmmov (!%p206_p10), 0   ;;  %v662_v10 = vmov (!%p206_p10), 0   ;;  %vm271_vm1 = vcmask (!%p206_p10), 1039360  }
  0x12   : > { %209 = sbr.rel (%p206_p10) target bundleno = 401 (0x191), region = 36  ;;  %503 = vmatprep.subr.bf16.mxu0 (!%p206_p10), %v656_v2  ;;  %s658_s14 = smov (!%p206_p10), 127   ;;  %507 = vmatprep.mubr.msk.bf16.mxu0 (!%p206_p10), %vm660_vm0, %v656_v2  ;;  %v324_v11 = vld [vmem:[#allocation2] sm:$0x1] (!%p206_p10)  ;;  %vm279_vm2 = vcmask (!%p206_p10), 1031168   ;;  %vm307_vm3 = vcmask (!%p206_p10), 1041408   ;;  %v330_v37 = vlaneseq (!%p206_p10) }
  0x13   : > { %s659_s15 = smov (!%p206_p10), 125   ;;  %s661_s16 = smov (!%p206_p10), 124   ;;  %575 = vset.pattern.permute.xlu0 (!%p206_p10), %v662_v10  ;;  %vm287_vm4 = vcmask (!%p206_p10), 1022976   ;;  %vm311_vm5 = vcmask (!%p206_p10), 1043456   ;;  %vm314_vm6 = vcmask (!%p206_p10), 1045504   ;;  %vm299_vm7 = vcmask (!%p206_p10), 1006592  }
  0x14   : > { %s663_s3 = smov (!%p206_p10), 123   ;;  %s664_s23 = smov (!%p206_p10), 122   ;;  %vm293_vm8 = vcmask (!%p206_p10), 1014784   ;;  %vm305_vm9 = vcmask (!%p206_p10), 998400   ;;  %v323_v36 = vld [vmem:[%s820_s2] sm:$0x1] (!%p206_p10) }
  0x15   : > { %vm334_vm10 = vcmask (!%p206_p10), 228352   ;;  %v331_v38 = vshrl.u32 (!%p206_p10), %v330_v37, 7 }
  0x17   : > { %v332_v39 = vsub.s32 (!%p206_p10), 0, %v331_v38 }
  0x19   : > { %s243_s30 = scalar_select %p242_p11, %s646_s20, 1 }
  0x1b   : > { %s496_s5 = sshll.u32 %s243_s30, 2  ;;  %s240_s30 = sand.u32 1, %s638_s18  }
  0x1c   : > { %s249_s8 = scalar_lea.vmem %s818_s0, %s496_s5  ;;  %s498_s9 = sadd.s32 2, %s496_s5 }
  0x1d   : > { %v261_v1 = vld [vmem:[%s249_s8] sm:$0x3]  ;;  %s258_s12 = scalar_lea.vmem %s819_s1, %s498_s9  ;;  %s493_s5 = sshll.u32 %s646_s20, 4 }
  0x1e   : > { %v273_v3 = vrot.slane %v261_v1, 4  ;;  %v265_v4 = vrot.slane %v261_v1, 6  ;;  %v262_v5 = vld [vmem:[%s258_s12] sm:$0x3]  ;;  %v281_v7 = vrot.slane %v261_v1, 2  ;;  %s241_s6 = scalar_lea.vmem [#allocation3], %s240_s30  ;;  %s771_s10 = scalar_lea.hbm %s822_s4, %s493_s5 }
  0x1f   : > { %v274_v6 = vrot.slane %v262_v5, 4  ;;  %v282_v8 = vrot.slane %v262_v5, 2  ;;  %v266_v9 = vrot.slane %v262_v5, 6  ;;  %s395_s7 = sshll.u32 %s241_s6, 4  ;;  %s382_s11 = scalar_lea.sflag [#allocation4], %s240_s30  ;;  %s773_s7 = int_to_ptr.vmem [resolvable:$true] %s395_s7 }
  0x20   : > { %275 = vrot.lane.b32.xlu1 %v273_v3, %s657_s13  ;;  %267 = vrot.lane.b32.xlu0 %v265_v4, %s658_s14  ;;  %s576_s20 = scalar_lea.vmem %s773_s7, 16  ;;  %s665_s12 = smov [#allocation3]  }
  0x21   : > { %p577_p12 = scmp.ne.s32.totalorder %s773_s7, %s576_s20 }
  0x23   : > { %p578_p13 = pnand %p577_p12, %p734_p4 }
  0x24   : > { %277 = vrot.lane.b32.xlu1 %v274_v6, %s657_s13  ;;  %283 = vrot.lane.b32.xlu0 %v281_v7, %s659_s15  ;;  %s580_s13 = sshll.u32 %s665_s12, 4  ;;  %s581_s13 = int_to_ptr.vmem [resolvable:$false] %s580_s13 }
  0x25   : > { %p579_p0 = pneg %p578_p13  ;;  %p583_p1 = scmp.lt.s32.totalorder %s773_s7, %s581_s13 }
  0x28   : > { %285 = vrot.lane.b32.xlu1 %v282_v8, %s659_s15  ;;  %269 = vrot.lane.b32.xlu0 %v266_v9, %s658_s14  ;;  %s582_s14 = scalar_lea.vmem %s581_s13, 32 }
  0x29   : > { %p584_p2 = scmp.lt.s32.totalorder %s582_s14, %s576_s20 }
  0x2b   : > { %p585_p3 = por %p584_p2, %p583_p1 }
  0x2c   : > { %291 = vrot.lane.b32.xlu1 %v262_v5, %s661_s16  ;;  %289 = vrot.lane.b32.xlu0 %v261_v1, %s661_s16 }
  0x2d   : > { %p586_p5 = pnand %p585_p3, %p579_p0 }
  0x30   : > { %297 = vrot.lane.b32.xlu1 %v266_v9, %s663_s3  ;;  %295 = vrot.lane.b32.xlu0 %v265_v4, %s663_s3 }
  0x34   : > { %303 = vrot.lane.b32.xlu1 %v274_v6, %s664_s23  ;;  %301 = vrot.lane.b32.xlu0 %v273_v3, %s664_s23 }
  0x38   : > { %327 = vperm.xlu0 %575, %v324_v11  }
  0x92   : > { %v276_v12 = vpop.permute.xlu1 %275  ;;  %v268_v13 = vpop.permute.xlu0 %267 }
  0x96   : > { %v278_v14 = vpop.permute.xlu1 %277  ;;  %v284_v15 = vpop.permute.xlu0 %283 }
  0x97   : > { %v280_v19 = vsel %vm279_vm2, %v276_v12, %v278_v14 }
  0x9a   : > { %v286_v16 = vpop.permute.xlu1 %285  ;;  %v270_v17 = vpop.permute.xlu0 %269 }
  0x9b   : > { %v272_v18 = vsel %vm271_vm1, %v268_v13, %v270_v17  ;;  %v288_v21 = vsel %vm287_vm4, %v284_v15, %v286_v16 }
  0x9c   : > { %v310_v20 = vsel %vm307_vm3, %v261_v1, %v272_v18 }
  0x9d   : > { %v313_v22 = vsel %vm311_vm5, %v310_v20, %v280_v19 }
  0x9e   : > { %v292_v23 = vpop.permute.xlu1 %291  ;;  %v290_v24 = vpop.permute.xlu0 %289  ;;  %v316_v25 = vsel %vm314_vm6, %v313_v22, %v288_v21 }
  0x9f   : > { %504 = vmatpush3.bf16.msra.mxu0 %v316_v25  ;;  %v294_v29 = vsel %vm293_vm8, %v290_v24, %v292_v23 }
  0xa0   : > { %505 = vmatprep.subr.bf16.mxu0 %v656_v2 }
  0xa2   : > { %v298_v26 = vpop.permute.xlu1 %297  ;;  %v296_v27 = vpop.permute.xlu0 %295 }
  0xa3   : > { %v300_v28 = vsel %vm299_vm7, %v296_v27, %v298_v26 }
  0xa4   : > { %v320_v32 = vsel %vm307_vm3, %v294_v29, %v300_v28 }
  0xa6   : > { %v304_v30 = vpop.permute.xlu1 %303  ;;  %v302_v31 = vpop.permute.xlu0 %301 }
  0xa7   : > { %v306_v33 = vsel %vm305_vm9, %v302_v31, %v304_v30 }
  0xa8   : > { %v322_v34 = vsel %vm311_vm5, %v320_v32, %v306_v33 }
  0xa9   : > { %v338_v35 = vsel %vm314_vm6, %v322_v34, 0 }
  0xaa   : > { %506 = vmatpush3.bf16.msra.mxu0 %v338_v35 }
  0xad   : > { %508 = vmatmul.mubr.msk.bf16.vlgmr.msra.gmra.mrb[0].mxu0 %vm334_vm10, %v323_v36 }
  0xb7   : > { %v328_v40 = vpop.permute.xlu0 %327 }
  0xb8   : > { %v333_v41 = vrot.slane %v328_v40, %v332_v39 }
 0x180   : > { %v374_v42 = vpop.f32.mrb[0].mxu0 }
 0x181   : > { %v375_v43 = vadd.f32 %v374_v42, %v333_v41  ;;  %v509_v44 = vpop.f32.mrb[1].mxu0 }
 0x182   : > { %v377_v45 = vpop.f32.mrb[2].mxu0 }
 0x183   : > { %380 = vst [vmem:[%s241_s6] sm:$0x1] %v375_v43  ;;  %v510_v46 = vpop.f32.mrb[3].mxu0 }
 0x184   : > { %589 = shalt.err (!%p586_p5)
}
 0x185   : > { %s590_s15 = scalar_lea.hbm %s771_s10, 16  ;;  %s594_s23 = scalar_lea.hbm %s822_s4, 32 }
 0x186   : > { %p591_p6 = scmp.ne.s32.totalorder %s771_s10, %s590_s15  ;;  %p595_p10 = scmp.lt.u32.totalorder %s771_s10, %s822_s4 }
 0x187   : > { %p596_p11 = scmp.lt.u32.totalorder %s594_s23, %s590_s15  ;;  %p598_p13 = scmp.lt.u32.totalorder %s590_s15, %s771_s10 }
 0x188   : > { %p592_p7 = pnand %p591_p6, %p734_p4 }
 0x189   : > { %p597_p12 = por %p596_p11, %p595_p10 }
 0x18a   : > { %p593_p9 = pneg %p592_p7 }
 0x18b   : > { %p599_p0 = por %p598_p13, %p597_p12 }
 0x18d   : > { %p600_p1 = pnand %p599_p0, %p593_p9 }
 0x18f   : > { %603 = shalt.err (!%p600_p1)
}
 0x190   : > { %511 = dma.vmem_to_hbm [thread:$0]  (%p734_p4), %s773_s7, 16, %s771_s10, %s382_s11  }
 0x191 PF: > { %p517_p2 = scmp.ge.s32.totalorder %s654_s22, 2  ;;  %s407_s30 = sand.u32 1, %s634_s17  }
 0x192   : > { %s408_s5 = scalar_lea.sflag [#allocation4], %s407_s30 }
 0x193   : > { %p514_p3 = pnand %p517_p2, %p741_p8 }
 0x195   : > { %629 = dma.done.wait (!%p514_p3), %s408_s5, 16  }
 0x196   : > { %631 = vsyncadd (!%p514_p3), %s408_s5, 4294967280  ;;  %s19_s22 = sadd.s32 1, %s654_s22   ;;  %s825_s17 = smov %s638_s18 }
 0x197   : > { %p16_p5 = scmp.ge.s32.totalorder %s19_s22, 4   ;;  %s826_s18 = smov %s642_s19 }
 0x198   : > { %s827_s19 = smov %s747_s29  ;;  %s828_s20 = smov %s650_s21 }
 0x199   : > { %s829_s21 = smov %s831_s24  ;;  %18 = sbr.rel (!%p16_p5) target bundleno = 7 (0x7), region = 74 }
 0x1a0   :  { %412 = vsyncpa [#allocation4], 1 }
 0x1a1   :  { %414 = vsyncpa [#allocation4 + $0x1], 1 }

</bundles_post_ra>
